<compile_context>
chip_gen: v6e
topology: v6e:2x2x1
jax: 0.10.0
libtpu: 0.0.40
codegen_flags: <defaults>
</compile_context>

<pallas_src>
import functools

import jax
import jax.numpy as jnp
from jax.experimental import pallas as pl
from jax.experimental.pallas import tpu as pltpu


# ----------------------------------------------------------------------------
# Single fused Pallas kernel (one grid step == B_blk images)
# ----------------------------------------------------------------------------
def _fused_autoencoder_kernel(x_ref, w1_ref, b1_ref, w2c_ref, b2_ref,
                              wd1_ref, bd1_ref, wd2_ref, bd2_ref,
                              out_ref,
                              a1_scr, p1_scr, q_scr, a2_scr, x2_scr,
                              *, H, W, B_blk):
    """Forward pass for B_blk images, fully VMEM-resident.

    Activation layout: zero-padded image flattened row-major along the sublane
    axis, channels along the lane axis.  For flat index k = (W+2)*h + w of the
    un-shifted window, conv taps are contiguous slices at offset (W+2)*dy + dx.
    """
    f32, bf16 = jnp.float32, jnp.bfloat16
    H1, W1, H2, W2 = H // 2, W // 2, H // 4, W // 4
    Wp0, Wp1 = W + 2, W1 + 2
    L1f = H * Wp0                    # conv1 rows materialized (incl. 2 unused tail rows)
    L2f = H1 * Wp1                   # conv2 rows materialized
    P = H2 * W2                      # latent spatial positions per image

    # conv1 row chunking bounds the live-vreg set (each chunk <= 160 rows).
    CH1 = 160 if L1f > 160 else L1f
    chunk_starts = list(range(0, L1f, CH1))

    # Zero the padded conv2-input scratch once per step: borders are never
    # written below, so they provide the zero padding; interiors are fully
    # overwritten for every image.
    p1_scr[...] = jnp.zeros(p1_scr.shape, f32)

    for b in range(B_blk):
        # ---- en_conv1 (1->16, 3x3, pad 1) + ReLU: 9 narrow-slice broadcast
        #      FMAs on the VPU (no materialized (S0,16) broadcast).
        for c0 in chunk_starts:
            ch = min(CH1, L1f - c0)
            acc = None
            for dy in range(3):
                for dx in range(3):
                    t = dy * 3 + dx
                    s = Wp0 * dy + dx + c0
                    xs = x_ref[b, s:s + ch, :]                   # (ch, 1)
                    term = xs * w1_ref[t:t + 1, :]               # -> (ch, 16)
                    acc = term if acc is None else acc + term
            a1_scr[c0:c0 + ch, :] = jnp.maximum(acc + b1_ref[...], 0.0)

        # ---- pool1 (2x2, stride 2): stride-2 selects straight into the
        #      zero-padded flat layout of the next conv (borders stay zero).
        for i in range(H1):
            base = 2 * Wp0 * i
            v = jnp.maximum(
                jnp.maximum(a1_scr[pl.ds(base, W1, stride=2), :],
                            a1_scr[pl.ds(base + 1, W1, stride=2), :]),
                jnp.maximum(a1_scr[pl.ds(base + Wp0, W1, stride=2), :],
                            a1_scr[pl.ds(base + Wp0 + 1, W1, stride=2), :]))
            r0 = (i + 1) * Wp1 + 1
            p1_scr[r0:r0 + W1, :] = v                            # (W1, 16)

        # ---- en_conv2 (16->4, 3x3, pad 1) + ReLU: ONE bf16 MXU matmul over
        #      all 9 taps, then 9 shifted 4-wide column groups accumulated on
        #      the VPU from scratch (address-offset loads).
        q_scr[...] = jnp.dot(p1_scr[...].astype(bf16), w2c_ref[...],
                             preferred_element_type=f32)         # (S1p, 36)
        acc2 = None
        for dy in range(3):
            for dx in range(3):
                t = dy * 3 + dx
                s = Wp1 * dy + dx
                piece = q_scr[s:s + L2f, 4 * t:4 * t + 4]        # (L2f, 4)
                acc2 = piece if acc2 is None else acc2 + piece
        a2_scr[...] = jnp.maximum(acc2 + b2_ref[...], 0.0)       # (L2f, 4)

        # ---- pool2 (2x2, stride 2) -> row-major latent (P, 4) per image.
        for i in range(H2):
            base = 2 * Wp1 * i
            v = jnp.maximum(
                jnp.maximum(a2_scr[pl.ds(base, W2, stride=2), :],
                            a2_scr[pl.ds(base + 1, W2, stride=2), :]),
                jnp.maximum(a2_scr[pl.ds(base + Wp1, W2, stride=2), :],
                            a2_scr[pl.ds(base + Wp1 + 1, W2, stride=2), :]))
            r0 = b * P + i * W2
            x2_scr[r0:r0 + W2, :] = v                            # (W2, 4)

    # ---- Decoder, batched across the whole block (fat MXU M = B_blk*P) ------
    x2_all = x2_scr[...]                                         # (B_blk*P, 4)
    y1 = jnp.maximum(jnp.dot(x2_all.astype(bf16), wd1_ref[...],
                             preferred_element_type=f32) + bd1_ref[...], 0.0)
    z = jnp.dot(y1.astype(bf16), wd2_ref[...],
                preferred_element_type=f32) + bd2_ref[...]
    z = jax.nn.sigmoid(z)                                        # (B_blk*P, 16)

    # ---- Lane-dense writeback: fold each image's (P, 16) result into one
    #      (1, P*16) = 256-lane row and store the whole block once.
    out_rows = []
    for b in range(B_blk):
        zb = z[b * P:(b + 1) * P, :]
        out_rows.append(jnp.concatenate([zb[r:r + 1, :] for r in range(P)],
                                        axis=1))                 # (1, P*16)
    out_ref[...] = jnp.concatenate(out_rows, axis=0)             # (B_blk, P*16)


# ----------------------------------------------------------------------------
# Weight-layout transforms (tap-major / factorized sub-pixel matrices)
# ----------------------------------------------------------------------------
def _prepare_weights(p):
    f32, bf16 = jnp.float32, jnp.bfloat16
    # en_conv1 (16,1,3,3) -> (9,16) tap-major rows [dy*3+dx]; stays f32 (VPU).
    w1 = jnp.transpose(p["en_conv1_w"][:, 0, :, :], (1, 2, 0)).reshape(9, 16)
    b1 = p["en_conv1_b"].reshape(1, 16)
    # en_conv2 (4,16,3,3) -> (16, 9*4): all 9 taps fused into one MXU matmul.
    w2c = jnp.transpose(p["en_conv2_w"], (1, 2, 3, 0)).reshape(16, 36).astype(bf16)
    b2 = p["en_conv2_b"].reshape(1, 4)
    # de_conv1 (Cin=4, Cout=16, 2, 2) -> (4, 64), columns ordered (a, b, cout).
    wd1 = jnp.transpose(p["de_conv1_w"], (0, 2, 3, 1)).reshape(4, 64).astype(bf16)
    bd1 = jnp.tile(p["de_conv1_b"], 4).reshape(1, 64).astype(f32)
    # de_conv2 (16,1,2,2) chained on the factorized deconv1 output:
    # block matrix (a,b,ci)-rows -> (yl,xl)-cols with yl=2a+a', xl=2b+b'.
    w = p["de_conv2_w"]
    blk = jnp.zeros((2, 2, 16, 4, 4), f32)
    for a in range(2):
        for bb in range(2):
            blk = blk.at[a, bb, :, 2 * a:2 * a + 2, 2 * bb:2 * bb + 2].set(w[:, 0, :, :])
    wd2 = blk.reshape(64, 16).astype(bf16)
    bd2 = p["de_conv2_b"].reshape(1, 1)
    return w1, b1, w2c, b2, wd1, bd1, wd2, bd2


def _choose_batch_block(N):
    # Amortize the ~0.35us per-grid-step overhead over up to 8 images while
    # keeping the grid length >= 2 (even when possible) so both v7x TCs work.
    if N <= 1:
        return 1
    return min(8, max(1, N // 2))


# ----------------------------------------------------------------------------
# Public forward (NCHW in, NCHW out) — one pallas_call for the whole network
# ----------------------------------------------------------------------------
def _model_forward(params, x_nchw):
    N, C, H, W = x_nchw.shape
    assert C == 1 and H % 4 == 0 and W % 4 == 0
    H1, W1, H2, W2 = H // 2, W // 2, H // 4, W // 4
    Wp0, Wp1 = W + 2, W1 + 2
    S0p = (H + 2) * Wp0 + 2          # padded-flat input rows (+2 -> full tap slices)
    S1p = (H1 + 2) * Wp1 + 2         # padded-flat conv2-input rows (+2)
    L1f, L2f, P = H * Wp0, H1 * Wp1, H2 * W2

    B_blk = _choose_batch_block(N)
    G = -(-N // B_blk)
    N_pad = G * B_blk

    w1, b1, w2c, b2, wd1, bd1, wd2, bd2 = _prepare_weights(params)
    weight_inputs = (w1, b1, w2c, b2, wd1, bd1, wd2, bd2)

    # Input prep (one-time, tiny): NCHW with C=1 -> zero-padded, row-major
    # flattened (N_pad, S0p, 1) layout expected by the kernel.
    x3 = x_nchw.reshape(N, H, W)
    if N_pad != N:
        x3 = jnp.pad(x3, ((0, N_pad - N), (0, 0), (0, 0)))
    xp = jnp.pad(x3, ((0, 0), (1, 1), (1, 1)))
    p0 = jnp.pad(xp.reshape(N_pad, (H + 2) * Wp0), ((0, 0), (0, 2)))[..., None]

    kernel = functools.partial(_fused_autoencoder_kernel, H=H, W=W, B_blk=B_blk)

    z = pl.pallas_call(
        kernel,
        out_shape=jax.ShapeDtypeStruct((G, B_blk, P * 16), jnp.float32),
        grid=(G,),
        in_specs=[pl.BlockSpec((B_blk, S0p, 1), lambda g: (g, 0, 0))]
                 + [pl.BlockSpec(a.shape, lambda g, nd=a.ndim: (0,) * nd)
                    for a in weight_inputs],
        out_specs=pl.BlockSpec((None, B_blk, P * 16), lambda g: (g, 0, 0)),
        scratch_shapes=[
            pltpu.VMEM((L1f, 16), jnp.float32),       # conv1 output (padded-flat rows)
            pltpu.VMEM((S1p, 16), jnp.float32),       # pooled conv2 input (zero borders)
            pltpu.VMEM((S1p, 36), jnp.float32),       # fused-tap conv2 pre-accumulation
            pltpu.VMEM((L2f, 4), jnp.float32),        # conv2 output
            pltpu.VMEM((B_blk * P, 4), jnp.float32),  # pooled latent for the whole block
        ],
        compiler_params=pltpu.CompilerParams(
            dimension_semantics=("parallel",)),        # v7x: 2 TCs split the grid
    )(p0, *weight_inputs)

    # Final sub-pixel de-interleave (last layer only, ~1 KB/image):
    #   z[n, (W2*i + j)*16 + 4*yl + xl] -> img[n, 0, 4*i + yl, 4*j + xl]
    img = (z.reshape(N_pad, H2, W2, 4, 4)
            .transpose(0, 1, 3, 2, 4)
            .reshape(N_pad, 1, H, W))                  # NHWC->NCHW free (C == 1)
    return img[:N]


model_forward = jax.jit(_model_forward)


# ----------------------------------------------------------------------------
# Parameters (PyTorch-style shapes & uniform init) and a pure-JAX reference
# ----------------------------------------------------------------------------
def init_params(key):
    ks = jax.random.split(key, 8)

    def u(k, shape, fan_in):
        bound = 1.0 / (fan_in ** 0.5)
        return jax.random.uniform(k, shape, jnp.float32, -bound, bound)

    return {
        "en_conv1_w": u(ks[0], (16, 1, 3, 3), 1 * 9),
        "en_conv1_b": u(ks[1], (16,), 1 * 9),
        "en_conv2_w": u(ks[2], (4, 16, 3, 3), 16 * 9),
        "en_conv2_b": u(ks[3], (4,), 16 * 9),
        "de_conv1_w": u(ks[4], (4, 16, 2, 2), 16 * 4),
        "de_conv1_b": u(ks[5], (16,), 16 * 4),
        "de_conv2_w": u(ks[6], (16, 1, 2, 2), 1 * 4),
        "de_conv2_b": u(ks[7], (1,), 1 * 4),
    }


def reference_forward(params, x):
    """Definitional NCHW reference (plain JAX, HIGHEST-precision contractions)."""
    hp_prec = jax.lax.Precision.HIGHEST

    def conv3x3(h, w, b):
        n, c, H, W = h.shape
        hpd = jnp.pad(h, ((0, 0), (0, 0), (1, 1), (1, 1)))
        out = jnp.zeros((n, w.shape[0], H, W), jnp.float32)
        for dy in range(3):
            for dx in range(3):
                out = out + jnp.einsum("nchw,oc->nohw",
                                       hpd[:, :, dy:dy + H, dx:dx + W],
                                       w[:, :, dy, dx], precision=hp_prec)
        return out + b[None, :, None, None]

    def maxpool2(h):
        return jnp.maximum(
            jnp.maximum(h[:, :, 0::2, 0::2], h[:, :, 0::2, 1::2]),
            jnp.maximum(h[:, :, 1::2, 0::2], h[:, :, 1::2, 1::2]))

    def deconv2x2(h, w, b):
        y = jnp.einsum("nchw,cdab->ndhawb", h, w, precision=hp_prec)
        n, d, H, _, W, _ = y.shape
        return y.reshape(n, d, 2 * H, 2 * W) + b[None, :, None, None]

    h = jax.nn.relu(conv3x3(x, params["en_conv1_w"], params["en_conv1_b"]))
    h = maxpool2(h)
    h = jax.nn.relu(conv3x3(h, params["en_conv2_w"], params["en_conv2_b"]))
    h = maxpool2(h)
    h = jax.nn.relu(deconv2x2(h, params["de_conv1_w"], params["de_conv1_b"]))
    h = jax.nn.sigmoid(deconv2x2(h, params["de_conv2_w"], params["de_conv2_b"]))
    return h


if __name__ == "__main__":
    key = jax.random.PRNGKey(0)
    kx, kp = jax.random.split(key)
    x = jax.random.normal(kx, (2, 1, 16, 16), dtype=jnp.float32)  # NCHW, like PyTorch
    params = init_params(kp)

    y = model_forward(params, x)
    jax.block_until_ready(y)

    assert y.shape == (2, 1, 16, 16), y.shape
    assert y.dtype == jnp.float32
    assert bool(jnp.all((y >= 0.0) & (y <= 1.0)))        # sigmoid output range

    y_ref = reference_forward(params, x)
    max_err = float(jnp.max(jnp.abs(y - y_ref)))
    # bf16 MXU operands (f32 accumulation) vs f32-HIGHEST reference.
    assert max_err < 2e-2, f"mismatch vs reference: {max_err}"

    print("KERNEL_OK")
</pallas_src>

<mosaic_0001>
module attributes {stable_mosaic.version = 11 : i64} {
  func.func @_fused_autoencoder_kernel(%arg0: i32, %arg1: memref<1x326x1xf32, #tpu.memory_space<vmem>>, %arg2: memref<9x16xf32, #tpu.memory_space<vmem>>, %arg3: memref<1x16xf32, #tpu.memory_space<vmem>>, %arg4: memref<16x36xbf16, #tpu.memory_space<vmem>>, %arg5: memref<1x4xf32, #tpu.memory_space<vmem>>, %arg6: memref<4x64xbf16, #tpu.memory_space<vmem>>, %arg7: memref<1x64xf32, #tpu.memory_space<vmem>>, %arg8: memref<64x16xbf16, #tpu.memory_space<vmem>>, %arg9: memref<1x1xf32, #tpu.memory_space<vmem>>, %arg10: memref<1x1x256xf32, #tpu.memory_space<vmem>>, %arg11: memref<288x16xf32, #tpu.memory_space<vmem>>, %arg12: memref<102x16xf32, #tpu.memory_space<vmem>>, %arg13: memref<102x36xf32, #tpu.memory_space<vmem>>, %arg14: memref<80x4xf32, #tpu.memory_space<vmem>>, %arg15: memref<16x4xf32, #tpu.memory_space<vmem>>) attributes {dimension_semantics = [#tpu.dimension_semantics<parallel>], iteration_bounds = array<i64: 2>, scalar_prefetch = 0 : i64, scratch_operands = 5 : i64, tpu.core_type = #tpu.core_type<tc>, window_params = [{transform_indices = @transform_0, window_bounds = array<i64: 1, 326, 1>}, {pipeline_mode = #tpu.pipeline_mode<synchronous>, transform_indices = @transform_1, window_bounds = array<i64: 9, 16>}, {pipeline_mode = #tpu.pipeline_mode<synchronous>, transform_indices = @transform_2, window_bounds = array<i64: 1, 16>}, {pipeline_mode = #tpu.pipeline_mode<synchronous>, transform_indices = @transform_3, window_bounds = array<i64: 16, 36>}, {pipeline_mode = #tpu.pipeline_mode<synchronous>, transform_indices = @transform_4, window_bounds = array<i64: 1, 4>}, {pipeline_mode = #tpu.pipeline_mode<synchronous>, transform_indices = @transform_5, window_bounds = array<i64: 4, 64>}, {pipeline_mode = #tpu.pipeline_mode<synchronous>, transform_indices = @transform_6, window_bounds = array<i64: 1, 64>}, {pipeline_mode = #tpu.pipeline_mode<synchronous>, transform_indices = @transform_7, window_bounds = array<i64: 64, 16>}, {pipeline_mode = #tpu.pipeline_mode<synchronous>, transform_indices = @transform_8, window_bounds = array<i64: 1, 1>}, {transform_indices = @transform_9, window_bounds = array<i64: 1, 1, 256>}]} {
    %cst = arith.constant 0.000000e+00 : f32
    %0 = vector.broadcast %cst : f32 to vector<102x16xf32>
    %c0 = arith.constant 0 : index
    %c0_0 = arith.constant 0 : index
    %1 = vector.load %arg12[%c0, %c0_0] : memref<102x16xf32, #tpu.memory_space<vmem>>, vector<102x16xf32>
    tpu.vector_store %arg12[%c0, %c0_0], %0 {strides = array<i32>} : memref<102x16xf32, #tpu.memory_space<vmem>>, vector<102x16xf32>,
    %c0_1 = arith.constant 0 : index
    %c0_2 = arith.constant 0 : index
    %c0_3 = arith.constant 0 : index
    %2 = vector.load %arg1[%c0_1, %c0_2, %c0_3] : memref<1x326x1xf32, #tpu.memory_space<vmem>>, vector<1x160x1xf32>
    %3 = vector.shape_cast %2 : vector<1x160x1xf32> to vector<160x1xf32>
    %c0_4 = arith.constant 0 : index
    %c0_5 = arith.constant 0 : index
    %4 = vector.load %arg2[%c0_4, %c0_5] : memref<9x16xf32, #tpu.memory_space<vmem>>, vector<1x16xf32>
    %5 = vector.broadcast %3 : vector<160x1xf32> to vector<160x16xf32>
    %6 = vector.broadcast %4 : vector<1x16xf32> to vector<160x16xf32>
    %7 = arith.mulf %5, %6 : vector<160x16xf32>
    %c0_6 = arith.constant 0 : index
    %c1 = arith.constant 1 : index
    %c0_7 = arith.constant 0 : index
    %8 = vector.load %arg1[%c0_6, %c1, %c0_7] : memref<1x326x1xf32, #tpu.memory_space<vmem>>, vector<1x160x1xf32>
    %9 = vector.shape_cast %8 : vector<1x160x1xf32> to vector<160x1xf32>
    %c1_8 = arith.constant 1 : index
    %c0_9 = arith.constant 0 : index
    %10 = vector.load %arg2[%c1_8, %c0_9] : memref<9x16xf32, #tpu.memory_space<vmem>>, vector<1x16xf32>
    %11 = vector.broadcast %9 : vector<160x1xf32> to vector<160x16xf32>
    %12 = vector.broadcast %10 : vector<1x16xf32> to vector<160x16xf32>
    %13 = arith.mulf %11, %12 : vector<160x16xf32>
    %14 = arith.addf %7, %13 : vector<160x16xf32>
    %c0_10 = arith.constant 0 : index
    %c2 = arith.constant 2 : index
    %c0_11 = arith.constant 0 : index
    %15 = vector.load %arg1[%c0_10, %c2, %c0_11] : memref<1x326x1xf32, #tpu.memory_space<vmem>>, vector<1x160x1xf32>
    %16 = vector.shape_cast %15 : vector<1x160x1xf32> to vector<160x1xf32>
    %c2_12 = arith.constant 2 : index
    %c0_13 = arith.constant 0 : index
    %17 = vector.load %arg2[%c2_12, %c0_13] : memref<9x16xf32, #tpu.memory_space<vmem>>, vector<1x16xf32>
    %18 = vector.broadcast %16 : vector<160x1xf32> to vector<160x16xf32>
    %19 = vector.broadcast %17 : vector<1x16xf32> to vector<160x16xf32>
    %20 = arith.mulf %18, %19 : vector<160x16xf32>
    %21 = arith.addf %14, %20 : vector<160x16xf32>
    %c0_14 = arith.constant 0 : index
    %c18 = arith.constant 18 : index
    %c0_15 = arith.constant 0 : index
    %22 = vector.load %arg1[%c0_14, %c18, %c0_15] : memref<1x326x1xf32, #tpu.memory_space<vmem>>, vector<1x160x1xf32>
    %23 = vector.shape_cast %22 : vector<1x160x1xf32> to vector<160x1xf32>
    %c3 = arith.constant 3 : index
    %c0_16 = arith.constant 0 : index
    %24 = vector.load %arg2[%c3, %c0_16] : memref<9x16xf32, #tpu.memory_space<vmem>>, vector<1x16xf32>
    %25 = vector.broadcast %23 : vector<160x1xf32> to vector<160x16xf32>
    %26 = vector.broadcast %24 : vector<1x16xf32> to vector<160x16xf32>
    %27 = arith.mulf %25, %26 : vector<160x16xf32>
    %28 = arith.addf %21, %27 : vector<160x16xf32>
    %c0_17 = arith.constant 0 : index
    %c19 = arith.constant 19 : index
    %c0_18 = arith.constant 0 : index
    %29 = vector.load %arg1[%c0_17, %c19, %c0_18] : memref<1x326x1xf32, #tpu.memory_space<vmem>>, vector<1x160x1xf32>
    %30 = vector.shape_cast %29 : vector<1x160x1xf32> to vector<160x1xf32>
    %c4 = arith.constant 4 : index
    %c0_19 = arith.constant 0 : index
    %31 = vector.load %arg2[%c4, %c0_19] : memref<9x16xf32, #tpu.memory_space<vmem>>, vector<1x16xf32>
    %32 = vector.broadcast %30 : vector<160x1xf32> to vector<160x16xf32>
    %33 = vector.broadcast %31 : vector<1x16xf32> to vector<160x16xf32>
    %34 = arith.mulf %32, %33 : vector<160x16xf32>
    %35 = arith.addf %28, %34 : vector<160x16xf32>
    %c0_20 = arith.constant 0 : index
    %c20 = arith.constant 20 : index
    %c0_21 = arith.constant 0 : index
    %36 = vector.load %arg1[%c0_20, %c20, %c0_21] : memref<1x326x1xf32, #tpu.memory_space<vmem>>, vector<1x160x1xf32>
    %37 = vector.shape_cast %36 : vector<1x160x1xf32> to vector<160x1xf32>
    %c5 = arith.constant 5 : index
    %c0_22 = arith.constant 0 : index
    %38 = vector.load %arg2[%c5, %c0_22] : memref<9x16xf32, #tpu.memory_space<vmem>>, vector<1x16xf32>
    %39 = vector.broadcast %37 : vector<160x1xf32> to vector<160x16xf32>
    %40 = vector.broadcast %38 : vector<1x16xf32> to vector<160x16xf32>
    %41 = arith.mulf %39, %40 : vector<160x16xf32>
    %42 = arith.addf %35, %41 : vector<160x16xf32>
    %c0_23 = arith.constant 0 : index
    %c36 = arith.constant 36 : index
    %c0_24 = arith.constant 0 : index
    %43 = vector.load %arg1[%c0_23, %c36, %c0_24] : memref<1x326x1xf32, #tpu.memory_space<vmem>>, vector<1x160x1xf32>
    %44 = vector.shape_cast %43 : vector<1x160x1xf32> to vector<160x1xf32>
    %c6 = arith.constant 6 : index
    %c0_25 = arith.constant 0 : index
    %45 = vector.load %arg2[%c6, %c0_25] : memref<9x16xf32, #tpu.memory_space<vmem>>, vector<1x16xf32>
    %46 = vector.broadcast %44 : vector<160x1xf32> to vector<160x16xf32>
    %47 = vector.broadcast %45 : vector<1x16xf32> to vector<160x16xf32>
    %48 = arith.mulf %46, %47 : vector<160x16xf32>
    %49 = arith.addf %42, %48 : vector<160x16xf32>
    %c0_26 = arith.constant 0 : index
    %c37 = arith.constant 37 : index
    %c0_27 = arith.constant 0 : index
    %50 = vector.load %arg1[%c0_26, %c37, %c0_27] : memref<1x326x1xf32, #tpu.memory_space<vmem>>, vector<1x160x1xf32>
    %51 = vector.shape_cast %50 : vector<1x160x1xf32> to vector<160x1xf32>
    %c7 = arith.constant 7 : index
    %c0_28 = arith.constant 0 : index
    %52 = vector.load %arg2[%c7, %c0_28] : memref<9x16xf32, #tpu.memory_space<vmem>>, vector<1x16xf32>
    %53 = vector.broadcast %51 : vector<160x1xf32> to vector<160x16xf32>
    %54 = vector.broadcast %52 : vector<1x16xf32> to vector<160x16xf32>
    %55 = arith.mulf %53, %54 : vector<160x16xf32>
    %56 = arith.addf %49, %55 : vector<160x16xf32>
    %c0_29 = arith.constant 0 : index
    %c38 = arith.constant 38 : index
    %c0_30 = arith.constant 0 : index
    %57 = vector.load %arg1[%c0_29, %c38, %c0_30] : memref<1x326x1xf32, #tpu.memory_space<vmem>>, vector<1x160x1xf32>
    %58 = vector.shape_cast %57 : vector<1x160x1xf32> to vector<160x1xf32>
    %c8 = arith.constant 8 : index
    %c0_31 = arith.constant 0 : index
    %59 = vector.load %arg2[%c8, %c0_31] : memref<9x16xf32, #tpu.memory_space<vmem>>, vector<1x16xf32>
    %60 = vector.broadcast %58 : vector<160x1xf32> to vector<160x16xf32>
    %61 = vector.broadcast %59 : vector<1x16xf32> to vector<160x16xf32>
    %62 = arith.mulf %60, %61 : vector<160x16xf32>
    %63 = arith.addf %56, %62 : vector<160x16xf32>
    %c0_32 = arith.constant 0 : index
    %c0_33 = arith.constant 0 : index
    %64 = vector.load %arg3[%c0_32, %c0_33] : memref<1x16xf32, #tpu.memory_space<vmem>>, vector<1x16xf32>
    %65 = vector.broadcast %64 : vector<1x16xf32> to vector<160x16xf32>
    %66 = arith.addf %63, %65 : vector<160x16xf32>
    %cst_34 = arith.constant 0.000000e+00 : f32
    %67 = vector.broadcast %cst_34 : f32 to vector<160x16xf32>
    %68 = arith.maximumf %66, %67 : vector<160x16xf32>
    %c0_35 = arith.constant 0 : index
    %c0_36 = arith.constant 0 : index
    %69 = vector.load %arg11[%c0_35, %c0_36] : memref<288x16xf32, #tpu.memory_space<vmem>>, vector<160x16xf32>
    tpu.vector_store %arg11[%c0_35, %c0_36], %68 {strides = array<i32>} : memref<288x16xf32, #tpu.memory_space<vmem>>, vector<160x16xf32>,
    %c0_37 = arith.constant 0 : index
    %c160 = arith.constant 160 : index
    %c0_38 = arith.constant 0 : index
    %70 = vector.load %arg1[%c0_37, %c160, %c0_38] : memref<1x326x1xf32, #tpu.memory_space<vmem>>, vector<1x128x1xf32>
    %71 = vector.shape_cast %70 : vector<1x128x1xf32> to vector<128x1xf32>
    %c0_39 = arith.constant 0 : index
    %c0_40 = arith.constant 0 : index
    %72 = vector.load %arg2[%c0_39, %c0_40] : memref<9x16xf32, #tpu.memory_space<vmem>>, vector<1x16xf32>
    %73 = vector.broadcast %71 : vector<128x1xf32> to vector<128x16xf32>
    %74 = vector.broadcast %72 : vector<1x16xf32> to vector<128x16xf32>
    %75 = arith.mulf %73, %74 : vector<128x16xf32>
    %c0_41 = arith.constant 0 : index
    %c161 = arith.constant 161 : index
    %c0_42 = arith.constant 0 : index
    %76 = vector.load %arg1[%c0_41, %c161, %c0_42] : memref<1x326x1xf32, #tpu.memory_space<vmem>>, vector<1x128x1xf32>
    %77 = vector.shape_cast %76 : vector<1x128x1xf32> to vector<128x1xf32>
    %c1_43 = arith.constant 1 : index
    %c0_44 = arith.constant 0 : index
    %78 = vector.load %arg2[%c1_43, %c0_44] : memref<9x16xf32, #tpu.memory_space<vmem>>, vector<1x16xf32>
    %79 = vector.broadcast %77 : vector<128x1xf32> to vector<128x16xf32>
    %80 = vector.broadcast %78 : vector<1x16xf32> to vector<128x16xf32>
    %81 = arith.mulf %79, %80 : vector<128x16xf32>
    %82 = arith.addf %75, %81 : vector<128x16xf32>
    %c0_45 = arith.constant 0 : index
    %c162 = arith.constant 162 : index
    %c0_46 = arith.constant 0 : index
    %83 = vector.load %arg1[%c0_45, %c162, %c0_46] : memref<1x326x1xf32, #tpu.memory_space<vmem>>, vector<1x128x1xf32>
    %84 = vector.shape_cast %83 : vector<1x128x1xf32> to vector<128x1xf32>
    %c2_47 = arith.constant 2 : index
    %c0_48 = arith.constant 0 : index
    %85 = vector.load %arg2[%c2_47, %c0_48] : memref<9x16xf32, #tpu.memory_space<vmem>>, vector<1x16xf32>
    %86 = vector.broadcast %84 : vector<128x1xf32> to vector<128x16xf32>
    %87 = vector.broadcast %85 : vector<1x16xf32> to vector<128x16xf32>
    %88 = arith.mulf %86, %87 : vector<128x16xf32>
    %89 = arith.addf %82, %88 : vector<128x16xf32>
    %c0_49 = arith.constant 0 : index
    %c178 = arith.constant 178 : index
    %c0_50 = arith.constant 0 : index
    %90 = vector.load %arg1[%c0_49, %c178, %c0_50] : memref<1x326x1xf32, #tpu.memory_space<vmem>>, vector<1x128x1xf32>
    %91 = vector.shape_cast %90 : vector<1x128x1xf32> to vector<128x1xf32>
    %c3_51 = arith.constant 3 : index
    %c0_52 = arith.constant 0 : index
    %92 = vector.load %arg2[%c3_51, %c0_52] : memref<9x16xf32, #tpu.memory_space<vmem>>, vector<1x16xf32>
    %93 = vector.broadcast %91 : vector<128x1xf32> to vector<128x16xf32>
    %94 = vector.broadcast %92 : vector<1x16xf32> to vector<128x16xf32>
    %95 = arith.mulf %93, %94 : vector<128x16xf32>
    %96 = arith.addf %89, %95 : vector<128x16xf32>
    %c0_53 = arith.constant 0 : index
    %c179 = arith.constant 179 : index
    %c0_54 = arith.constant 0 : index
    %97 = vector.load %arg1[%c0_53, %c179, %c0_54] : memref<1x326x1xf32, #tpu.memory_space<vmem>>, vector<1x128x1xf32>
    %98 = vector.shape_cast %97 : vector<1x128x1xf32> to vector<128x1xf32>
    %c4_55 = arith.constant 4 : index
    %c0_56 = arith.constant 0 : index
    %99 = vector.load %arg2[%c4_55, %c0_56] : memref<9x16xf32, #tpu.memory_space<vmem>>, vector<1x16xf32>
    %100 = vector.broadcast %98 : vector<128x1xf32> to vector<128x16xf32>
    %101 = vector.broadcast %99 : vector<1x16xf32> to vector<128x16xf32>
    %102 = arith.mulf %100, %101 : vector<128x16xf32>
    %103 = arith.addf %96, %102 : vector<128x16xf32>
    %c0_57 = arith.constant 0 : index
    %c180 = arith.constant 180 : index
    %c0_58 = arith.constant 0 : index
    %104 = vector.load %arg1[%c0_57, %c180, %c0_58] : memref<1x326x1xf32, #tpu.memory_space<vmem>>, vector<1x128x1xf32>
    %105 = vector.shape_cast %104 : vector<1x128x1xf32> to vector<128x1xf32>
    %c5_59 = arith.constant 5 : index
    %c0_60 = arith.constant 0 : index
    %106 = vector.load %arg2[%c5_59, %c0_60] : memref<9x16xf32, #tpu.memory_space<vmem>>, vector<1x16xf32>
    %107 = vector.broadcast %105 : vector<128x1xf32> to vector<128x16xf32>
    %108 = vector.broadcast %106 : vector<1x16xf32> to vector<128x16xf32>
    %109 = arith.mulf %107, %108 : vector<128x16xf32>
    %110 = arith.addf %103, %109 : vector<128x16xf32>
    %c0_61 = arith.constant 0 : index
    %c196 = arith.constant 196 : index
    %c0_62 = arith.constant 0 : index
    %111 = vector.load %arg1[%c0_61, %c196, %c0_62] : memref<1x326x1xf32, #tpu.memory_space<vmem>>, vector<1x128x1xf32>
    %112 = vector.shape_cast %111 : vector<1x128x1xf32> to vector<128x1xf32>
    %c6_63 = arith.constant 6 : index
    %c0_64 = arith.constant 0 : index
    %113 = vector.load %arg2[%c6_63, %c0_64] : memref<9x16xf32, #tpu.memory_space<vmem>>, vector<1x16xf32>
    %114 = vector.broadcast %112 : vector<128x1xf32> to vector<128x16xf32>
    %115 = vector.broadcast %113 : vector<1x16xf32> to vector<128x16xf32>
    %116 = arith.mulf %114, %115 : vector<128x16xf32>
    %117 = arith.addf %110, %116 : vector<128x16xf32>
    %c0_65 = arith.constant 0 : index
    %c197 = arith.constant 197 : index
    %c0_66 = arith.constant 0 : index
    %118 = vector.load %arg1[%c0_65, %c197, %c0_66] : memref<1x326x1xf32, #tpu.memory_space<vmem>>, vector<1x128x1xf32>
    %119 = vector.shape_cast %118 : vector<1x128x1xf32> to vector<128x1xf32>
    %c7_67 = arith.constant 7 : index
    %c0_68 = arith.constant 0 : index
    %120 = vector.load %arg2[%c7_67, %c0_68] : memref<9x16xf32, #tpu.memory_space<vmem>>, vector<1x16xf32>
    %121 = vector.broadcast %119 : vector<128x1xf32> to vector<128x16xf32>
    %122 = vector.broadcast %120 : vector<1x16xf32> to vector<128x16xf32>
    %123 = arith.mulf %121, %122 : vector<128x16xf32>
    %124 = arith.addf %117, %123 : vector<128x16xf32>
    %c0_69 = arith.constant 0 : index
    %c198 = arith.constant 198 : index
    %c0_70 = arith.constant 0 : index
    %125 = vector.load %arg1[%c0_69, %c198, %c0_70] : memref<1x326x1xf32, #tpu.memory_space<vmem>>, vector<1x128x1xf32>
    %126 = vector.shape_cast %125 : vector<1x128x1xf32> to vector<128x1xf32>
    %c8_71 = arith.constant 8 : index
    %c0_72 = arith.constant 0 : index
    %127 = vector.load %arg2[%c8_71, %c0_72] : memref<9x16xf32, #tpu.memory_space<vmem>>, vector<1x16xf32>
    %128 = vector.broadcast %126 : vector<128x1xf32> to vector<128x16xf32>
    %129 = vector.broadcast %127 : vector<1x16xf32> to vector<128x16xf32>
    %130 = arith.mulf %128, %129 : vector<128x16xf32>
    %131 = arith.addf %124, %130 : vector<128x16xf32>
    %c0_73 = arith.constant 0 : index
    %c0_74 = arith.constant 0 : index
    %132 = vector.load %arg3[%c0_73, %c0_74] : memref<1x16xf32, #tpu.memory_space<vmem>>, vector<1x16xf32>
    %133 = vector.broadcast %132 : vector<1x16xf32> to vector<128x16xf32>
    %134 = arith.addf %131, %133 : vector<128x16xf32>
    %cst_75 = arith.constant 0.000000e+00 : f32
    %135 = vector.broadcast %cst_75 : f32 to vector<128x16xf32>
    %136 = arith.maximumf %134, %135 : vector<128x16xf32>
    %c160_76 = arith.constant 160 : index
    %c0_77 = arith.constant 0 : index
    %137 = vector.load %arg11[%c160_76, %c0_77] : memref<288x16xf32, #tpu.memory_space<vmem>>, vector<128x16xf32>
    tpu.vector_store %arg11[%c160_76, %c0_77], %136 {strides = array<i32>} : memref<288x16xf32, #tpu.memory_space<vmem>>, vector<128x16xf32>,
    %c0_78 = arith.constant 0 : index
    %c0_79 = arith.constant 0 : index
    %138 = tpu.strided_load %arg11[%c0_78, %c0_79] {strides = array<i32: 2, 1>} : memref<288x16xf32, #tpu.memory_space<vmem>>, vector<8x16xf32>
    %c1_80 = arith.constant 1 : index
    %c0_81 = arith.constant 0 : index
    %139 = tpu.strided_load %arg11[%c1_80, %c0_81] {strides = array<i32: 2, 1>} : memref<288x16xf32, #tpu.memory_space<vmem>>, vector<8x16xf32>
    %140 = arith.maximumf %138, %139 : vector<8x16xf32>
    %c18_82 = arith.constant 18 : index
    %c0_83 = arith.constant 0 : index
    %141 = tpu.strided_load %arg11[%c18_82, %c0_83] {strides = array<i32: 2, 1>} : memref<288x16xf32, #tpu.memory_space<vmem>>, vector<8x16xf32>
    %c19_84 = arith.constant 19 : index
    %c0_85 = arith.constant 0 : index
    %142 = tpu.strided_load %arg11[%c19_84, %c0_85] {strides = array<i32: 2, 1>} : memref<288x16xf32, #tpu.memory_space<vmem>>, vector<8x16xf32>
    %143 = arith.maximumf %141, %142 : vector<8x16xf32>
    %144 = arith.maximumf %140, %143 : vector<8x16xf32>
    %c11 = arith.constant 11 : index
    %c0_86 = arith.constant 0 : index
    %145 = vector.load %arg12[%c11, %c0_86] : memref<102x16xf32, #tpu.memory_space<vmem>>, vector<8x16xf32>
    tpu.vector_store %arg12[%c11, %c0_86], %144 {strides = array<i32>} : memref<102x16xf32, #tpu.memory_space<vmem>>, vector<8x16xf32>,
    %c36_87 = arith.constant 36 : index
    %c0_88 = arith.constant 0 : index
    %146 = tpu.strided_load %arg11[%c36_87, %c0_88] {strides = array<i32: 2, 1>} : memref<288x16xf32, #tpu.memory_space<vmem>>, vector<8x16xf32>
    %c37_89 = arith.constant 37 : index
    %c0_90 = arith.constant 0 : index
    %147 = tpu.strided_load %arg11[%c37_89, %c0_90] {strides = array<i32: 2, 1>} : memref<288x16xf32, #tpu.memory_space<vmem>>, vector<8x16xf32>
    %148 = arith.maximumf %146, %147 : vector<8x16xf32>
    %c54 = arith.constant 54 : index
    %c0_91 = arith.constant 0 : index
    %149 = tpu.strided_load %arg11[%c54, %c0_91] {strides = array<i32: 2, 1>} : memref<288x16xf32, #tpu.memory_space<vmem>>, vector<8x16xf32>
    %c55 = arith.constant 55 : index
    %c0_92 = arith.constant 0 : index
    %150 = tpu.strided_load %arg11[%c55, %c0_92] {strides = array<i32: 2, 1>} : memref<288x16xf32, #tpu.memory_space<vmem>>, vector<8x16xf32>
    %151 = arith.maximumf %149, %150 : vector<8x16xf32>
    %152 = arith.maximumf %148, %151 : vector<8x16xf32>
    %c21 = arith.constant 21 : index
    %c0_93 = arith.constant 0 : index
    %153 = vector.load %arg12[%c21, %c0_93] : memref<102x16xf32, #tpu.memory_space<vmem>>, vector<8x16xf32>
    tpu.vector_store %arg12[%c21, %c0_93], %152 {strides = array<i32>} : memref<102x16xf32, #tpu.memory_space<vmem>>, vector<8x16xf32>,
    %c72 = arith.constant 72 : index
    %c0_94 = arith.constant 0 : index
    %154 = tpu.strided_load %arg11[%c72, %c0_94] {strides = array<i32: 2, 1>} : memref<288x16xf32, #tpu.memory_space<vmem>>, vector<8x16xf32>
    %c73 = arith.constant 73 : index
    %c0_95 = arith.constant 0 : index
    %155 = tpu.strided_load %arg11[%c73, %c0_95] {strides = array<i32: 2, 1>} : memref<288x16xf32, #tpu.memory_space<vmem>>, vector<8x16xf32>
    %156 = arith.maximumf %154, %155 : vector<8x16xf32>
    %c90 = arith.constant 90 : index
    %c0_96 = arith.constant 0 : index
    %157 = tpu.strided_load %arg11[%c90, %c0_96] {strides = array<i32: 2, 1>} : memref<288x16xf32, #tpu.memory_space<vmem>>, vector<8x16xf32>
    %c91 = arith.constant 91 : index
    %c0_97 = arith.constant 0 : index
    %158 = tpu.strided_load %arg11[%c91, %c0_97] {strides = array<i32: 2, 1>} : memref<288x16xf32, #tpu.memory_space<vmem>>, vector<8x16xf32>
    %159 = arith.maximumf %157, %158 : vector<8x16xf32>
    %160 = arith.maximumf %156, %159 : vector<8x16xf32>
    %c31 = arith.constant 31 : index
    %c0_98 = arith.constant 0 : index
    %161 = vector.load %arg12[%c31, %c0_98] : memref<102x16xf32, #tpu.memory_space<vmem>>, vector<8x16xf32>
    tpu.vector_store %arg12[%c31, %c0_98], %160 {strides = array<i32>} : memref<102x16xf32, #tpu.memory_space<vmem>>, vector<8x16xf32>,
    %c108 = arith.constant 108 : index
    %c0_99 = arith.constant 0 : index
    %162 = tpu.strided_load %arg11[%c108, %c0_99] {strides = array<i32: 2, 1>} : memref<288x16xf32, #tpu.memory_space<vmem>>, vector<8x16xf32>
    %c109 = arith.constant 109 : index
    %c0_100 = arith.constant 0 : index
    %163 = tpu.strided_load %arg11[%c109, %c0_100] {strides = array<i32: 2, 1>} : memref<288x16xf32, #tpu.memory_space<vmem>>, vector<8x16xf32>
    %164 = arith.maximumf %162, %163 : vector<8x16xf32>
    %c126 = arith.constant 126 : index
    %c0_101 = arith.constant 0 : index
    %165 = tpu.strided_load %arg11[%c126, %c0_101] {strides = array<i32: 2, 1>} : memref<288x16xf32, #tpu.memory_space<vmem>>, vector<8x16xf32>
    %c127 = arith.constant 127 : index
    %c0_102 = arith.constant 0 : index
    %166 = tpu.strided_load %arg11[%c127, %c0_102] {strides = array<i32: 2, 1>} : memref<288x16xf32, #tpu.memory_space<vmem>>, vector<8x16xf32>
    %167 = arith.maximumf %165, %166 : vector<8x16xf32>
    %168 = arith.maximumf %164, %167 : vector<8x16xf32>
    %c41 = arith.constant 41 : index
    %c0_103 = arith.constant 0 : index
    %169 = vector.load %arg12[%c41, %c0_103] : memref<102x16xf32, #tpu.memory_space<vmem>>, vector<8x16xf32>
    tpu.vector_store %arg12[%c41, %c0_103], %168 {strides = array<i32>} : memref<102x16xf32, #tpu.memory_space<vmem>>, vector<8x16xf32>,
    %c144 = arith.constant 144 : index
    %c0_104 = arith.constant 0 : index
    %170 = tpu.strided_load %arg11[%c144, %c0_104] {strides = array<i32: 2, 1>} : memref<288x16xf32, #tpu.memory_space<vmem>>, vector<8x16xf32>
    %c145 = arith.constant 145 : index
    %c0_105 = arith.constant 0 : index
    %171 = tpu.strided_load %arg11[%c145, %c0_105] {strides = array<i32: 2, 1>} : memref<288x16xf32, #tpu.memory_space<vmem>>, vector<8x16xf32>
    %172 = arith.maximumf %170, %171 : vector<8x16xf32>
    %c162_106 = arith.constant 162 : index
    %c0_107 = arith.constant 0 : index
    %173 = tpu.strided_load %arg11[%c162_106, %c0_107] {strides = array<i32: 2, 1>} : memref<288x16xf32, #tpu.memory_space<vmem>>, vector<8x16xf32>
    %c163 = arith.constant 163 : index
    %c0_108 = arith.constant 0 : index
    %174 = tpu.strided_load %arg11[%c163, %c0_108] {strides = array<i32: 2, 1>} : memref<288x16xf32, #tpu.memory_space<vmem>>, vector<8x16xf32>
    %175 = arith.maximumf %173, %174 : vector<8x16xf32>
    %176 = arith.maximumf %172, %175 : vector<8x16xf32>
    %c51 = arith.constant 51 : index
    %c0_109 = arith.constant 0 : index
    %177 = vector.load %arg12[%c51, %c0_109] : memref<102x16xf32, #tpu.memory_space<vmem>>, vector<8x16xf32>
    tpu.vector_store %arg12[%c51, %c0_109], %176 {strides = array<i32>} : memref<102x16xf32, #tpu.memory_space<vmem>>, vector<8x16xf32>,
    %c180_110 = arith.constant 180 : index
    %c0_111 = arith.constant 0 : index
    %178 = tpu.strided_load %arg11[%c180_110, %c0_111] {strides = array<i32: 2, 1>} : memref<288x16xf32, #tpu.memory_space<vmem>>, vector<8x16xf32>
    %c181 = arith.constant 181 : index
    %c0_112 = arith.constant 0 : index
    %179 = tpu.strided_load %arg11[%c181, %c0_112] {strides = array<i32: 2, 1>} : memref<288x16xf32, #tpu.memory_space<vmem>>, vector<8x16xf32>
    %180 = arith.maximumf %178, %179 : vector<8x16xf32>
    %c198_113 = arith.constant 198 : index
    %c0_114 = arith.constant 0 : index
    %181 = tpu.strided_load %arg11[%c198_113, %c0_114] {strides = array<i32: 2, 1>} : memref<288x16xf32, #tpu.memory_space<vmem>>, vector<8x16xf32>
    %c199 = arith.constant 199 : index
    %c0_115 = arith.constant 0 : index
    %182 = tpu.strided_load %arg11[%c199, %c0_115] {strides = array<i32: 2, 1>} : memref<288x16xf32, #tpu.memory_space<vmem>>, vector<8x16xf32>
    %183 = arith.maximumf %181, %182 : vector<8x16xf32>
    %184 = arith.maximumf %180, %183 : vector<8x16xf32>
    %c61 = arith.constant 61 : index
    %c0_116 = arith.constant 0 : index
    %185 = vector.load %arg12[%c61, %c0_116] : memref<102x16xf32, #tpu.memory_space<vmem>>, vector<8x16xf32>
    tpu.vector_store %arg12[%c61, %c0_116], %184 {strides = array<i32>} : memref<102x16xf32, #tpu.memory_space<vmem>>, vector<8x16xf32>,
    %c216 = arith.constant 216 : index
    %c0_117 = arith.constant 0 : index
    %186 = tpu.strided_load %arg11[%c216, %c0_117] {strides = array<i32: 2, 1>} : memref<288x16xf32, #tpu.memory_space<vmem>>, vector<8x16xf32>
    %c217 = arith.constant 217 : index
    %c0_118 = arith.constant 0 : index
    %187 = tpu.strided_load %arg11[%c217, %c0_118] {strides = array<i32: 2, 1>} : memref<288x16xf32, #tpu.memory_space<vmem>>, vector<8x16xf32>
    %188 = arith.maximumf %186, %187 : vector<8x16xf32>
    %c234 = arith.constant 234 : index
    %c0_119 = arith.constant 0 : index
    %189 = tpu.strided_load %arg11[%c234, %c0_119] {strides = array<i32: 2, 1>} : memref<288x16xf32, #tpu.memory_space<vmem>>, vector<8x16xf32>
    %c235 = arith.constant 235 : index
    %c0_120 = arith.constant 0 : index
    %190 = tpu.strided_load %arg11[%c235, %c0_120] {strides = array<i32: 2, 1>} : memref<288x16xf32, #tpu.memory_space<vmem>>, vector<8x16xf32>
    %191 = arith.maximumf %189, %190 : vector<8x16xf32>
    %192 = arith.maximumf %188, %191 : vector<8x16xf32>
    %c71 = arith.constant 71 : index
    %c0_121 = arith.constant 0 : index
    %193 = vector.load %arg12[%c71, %c0_121] : memref<102x16xf32, #tpu.memory_space<vmem>>, vector<8x16xf32>
    tpu.vector_store %arg12[%c71, %c0_121], %192 {strides = array<i32>} : memref<102x16xf32, #tpu.memory_space<vmem>>, vector<8x16xf32>,
    %c252 = arith.constant 252 : index
    %c0_122 = arith.constant 0 : index
    %194 = tpu.strided_load %arg11[%c252, %c0_122] {strides = array<i32: 2, 1>} : memref<288x16xf32, #tpu.memory_space<vmem>>, vector<8x16xf32>
    %c253 = arith.constant 253 : index
    %c0_123 = arith.constant 0 : index
    %195 = tpu.strided_load %arg11[%c253, %c0_123] {strides = array<i32: 2, 1>} : memref<288x16xf32, #tpu.memory_space<vmem>>, vector<8x16xf32>
    %196 = arith.maximumf %194, %195 : vector<8x16xf32>
    %c270 = arith.constant 270 : index
    %c0_124 = arith.constant 0 : index
    %197 = tpu.strided_load %arg11[%c270, %c0_124] {strides = array<i32: 2, 1>} : memref<288x16xf32, #tpu.memory_space<vmem>>, vector<8x16xf32>
    %c271 = arith.constant 271 : index
    %c0_125 = arith.constant 0 : index
    %198 = tpu.strided_load %arg11[%c271, %c0_125] {strides = array<i32: 2, 1>} : memref<288x16xf32, #tpu.memory_space<vmem>>, vector<8x16xf32>
    %199 = arith.maximumf %197, %198 : vector<8x16xf32>
    %200 = arith.maximumf %196, %199 : vector<8x16xf32>
    %c81 = arith.constant 81 : index
    %c0_126 = arith.constant 0 : index
    %201 = vector.load %arg12[%c81, %c0_126] : memref<102x16xf32, #tpu.memory_space<vmem>>, vector<8x16xf32>
    tpu.vector_store %arg12[%c81, %c0_126], %200 {strides = array<i32>} : memref<102x16xf32, #tpu.memory_space<vmem>>, vector<8x16xf32>,
    %c0_127 = arith.constant 0 : index
    %c0_128 = arith.constant 0 : index
    %202 = vector.load %arg12[%c0_127, %c0_128] : memref<102x16xf32, #tpu.memory_space<vmem>>, vector<102x16xf32>
    %203 = arith.truncf %202 : vector<102x16xf32> to vector<102x16xbf16>
    %c0_129 = arith.constant 0 : index
    %c0_130 = arith.constant 0 : index
    %204 = vector.load %arg4[%c0_129, %c0_130] : memref<16x36xbf16, #tpu.memory_space<vmem>>, vector<16x36xbf16>
    %cst_131 = arith.constant dense<0.000000e+00> : vector<102x36xf32>
    %205 = tpu.matmul %203, %204, %cst_131 {dimension_numbers = #tpu.dot_dimension_numbers<[1], [0], [0], [1], [0, 0, 1, 1], [], []>} : vector<102x16xbf16>, vector<16x36xbf16>, vector<102x36xf32> -> vector<102x36xf32>
    %c0_132 = arith.constant 0 : index
    %c0_133 = arith.constant 0 : index
    %206 = vector.load %arg13[%c0_132, %c0_133] : memref<102x36xf32, #tpu.memory_space<vmem>>, vector<102x36xf32>
    tpu.vector_store %arg13[%c0_132, %c0_133], %205 {strides = array<i32>} : memref<102x36xf32, #tpu.memory_space<vmem>>, vector<102x36xf32>,
    %c0_134 = arith.constant 0 : index
    %c0_135 = arith.constant 0 : index
    %207 = vector.load %arg13[%c0_134, %c0_135] : memref<102x36xf32, #tpu.memory_space<vmem>>, vector<80x4xf32>
    %c1_136 = arith.constant 1 : index
    %c4_137 = arith.constant 4 : index
    %208 = vector.load %arg13[%c1_136, %c4_137] : memref<102x36xf32, #tpu.memory_space<vmem>>, vector<80x4xf32>
    %209 = arith.addf %207, %208 : vector<80x4xf32>
    %c2_138 = arith.constant 2 : index
    %c8_139 = arith.constant 8 : index
    %210 = vector.load %arg13[%c2_138, %c8_139] : memref<102x36xf32, #tpu.memory_space<vmem>>, vector<80x4xf32>
    %211 = arith.addf %209, %210 : vector<80x4xf32>
    %c10 = arith.constant 10 : index
    %c12 = arith.constant 12 : index
    %212 = vector.load %arg13[%c10, %c12] : memref<102x36xf32, #tpu.memory_space<vmem>>, vector<80x4xf32>
    %213 = arith.addf %211, %212 : vector<80x4xf32>
    %c11_140 = arith.constant 11 : index
    %c16 = arith.constant 16 : index
    %214 = vector.load %arg13[%c11_140, %c16] : memref<102x36xf32, #tpu.memory_space<vmem>>, vector<80x4xf32>
    %215 = arith.addf %213, %214 : vector<80x4xf32>
    %c12_141 = arith.constant 12 : index
    %c20_142 = arith.constant 20 : index
    %216 = vector.load %arg13[%c12_141, %c20_142] : memref<102x36xf32, #tpu.memory_space<vmem>>, vector<80x4xf32>
    %217 = arith.addf %215, %216 : vector<80x4xf32>
    %c20_143 = arith.constant 20 : index
    %c24 = arith.constant 24 : index
    %218 = vector.load %arg13[%c20_143, %c24] : memref<102x36xf32, #tpu.memory_space<vmem>>, vector<80x4xf32>
    %219 = arith.addf %217, %218 : vector<80x4xf32>
    %c21_144 = arith.constant 21 : index
    %c28 = arith.constant 28 : index
    %220 = vector.load %arg13[%c21_144, %c28] : memref<102x36xf32, #tpu.memory_space<vmem>>, vector<80x4xf32>
    %221 = arith.addf %219, %220 : vector<80x4xf32>
    %c22 = arith.constant 22 : index
    %c32 = arith.constant 32 : index
    %222 = vector.load %arg13[%c22, %c32] : memref<102x36xf32, #tpu.memory_space<vmem>>, vector<80x4xf32>
    %223 = arith.addf %221, %222 : vector<80x4xf32>
    %c0_145 = arith.constant 0 : index
    %c0_146 = arith.constant 0 : index
    %224 = vector.load %arg5[%c0_145, %c0_146] : memref<1x4xf32, #tpu.memory_space<vmem>>, vector<1x4xf32>
    %225 = vector.broadcast %224 : vector<1x4xf32> to vector<80x4xf32>
    %226 = arith.addf %223, %225 : vector<80x4xf32>
    %cst_147 = arith.constant 0.000000e+00 : f32
    %227 = vector.broadcast %cst_147 : f32 to vector<80x4xf32>
    %228 = arith.maximumf %226, %227 : vector<80x4xf32>
    %c0_148 = arith.constant 0 : index
    %c0_149 = arith.constant 0 : index
    %229 = vector.load %arg14[%c0_148, %c0_149] : memref<80x4xf32, #tpu.memory_space<vmem>>, vector<80x4xf32>
    tpu.vector_store %arg14[%c0_148, %c0_149], %228 {strides = array<i32>} : memref<80x4xf32, #tpu.memory_space<vmem>>, vector<80x4xf32>,
    %c0_150 = arith.constant 0 : index
    %c0_151 = arith.constant 0 : index
    %230 = tpu.strided_load %arg14[%c0_150, %c0_151] {strides = array<i32: 2, 1>} : memref<80x4xf32, #tpu.memory_space<vmem>>, vector<4x4xf32>
    %c1_152 = arith.constant 1 : index
    %c0_153 = arith.constant 0 : index
    %231 = tpu.strided_load %arg14[%c1_152, %c0_153] {strides = array<i32: 2, 1>} : memref<80x4xf32, #tpu.memory_space<vmem>>, vector<4x4xf32>
    %232 = arith.maximumf %230, %231 : vector<4x4xf32>
    %c10_154 = arith.constant 10 : index
    %c0_155 = arith.constant 0 : index
    %233 = tpu.strided_load %arg14[%c10_154, %c0_155] {strides = array<i32: 2, 1>} : memref<80x4xf32, #tpu.memory_space<vmem>>, vector<4x4xf32>
    %c11_156 = arith.constant 11 : index
    %c0_157 = arith.constant 0 : index
    %234 = tpu.strided_load %arg14[%c11_156, %c0_157] {strides = array<i32: 2, 1>} : memref<80x4xf32, #tpu.memory_space<vmem>>, vector<4x4xf32>
    %235 = arith.maximumf %233, %234 : vector<4x4xf32>
    %236 = arith.maximumf %232, %235 : vector<4x4xf32>
    %c0_158 = arith.constant 0 : index
    %c0_159 = arith.constant 0 : index
    %237 = vector.load %arg15[%c0_158, %c0_159] : memref<16x4xf32, #tpu.memory_space<vmem>>, vector<4x4xf32>
    tpu.vector_store %arg15[%c0_158, %c0_159], %236 {strides = array<i32>} : memref<16x4xf32, #tpu.memory_space<vmem>>, vector<4x4xf32>,
    %c20_160 = arith.constant 20 : index
    %c0_161 = arith.constant 0 : index
    %238 = tpu.strided_load %arg14[%c20_160, %c0_161] {strides = array<i32: 2, 1>} : memref<80x4xf32, #tpu.memory_space<vmem>>, vector<4x4xf32>
    %c21_162 = arith.constant 21 : index
    %c0_163 = arith.constant 0 : index
    %239 = tpu.strided_load %arg14[%c21_162, %c0_163] {strides = array<i32: 2, 1>} : memref<80x4xf32, #tpu.memory_space<vmem>>, vector<4x4xf32>
    %240 = arith.maximumf %238, %239 : vector<4x4xf32>
    %c30 = arith.constant 30 : index
    %c0_164 = arith.constant 0 : index
    %241 = tpu.strided_load %arg14[%c30, %c0_164] {strides = array<i32: 2, 1>} : memref<80x4xf32, #tpu.memory_space<vmem>>, vector<4x4xf32>
    %c31_165 = arith.constant 31 : index
    %c0_166 = arith.constant 0 : index
    %242 = tpu.strided_load %arg14[%c31_165, %c0_166] {strides = array<i32: 2, 1>} : memref<80x4xf32, #tpu.memory_space<vmem>>, vector<4x4xf32>
    %243 = arith.maximumf %241, %242 : vector<4x4xf32>
    %244 = arith.maximumf %240, %243 : vector<4x4xf32>
    %c4_167 = arith.constant 4 : index
    %c0_168 = arith.constant 0 : index
    %245 = vector.load %arg15[%c4_167, %c0_168] : memref<16x4xf32, #tpu.memory_space<vmem>>, vector<4x4xf32>
    tpu.vector_store %arg15[%c4_167, %c0_168], %244 {strides = array<i32>} : memref<16x4xf32, #tpu.memory_space<vmem>>, vector<4x4xf32>,
    %c40 = arith.constant 40 : index
    %c0_169 = arith.constant 0 : index
    %246 = tpu.strided_load %arg14[%c40, %c0_169] {strides = array<i32: 2, 1>} : memref<80x4xf32, #tpu.memory_space<vmem>>, vector<4x4xf32>
    %c41_170 = arith.constant 41 : index
    %c0_171 = arith.constant 0 : index
    %247 = tpu.strided_load %arg14[%c41_170, %c0_171] {strides = array<i32: 2, 1>} : memref<80x4xf32, #tpu.memory_space<vmem>>, vector<4x4xf32>
    %248 = arith.maximumf %246, %247 : vector<4x4xf32>
    %c50 = arith.constant 50 : index
    %c0_172 = arith.constant 0 : index
    %249 = tpu.strided_load %arg14[%c50, %c0_172] {strides = array<i32: 2, 1>} : memref<80x4xf32, #tpu.memory_space<vmem>>, vector<4x4xf32>
    %c51_173 = arith.constant 51 : index
    %c0_174 = arith.constant 0 : index
    %250 = tpu.strided_load %arg14[%c51_173, %c0_174] {strides = array<i32: 2, 1>} : memref<80x4xf32, #tpu.memory_space<vmem>>, vector<4x4xf32>
    %251 = arith.maximumf %249, %250 : vector<4x4xf32>
    %252 = arith.maximumf %248, %251 : vector<4x4xf32>
    %c8_175 = arith.constant 8 : index
    %c0_176 = arith.constant 0 : index
    %253 = vector.load %arg15[%c8_175, %c0_176] : memref<16x4xf32, #tpu.memory_space<vmem>>, vector<4x4xf32>
    tpu.vector_store %arg15[%c8_175, %c0_176], %252 {strides = array<i32>} : memref<16x4xf32, #tpu.memory_space<vmem>>, vector<4x4xf32>,
    %c60 = arith.constant 60 : index
    %c0_177 = arith.constant 0 : index
    %254 = tpu.strided_load %arg14[%c60, %c0_177] {strides = array<i32: 2, 1>} : memref<80x4xf32, #tpu.memory_space<vmem>>, vector<4x4xf32>
    %c61_178 = arith.constant 61 : index
    %c0_179 = arith.constant 0 : index
    %255 = tpu.strided_load %arg14[%c61_178, %c0_179] {strides = array<i32: 2, 1>} : memref<80x4xf32, #tpu.memory_space<vmem>>, vector<4x4xf32>
    %256 = arith.maximumf %254, %255 : vector<4x4xf32>
    %c70 = arith.constant 70 : index
    %c0_180 = arith.constant 0 : index
    %257 = tpu.strided_load %arg14[%c70, %c0_180] {strides = array<i32: 2, 1>} : memref<80x4xf32, #tpu.memory_space<vmem>>, vector<4x4xf32>
    %c71_181 = arith.constant 71 : index
    %c0_182 = arith.constant 0 : index
    %258 = tpu.strided_load %arg14[%c71_181, %c0_182] {strides = array<i32: 2, 1>} : memref<80x4xf32, #tpu.memory_space<vmem>>, vector<4x4xf32>
    %259 = arith.maximumf %257, %258 : vector<4x4xf32>
    %260 = arith.maximumf %256, %259 : vector<4x4xf32>
    %c12_183 = arith.constant 12 : index
    %c0_184 = arith.constant 0 : index
    %261 = vector.load %arg15[%c12_183, %c0_184] : memref<16x4xf32, #tpu.memory_space<vmem>>, vector<4x4xf32>
    tpu.vector_store %arg15[%c12_183, %c0_184], %260 {strides = array<i32>} : memref<16x4xf32, #tpu.memory_space<vmem>>, vector<4x4xf32>,
    %c0_185 = arith.constant 0 : index
    %c0_186 = arith.constant 0 : index
    %262 = vector.load %arg15[%c0_185, %c0_186] : memref<16x4xf32, #tpu.memory_space<vmem>>, vector<16x4xf32>
    %263 = arith.truncf %262 : vector<16x4xf32> to vector<16x4xbf16>
    %c0_187 = arith.constant 0 : index
    %c0_188 = arith.constant 0 : index
    %264 = vector.load %arg6[%c0_187, %c0_188] : memref<4x64xbf16, #tpu.memory_space<vmem>>, vector<4x64xbf16>
    %cst_189 = arith.constant dense<0.000000e+00> : vector<16x64xf32>
    %265 = tpu.matmul %263, %264, %cst_189 {dimension_numbers = #tpu.dot_dimension_numbers<[1], [0], [0], [1], [0, 0, 1, 1], [], []>} : vector<16x4xbf16>, vector<4x64xbf16>, vector<16x64xf32> -> vector<16x64xf32>
    %c0_190 = arith.constant 0 : index
    %c0_191 = arith.constant 0 : index
    %266 = vector.load %arg7[%c0_190, %c0_191] : memref<1x64xf32, #tpu.memory_space<vmem>>, vector<1x64xf32>
    %267 = vector.broadcast %266 : vector<1x64xf32> to vector<16x64xf32>
    %268 = arith.addf %265, %267 : vector<16x64xf32>
    %cst_192 = arith.constant 0.000000e+00 : f32
    %269 = vector.broadcast %cst_192 : f32 to vector<16x64xf32>
    %270 = arith.maximumf %268, %269 : vector<16x64xf32>
    %271 = arith.truncf %270 : vector<16x64xf32> to vector<16x64xbf16>
    %c0_193 = arith.constant 0 : index
    %c0_194 = arith.constant 0 : index
    %272 = vector.load %arg8[%c0_193, %c0_194] : memref<64x16xbf16, #tpu.memory_space<vmem>>, vector<64x16xbf16>
    %cst_195 = arith.constant dense<0.000000e+00> : vector<16x16xf32>
    %273 = tpu.matmul %271, %272, %cst_195 {dimension_numbers = #tpu.dot_dimension_numbers<[1], [0], [0], [1], [0, 0, 1, 1], [], []>} : vector<16x64xbf16>, vector<64x16xbf16>, vector<16x16xf32> -> vector<16x16xf32>
    %c0_196 = arith.constant 0 : index
    %c0_197 = arith.constant 0 : index
    %274 = vector.load %arg9[%c0_196, %c0_197] : memref<1x1xf32, #tpu.memory_space<vmem>>, vector<1x1xf32>
    %275 = vector.broadcast %274 : vector<1x1xf32> to vector<16x16xf32>
    %276 = arith.addf %273, %275 : vector<16x16xf32>
    %277 = arith.negf %276 : vector<16x16xf32>
    %278 = math.exp %277 : vector<16x16xf32>
    %cst_198 = arith.constant 1.000000e+00 : f32
    %279 = vector.broadcast %cst_198 : f32 to vector<16x16xf32>
    %280 = arith.addf %279, %278 : vector<16x16xf32>
    %281 = arith.divf %279, %280 : vector<16x16xf32>
    %282 = vector.extract_strided_slice %281 {offsets = [0, 0], sizes = [1, 16], strides = [1, 1]} : vector<16x16xf32> to vector<1x16xf32>
    %283 = vector.extract_strided_slice %281 {offsets = [1, 0], sizes = [1, 16], strides = [1, 1]} : vector<16x16xf32> to vector<1x16xf32>
    %284 = vector.extract_strided_slice %281 {offsets = [2, 0], sizes = [1, 16], strides = [1, 1]} : vector<16x16xf32> to vector<1x16xf32>
    %285 = vector.extract_strided_slice %281 {offsets = [3, 0], sizes = [1, 16], strides = [1, 1]} : vector<16x16xf32> to vector<1x16xf32>
    %286 = vector.extract_strided_slice %281 {offsets = [4, 0], sizes = [1, 16], strides = [1, 1]} : vector<16x16xf32> to vector<1x16xf32>
    %287 = vector.extract_strided_slice %281 {offsets = [5, 0], sizes = [1, 16], strides = [1, 1]} : vector<16x16xf32> to vector<1x16xf32>
    %288 = vector.extract_strided_slice %281 {offsets = [6, 0], sizes = [1, 16], strides = [1, 1]} : vector<16x16xf32> to vector<1x16xf32>
    %289 = vector.extract_strided_slice %281 {offsets = [7, 0], sizes = [1, 16], strides = [1, 1]} : vector<16x16xf32> to vector<1x16xf32>
    %290 = vector.extract_strided_slice %281 {offsets = [8, 0], sizes = [1, 16], strides = [1, 1]} : vector<16x16xf32> to vector<1x16xf32>
    %291 = vector.extract_strided_slice %281 {offsets = [9, 0], sizes = [1, 16], strides = [1, 1]} : vector<16x16xf32> to vector<1x16xf32>
    %292 = vector.extract_strided_slice %281 {offsets = [10, 0], sizes = [1, 16], strides = [1, 1]} : vector<16x16xf32> to vector<1x16xf32>
    %293 = vector.extract_strided_slice %281 {offsets = [11, 0], sizes = [1, 16], strides = [1, 1]} : vector<16x16xf32> to vector<1x16xf32>
    %294 = vector.extract_strided_slice %281 {offsets = [12, 0], sizes = [1, 16], strides = [1, 1]} : vector<16x16xf32> to vector<1x16xf32>
    %295 = vector.extract_strided_slice %281 {offsets = [13, 0], sizes = [1, 16], strides = [1, 1]} : vector<16x16xf32> to vector<1x16xf32>
    %296 = vector.extract_strided_slice %281 {offsets = [14, 0], sizes = [1, 16], strides = [1, 1]} : vector<16x16xf32> to vector<1x16xf32>
    %297 = vector.extract_strided_slice %281 {offsets = [15, 0], sizes = [1, 16], strides = [1, 1]} : vector<16x16xf32> to vector<1x16xf32>
    %298 = tpu.concatenate %282, %283, %284, %285, %286, %287, %288, %289, %290, %291, %292, %293, %294, %295, %296, %297 in 1 : vector<1x16xf32>, vector<1x16xf32>, vector<1x16xf32>, vector<1x16xf32>, vector<1x16xf32>, vector<1x16xf32>, vector<1x16xf32>, vector<1x16xf32>, vector<1x16xf32>, vector<1x16xf32>, vector<1x16xf32>, vector<1x16xf32>, vector<1x16xf32>, vector<1x16xf32>, vector<1x16xf32>, vector<1x16xf32> -> vector<1x256xf32>
    %c0_199 = arith.constant 0 : index
    %c0_200 = arith.constant 0 : index
    %c0_201 = arith.constant 0 : index
    %299 = vector.load %arg10[%c0_199, %c0_200, %c0_201] : memref<1x1x256xf32, #tpu.memory_space<vmem>>, vector<1x1x256xf32>
    %300 = vector.shape_cast %299 : vector<1x1x256xf32> to vector<1x256xf32>
    %301 = vector.shape_cast %298 : vector<1x256xf32> to vector<1x1x256xf32>
    tpu.vector_store %arg10[%c0_199, %c0_200, %c0_201], %301 {strides = array<i32>} : memref<1x1x256xf32, #tpu.memory_space<vmem>>, vector<1x1x256xf32>,
    return
  }
  func.func @transform_0(%arg0: i32) -> (i32, i32, i32) {
    %c0_i32 = arith.constant 0 : i32
    %c0_i32_0 = arith.constant 0 : i32
    %c0_i32_1 = arith.constant 0 : i32
    return %arg0, %c0_i32, %c0_i32_0 : i32, i32, i32
  }
  func.func @transform_1(%arg0: i32) -> (i32, i32) {
    %c0_i32 = arith.constant 0 : i32
    %c0_i32_0 = arith.constant 0 : i32
    %c0_i32_1 = arith.constant 0 : i32
    return %c0_i32, %c0_i32_0 : i32, i32
  }
  func.func @transform_2(%arg0: i32) -> (i32, i32) {
    %c0_i32 = arith.constant 0 : i32
    %c0_i32_0 = arith.constant 0 : i32
    %c0_i32_1 = arith.constant 0 : i32
    return %c0_i32, %c0_i32_0 : i32, i32
  }
  func.func @transform_3(%arg0: i32) -> (i32, i32) {
    %c0_i32 = arith.constant 0 : i32
    %c0_i32_0 = arith.constant 0 : i32
    %c0_i32_1 = arith.constant 0 : i32
    return %c0_i32, %c0_i32_0 : i32, i32
  }
  func.func @transform_4(%arg0: i32) -> (i32, i32) {
    %c0_i32 = arith.constant 0 : i32
    %c0_i32_0 = arith.constant 0 : i32
    %c0_i32_1 = arith.constant 0 : i32
    return %c0_i32, %c0_i32_0 : i32, i32
  }
  func.func @transform_5(%arg0: i32) -> (i32, i32) {
    %c0_i32 = arith.constant 0 : i32
    %c0_i32_0 = arith.constant 0 : i32
    %c0_i32_1 = arith.constant 0 : i32
    return %c0_i32, %c0_i32_0 : i32, i32
  }
  func.func @transform_6(%arg0: i32) -> (i32, i32) {
    %c0_i32 = arith.constant 0 : i32
    %c0_i32_0 = arith.constant 0 : i32
    %c0_i32_1 = arith.constant 0 : i32
    return %c0_i32, %c0_i32_0 : i32, i32
  }
  func.func @transform_7(%arg0: i32) -> (i32, i32) {
    %c0_i32 = arith.constant 0 : i32
    %c0_i32_0 = arith.constant 0 : i32
    %c0_i32_1 = arith.constant 0 : i32
    return %c0_i32, %c0_i32_0 : i32, i32
  }
  func.func @transform_8(%arg0: i32) -> (i32, i32) {
    %c0_i32 = arith.constant 0 : i32
    %c0_i32_0 = arith.constant 0 : i32
    %c0_i32_1 = arith.constant 0 : i32
    return %c0_i32, %c0_i32_0 : i32, i32
  }
  func.func @transform_9(%arg0: i32) -> (i32, i32, i32) {
    %c0_i32 = arith.constant 0 : i32
    %c0_i32_0 = arith.constant 0 : i32
    %c0_i32_1 = arith.constant 0 : i32
    return %arg0, %c0_i32, %c0_i32_0 : i32, i32, i32
  }
}

</mosaic_0001>

<bundles_post_ra>
// kernel: tile.9
= control target key start
LH: loop header
LB: loop body
LE: loop exit
PB: predicated region body
PF: predicated region fallthrough
CT: control target
= control target key end

     0   :  { %vm8_vm0 = vcmask 130048   ;;  %s40_s8 = smov 16   ;;  %s41_s9 = smov 32   ;;  %vm14_vm1 = vcmask 523648   ;;  %vm20_vm2 = vcmask 392448   ;;  %vm26_vm3 = vcmask 261248   ;;  %s58_s0 = inlined_call_operand.vmem [shape: f32[4,16], index: 0, kind: input, shape index: {}]   ;;  %s59_s1 = inlined_call_operand.vmem [shape: f32[1,64], index: 1, kind: output, shape index: {}]  }
   0x1   :  { %v5_v0 = vld [vmem:[%s58_s0] sm:$0xf]  ;;  %s39_s0 = smov 48  }
   0x2   :  { %6 = vst [vmem:[#allocation1] sm:$0xf] %v5_v0 }
   0x9   :  { %v11_v1 = vld [vmem:[#allocation1 + $0x3] sm:$0x1]   ;;  %v23_v2 = vld [vmem:[#allocation1 + $0x1] sm:$0x1]   ;;  %v7_v3 = vld [vmem:[#allocation1] sm:$0x1]  }
   0xa   :  { %12 = vrot.lane.b32.xlu0 %v11_v1, %s39_s0  ;;  %24 = vrot.lane.b32.xlu1 %v23_v2, %s40_s8  ;;  %v17_v4 = vld [vmem:[#allocation1 + $0x2] sm:$0x1]   ;;  %9 = vst.msk [vmem:[#allocation0] sm:$0x1] %vm8_vm0, %v7_v3  }
   0xe   :  { %18 = vrot.lane.b32.xlu0 %v17_v4, %s41_s9 }
  0x7c   :  { %v13_v5 = vpop.permute.xlu0 %12   ;;  %v25_v6 = vpop.permute.xlu1 %24  }
  0x7d   :  { %15 = vst.msk [vmem:[#allocation0] sm:$0x1] %vm14_vm1, %v13_v5  }
  0x80   :  { %v19_v7 = vpop.permute.xlu0 %18  }
  0x81   :  { %21 = vst.msk [vmem:[#allocation0] sm:$0x1] %vm20_vm2, %v19_v7  }
  0x82   :  { %27 = vst.msk [vmem:[#allocation0] sm:$0x1] %vm26_vm3, %v25_v6  }
  0x89   :  { %v32_v8 = vld [vmem:[#allocation0] sm:$0x1] }
  0x8a   :  { %35 = vst [vmem:[%s59_s1] sm:$0x1] %v32_v8 }

// kernel: tile.8
= control target key start
LH: loop header
LB: loop body
LE: loop exit
PB: predicated region body
PF: predicated region fallthrough
CT: control target
= control target key end

     0   :  { %2 = vsyncpa [#allocation1], 0  ;;  %s42_s6 = smov [#allocation0]   ;;  %s59_s0 = inlined_call_operand.hbm [shape: f32[16], index: 0, kind: input, shape index: {}]   ;;  %s60_s1 = inlined_call_operand.vmem [shape: f32[4,16], index: 1, kind: output, shape index: {}]  }
   0x1   :  { %s9_s7 = sshll.u32 %s42_s6, 4  ;;  %s10_s7 = int_to_ptr.vmem [resolvable:$true] %s9_s7 }
   0x2   :  { %s28_s8 = scalar_lea.vmem %s10_s7, 16  ;;  %s32_s9 = scalar_lea.vmem %s10_s7, 32 }
   0x3   :  { %p29_p0 = scmp.ne.s32.totalorder %s10_s7, %s28_s8  ;;  %p33_p1 = scmp.lt.s32.totalorder %s10_s7, %s10_s7 }
   0x4   :  { %p34_p2 = scmp.lt.s32.totalorder %s32_s9, %s28_s8 }
   0x6   :  { %p35_p3 = por %p34_p2, %p33_p1 }
   0x8   :  { %p36_p4 = pnand %p35_p3, %p29_p0 }
   0xa   :  { %39 = shalt.err (!%p36_p4)
}
   0xb   :  { %12 = dma.hbm_to_vmem [thread:$0]  %s59_s0, 16, %s10_s7, [#allocation1]  }
   0xc   :  { %40 = dma.done.wait [#allocation1], 16  }
   0xd   :  { %41 = vsyncadd [#allocation1], 4294967280  ;;  %v16_v0 = vld [vmem:[#allocation0] ss:$0 sm:$0xff] }
   0xe   :  { %17 = vst [vmem:[%s60_s1] sm:$0xf] %v16_v0 }
   0xf   :  { %18 = vsyncpa [#allocation1], 1 }

// kernel: _model_forward.1
= control target key start
LH: loop header
LB: loop body
LE: loop exit
PB: predicated region body
PF: predicated region fallthrough
CT: control target
= control target key end

     0   :  { %s4454_s11 = smov 0   ;;  %s6383_s0 = inlined_call_operand.vmem [shape: f32[2,326,1], index: 0, kind: input, shape index: {}]   ;;  %s6384_s1 = inlined_call_operand.vmem [shape: f32[9,16], index: 1, kind: input, shape index: {}]   ;;  %s6385_s2 = inlined_call_operand.vmem [shape: f32[1,16], index: 2, kind: input, shape index: {}]   ;;  %s6386_s3 = inlined_call_operand.vmem [shape: bf16[16,36], index: 3, kind: input, shape index: {}]   ;;  %s6387_s4 = inlined_call_operand.vmem [shape: f32[1,4], index: 4, kind: input, shape index: {}]   ;;  %s6388_s5 = inlined_call_operand.vmem [shape: bf16[4,64], index: 5, kind: input, shape index: {}]   ;;  %s6389_s6 = inlined_call_operand.vmem [shape: f32[1,64], index: 6, kind: input, shape index: {}]   ;;  %s6390_s7 = inlined_call_operand.vmem [shape: bf16[64,16], index: 7, kind: input, shape index: {}]   ;;  %s6391_s8 = inlined_call_operand.<no memory space> [shape: f32[1,1], index: 8, kind: input, shape index: {}]   ;;  %s6392_s9 = inlined_call_operand.vmem [shape: f32[2,1,256], index: 9, kind: output, shape index: {}]  }
   0x1   :  { %v14_v0 = vstv %s6391_s8 }
   0x2   :  { %15 = vst [vmem:[#allocation7] sm:$0x1] %v14_v0 }
   0x3 LB: > { %s4218_s12 = sadd.s32 4294967295, %s4382_s11   ;;  %p4222_p0 = scmp.ge.s32.totalorder %s4382_s11, 1  ;;  %s4382_s11 = sphi %s4454_s11, %s21_s11  }
   0x4   : > { %p289_p1 = scmp.lt.s32.totalorder %s4382_s11, 3 }
   0x6   : > { %p290_p2 = pnand %p4222_p0, %p289_p1 }
   0x8   : > { %293 = sbr.rel (%p290_p2) target bundleno = 1887 (0x75f), region = 56 }
   0xd   : > { %p324_p3 = scmp.lt.s32.totalorder %s4218_s12, 1  ;;  %v4384_v1 = vmov 0   ;;  %vm334_vm0 = vcmask 130048   ;;  %vm4386_vm1 = vmmov 0   ;;  %vm3349_vm2 = vcmask 293888   ;;  %s4388_s27 = smov 120  }
   0xe   : > { %4358 = vset.pattern.permute.xlu1 %v4384_v1  ;;  %4357 = vset.pattern.permute.xlu0 %v4384_v1  ;;  %vm347_vm3 = vcmask 128000   ;;  %vm3362_vm4 = vcmask 291840   ;;  %s4389_s28 = smov 116   ;;  %s4390_s29 = smov 112   ;;  %vm3918_vm5 = vcmask 1041408   ;;  %vm3845_vm6 = vcmask 31744  }
   0xf   : > { %s6623_s12 = smov (!%p324_p3, %s4218_s12), 1  ;;  %s4391_s30 = smov 108   ;;  %vm3866_vm7 = vcmask 27648   ;;  %vm4008_vm8 = vcmask 523264   ;;  %vm4124_vm9 = vcmask 261120   ;;  %vm4126_vm10 = vcmask 392192  }
  0x10   : > { %s4331_s8 = smul.u32 328, %s6623_s12  ;;  %s4392_s10 = smov 104   ;;  %vm4129_vm11 = vcmask 654336   ;;  %vm4131_vm12 = vcmask 785408   ;;  %vm4133_vm13 = vcmask 916480  }
  0x11   : > { %s4394_s13 = smov 96   ;;  %s4399_s14 = smov 80  }
  0x12   : > { %s4468_s15 = scalar_lea.vmem %s6383_s0, %s4331_s8  ;;  %s4387_s8 = smov 124  }
  0x13   : > { %v351_v2 = vld [vmem:[%s4468_s15 + $0x10] sm:$0xff]  ;;  %v349_v3 = vld [vmem:[%s4468_s15] sm:$0xff]  ;;  %v352_v4 = vld [vmem:[%s4468_s15 + $0x18] sm:$0xff] }
  0x14   : > { %382 = vperm.xlu1 %4358, %v351_v2   ;;  %372 = vperm.xlu0 %4357, %v349_v3   ;;  %v350_v5 = vld [vmem:[%s4468_s15 + $0x8] sm:$0xff]  ;;  %v353_v7 = vld [vmem:[%s4468_s15 + $0x20] sm:$0xff]  ;;  %v356_v8 = vld [vmem:[%s4468_s15 + $0x38] sm:$0xff] }
  0x15   : > { %v354_v6 = vld [vmem:[%s4468_s15 + $0x28] sm:$0xff]  ;;  %v355_v9 = vld [vmem:[%s4468_s15 + $0x30] sm:$0xff]  ;;  %v357_v11 = vld [vmem:[%s4468_s15 + $0x40] sm:$0xff] }
  0x16   : > { %v358_v10 = vld [vmem:[%s4468_s15 + $0x48] sm:$0xff]  ;;  %v360_v12 = vld [vmem:[%s4468_s15 + $0x58] sm:$0xff]  ;;  %v359_v13 = vld [vmem:[%s4468_s15 + $0x50] sm:$0xff] }
  0x17   : > { %v362_v14 = vld [vmem:[%s4468_s15 + $0x68] sm:$0xff]  ;;  %v361_v15 = vld [vmem:[%s4468_s15 + $0x60] sm:$0xff]  ;;  %v364_v16 = vld [vmem:[%s4468_s15 + $0x78] sm:$0xff] }
  0x18   : > { %387 = vperm.xlu1 %4358, %v352_v4   ;;  %377 = vperm.xlu0 %4357, %v350_v5   ;;  %v363_v17 = vld [vmem:[%s4468_s15 + $0x70] sm:$0xff]  ;;  %v366_v18 = vld [vmem:[%s4468_s15 + $0x88] sm:$0xff]  ;;  %v365_v19 = vld [vmem:[%s4468_s15 + $0x80] sm:$0xff] }
  0x19   : > { %v368_v20 = vld [vmem:[%s4468_s15 + $0x98] sm:$0xff]  ;;  %v367_v21 = vld [vmem:[%s4468_s15 + $0x90] sm:$0xff]  ;;  %v494_v23 = vld [vmem:[%s4468_s15 + $0x1] sm:$0xff] }
  0x1a   : > { %v495_v22 = vld [vmem:[%s4468_s15 + $0x9] sm:$0xff]  ;;  %v497_v24 = vld [vmem:[%s4468_s15 + $0x19] sm:$0xff]  ;;  %v496_v25 = vld [vmem:[%s4468_s15 + $0x11] sm:$0xff] }
  0x1b   : > { %v499_v26 = vld [vmem:[%s4468_s15 + $0x29] sm:$0xff]  ;;  %v498_v27 = vld [vmem:[%s4468_s15 + $0x21] sm:$0xff]  ;;  %v501_v28 = vld [vmem:[%s4468_s15 + $0x39] sm:$0xff] }
  0x1c   : > { %397 = vperm.xlu1 %4358, %v354_v6   ;;  %392 = vperm.xlu0 %4357, %v353_v7   ;;  %v500_v29 = vld [vmem:[%s4468_s15 + $0x31] sm:$0xff]  ;;  %v503_v30 = vld [vmem:[%s4468_s15 + $0x49] sm:$0xff]  ;;  %v502_v31 = vld [vmem:[%s4468_s15 + $0x41] sm:$0xff] }
  0x1d   : > { %v505_v32 = vld [vmem:[%s4468_s15 + $0x59] sm:$0xff]  ;;  %v504_v33 = vld [vmem:[%s4468_s15 + $0x51] sm:$0xff]  ;;  %v507_v34 = vld [vmem:[%s4468_s15 + $0x69] sm:$0xff] }
  0x1e   : > { %v506_v35 = vld [vmem:[%s4468_s15 + $0x61] sm:$0xff]  ;;  %v509_v36 = vld [vmem:[%s4468_s15 + $0x79] sm:$0xff]  ;;  %v508_v37 = vld [vmem:[%s4468_s15 + $0x71] sm:$0xff] }
  0x1f   : > { %v511_v38 = vld [vmem:[%s4468_s15 + $0x89] sm:$0xff]  ;;  %v510_v39 = vld [vmem:[%s4468_s15 + $0x81] sm:$0xff]  ;;  %v513_v40 = vld [vmem:[%s4468_s15 + $0x99] sm:$0xff] }
  0x20   : > { %407 = vperm.xlu1 %4358, %v356_v8   ;;  %402 = vperm.xlu0 %4357, %v355_v9   ;;  %v512_v41 = vld [vmem:[%s4468_s15 + $0x91] sm:$0xff]  ;;  %v659_v43 = vld [vmem:[%s4468_s15 + $0x2] sm:$0xff]  ;;  %v662_v44 = vld [vmem:[%s4468_s15 + $0x1a] sm:$0xff] }
  0x21   : > { %v660_v42 = vld [vmem:[%s4468_s15 + $0xa] sm:$0xff]  ;;  %v661_v45 = vld [vmem:[%s4468_s15 + $0x12] sm:$0xff]  ;;  %v663_v47 = vld [vmem:[%s4468_s15 + $0x22] sm:$0xff] }
  0x22   : > { %v664_v46 = vld [vmem:[%s4468_s15 + $0x2a] sm:$0xff]  ;;  %v666_v48 = vld [vmem:[%s4468_s15 + $0x3a] sm:$0xff]  ;;  %v665_v49 = vld [vmem:[%s4468_s15 + $0x32] sm:$0xff] }
  0x23   : > { %v668_v50 = vld [vmem:[%s4468_s15 + $0x4a] sm:$0xff]  ;;  %v667_v51 = vld [vmem:[%s4468_s15 + $0x42] sm:$0xff]  ;;  %v670_v52 = vld [vmem:[%s4468_s15 + $0x5a] sm:$0xff] }
  0x24   : > { %417 = vperm.xlu1 %4358, %v358_v10   ;;  %412 = vperm.xlu0 %4357, %v357_v11   ;;  %v669_v53 = vld [vmem:[%s4468_s15 + $0x52] sm:$0xff]  ;;  %v672_v54 = vld [vmem:[%s4468_s15 + $0x6a] sm:$0xff]  ;;  %v671_v55 = vld [vmem:[%s4468_s15 + $0x62] sm:$0xff] }
  0x25   : > { %v674_v56 = vld [vmem:[%s4468_s15 + $0x7a] sm:$0xff]  ;;  %v673_v57 = vld [vmem:[%s4468_s15 + $0x72] sm:$0xff]  ;;  %v676_v58 = vld [vmem:[%s4468_s15 + $0x8a] sm:$0xff] }
  0x26   : > { %v675_v59 = vld [vmem:[%s4468_s15 + $0x82] sm:$0xff]  ;;  %v678_v60 = vld [vmem:[%s4468_s15 + $0x9a] sm:$0xff]  ;;  %v677_v61 = vld [vmem:[%s4468_s15 + $0x92] sm:$0xff] }
  0x28   : > { %427 = vperm.xlu1 %4358, %v360_v12   ;;  %422 = vperm.xlu0 %4357, %v359_v13  }
  0x2c   : > { %437 = vperm.xlu1 %4358, %v362_v14   ;;  %432 = vperm.xlu0 %4357, %v361_v15   ;;  %v843_v14 = vld [vmem:[%s4468_s15 + $0xaa] sm:$0xff]  ;;  %v842_v15 = vld [vmem:[%s4468_s15 + $0xa2] sm:$0xff] }
  0x30   : > { %447 = vperm.xlu1 %4358, %v364_v16   ;;  %442 = vperm.xlu0 %4357, %v363_v17  }
  0x34   : > { %457 = vperm.xlu1 %4358, %v366_v18   ;;  %452 = vperm.xlu0 %4357, %v365_v19   ;;  %v990_v18 = vld [vmem:[%s4468_s15 + $0x1b] sm:$0xff]  ;;  %v989_v19 = vld [vmem:[%s4468_s15 + $0x13] sm:$0xff] }
  0x38   : > { %467 = vperm.xlu1 %4358, %v368_v20   ;;  %462 = vperm.xlu0 %4357, %v367_v21  }
  0x3c   : > { %522 = vperm.xlu1 %4358, %v495_v22   ;;  %517 = vperm.xlu0 %4357, %v494_v23   ;;  %v992_v22 = vld [vmem:[%s4468_s15 + $0x2b] sm:$0xff]  ;;  %v991_v23 = vld [vmem:[%s4468_s15 + $0x23] sm:$0xff] }
  0x40   : > { %532 = vperm.xlu1 %4358, %v497_v24   ;;  %527 = vperm.xlu0 %4357, %v496_v25  }
  0x44   : > { %542 = vperm.xlu1 %4358, %v499_v26   ;;  %537 = vperm.xlu0 %4357, %v498_v27   ;;  %v994_v26 = vld [vmem:[%s4468_s15 + $0x3b] sm:$0xff]  ;;  %v993_v27 = vld [vmem:[%s4468_s15 + $0x33] sm:$0xff] }
  0x48   : > { %552 = vperm.xlu1 %4358, %v501_v28   ;;  %547 = vperm.xlu0 %4357, %v500_v29  }
  0x4c   : > { %562 = vperm.xlu1 %4358, %v503_v30   ;;  %557 = vperm.xlu0 %4357, %v502_v31   ;;  %v996_v30 = vld [vmem:[%s4468_s15 + $0x4b] sm:$0xff]  ;;  %v995_v31 = vld [vmem:[%s4468_s15 + $0x43] sm:$0xff] }
  0x50   : > { %572 = vperm.xlu1 %4358, %v505_v32   ;;  %567 = vperm.xlu0 %4357, %v504_v33  }
  0x54   : > { %582 = vperm.xlu1 %4358, %v507_v34   ;;  %577 = vperm.xlu0 %4357, %v506_v35   ;;  %v998_v34 = vld [vmem:[%s4468_s15 + $0x5b] sm:$0xff]  ;;  %v997_v35 = vld [vmem:[%s4468_s15 + $0x53] sm:$0xff] }
  0x58   : > { %592 = vperm.xlu1 %4358, %v509_v36   ;;  %587 = vperm.xlu0 %4357, %v508_v37  }
  0x5c   : > { %602 = vperm.xlu1 %4358, %v511_v38   ;;  %597 = vperm.xlu0 %4357, %v510_v39   ;;  %v1000_v38 = vld [vmem:[%s4468_s15 + $0x6b] sm:$0xff]  ;;  %v999_v39 = vld [vmem:[%s4468_s15 + $0x63] sm:$0xff] }
  0x60   : > { %612 = vperm.xlu1 %4358, %v513_v40   ;;  %607 = vperm.xlu0 %4357, %v512_v41  }
  0x64   : > { %687 = vperm.xlu1 %4358, %v660_v42   ;;  %682 = vperm.xlu0 %4357, %v659_v43   ;;  %v1002_v42 = vld [vmem:[%s4468_s15 + $0x7b] sm:$0xff]  ;;  %v1001_v43 = vld [vmem:[%s4468_s15 + $0x73] sm:$0xff] }
  0x68   : > { %697 = vperm.xlu1 %4358, %v662_v44   ;;  %692 = vperm.xlu0 %4357, %v661_v45  }
  0x6c   : > { %707 = vperm.xlu1 %4358, %v664_v46   ;;  %702 = vperm.xlu0 %4357, %v663_v47  }
  0x70   : > { %717 = vperm.xlu1 %4358, %v666_v48   ;;  %712 = vperm.xlu0 %4357, %v665_v49  }
  0x74   : > { %727 = vperm.xlu1 %4358, %v668_v50   ;;  %722 = vperm.xlu0 %4357, %v667_v51  }
  0x78   : > { %737 = vperm.xlu1 %4358, %v670_v52   ;;  %732 = vperm.xlu0 %4357, %v669_v53  }
  0x7c   : > { %747 = vperm.xlu1 %4358, %v672_v54   ;;  %742 = vperm.xlu0 %4357, %v671_v55  }
  0x80   : > { %757 = vperm.xlu1 %4358, %v674_v56   ;;  %752 = vperm.xlu0 %4357, %v673_v57  }
  0x84   : > { %767 = vperm.xlu1 %4358, %v676_v58   ;;  %762 = vperm.xlu0 %4357, %v675_v59  }
  0x88   : > { %777 = vperm.xlu1 %4358, %v678_v60   ;;  %772 = vperm.xlu0 %4357, %v677_v61  }
  0x8c   : > { %852 = vperm.xlu1 %4358, %v662_v44   ;;  %847 = vperm.xlu0 %4357, %v661_v45  }
  0x8f   : > { %v4530_v62 = vpop.permute.xlu1 %382  ;;  %v4532_v63 = vpop.permute.xlu0 %372 }
  0x90   : > { %862 = vperm.xlu1 %4358, %v664_v46   ;;  %857 = vperm.xlu0 %4357, %v663_v47   ;;  %v1004_v46 = vld [vmem:[%s4468_s15 + $0x8b] sm:$0xff]  ;;  %v1003_v47 = vld [vmem:[%s4468_s15 + $0x83] sm:$0xff] }
  0x93   : > { %v4534_v0 = vpop.permute.xlu1 %387  ;;  %v4536_v1 = vpop.permute.xlu0 %377 }
  0x94   : > { %872 = vperm.xlu1 %4358, %v666_v48   ;;  %867 = vperm.xlu0 %4357, %v665_v49  }
  0x97   : > { %v4538_v2 = vpop.permute.xlu1 %397  ;;  %v4540_v3 = vpop.permute.xlu0 %392 }
  0x98   : > { %882 = vperm.xlu1 %4358, %v668_v50   ;;  %877 = vperm.xlu0 %4357, %v667_v51   ;;  %v1006_v50 = vld [vmem:[%s4468_s15 + $0x9b] sm:$0xff]  ;;  %v1005_v51 = vld [vmem:[%s4468_s15 + $0x93] sm:$0xff] }
  0x9b   : > { %v4542_v4 = vpop.permute.xlu1 %407  ;;  %v4544_v5 = vpop.permute.xlu0 %402 }
  0x9c   : > { %892 = vperm.xlu1 %4358, %v670_v52   ;;  %887 = vperm.xlu0 %4357, %v669_v53   ;;  %v4619_v52 = vld [vmem:[%s6384_s1] ss:$0 sm:$0xff] }
  0x9f   : > { %v4546_v6 = vpop.permute.xlu1 %417  ;;  %v4548_v7 = vpop.permute.xlu0 %412 }
  0xa0   : > { %902 = vperm.xlu1 %4358, %v672_v54   ;;  %897 = vperm.xlu0 %4357, %v671_v55   ;;  %v4625_v54 = vld [vmem:[%s6384_s1 + $0x1] ss:$0 sm:$0xff] }
  0xa3   : > { %v4550_v8 = vpop.permute.xlu1 %427  ;;  %v4552_v9 = vpop.permute.xlu0 %422 }
  0xa4   : > { %912 = vperm.xlu1 %4358, %v674_v56   ;;  %907 = vperm.xlu0 %4357, %v673_v57  }
  0xa7   : > { %v4554_v10 = vpop.permute.xlu1 %437  ;;  %v4556_v11 = vpop.permute.xlu0 %432 }
  0xa8   : > { %922 = vperm.xlu1 %4358, %v676_v58   ;;  %917 = vperm.xlu0 %4357, %v675_v59  }
  0xab   : > { %v448_v12 = vpop.permute.xlu1 %447  ;;  %v4558_v13 = vpop.permute.xlu0 %442 }
  0xac   : > { %932 = vperm.xlu1 %4358, %v678_v60   ;;  %927 = vperm.xlu0 %4357, %v677_v61   ;;  %v489_v53 = vmul.f32 %v4619_v52, %v448_v12  ;;  %v488_v57 = vmul.f32 %v4619_v52, %v4558_v13  ;;  %v1008_v60 = vld [vmem:[%s4468_s15 + $0xab] sm:$0xff]  ;;  %v1007_v61 = vld [vmem:[%s4468_s15 + $0xa3] sm:$0xff] }
  0xaf   : > { %v4562_v16 = vpop.permute.xlu1 %457  ;;  %v4564_v17 = vpop.permute.xlu0 %452 }
  0xb0   : > { %942 = vperm.xlu1 %4358, %v843_v14   ;;  %937 = vperm.xlu0 %4357, %v842_v15   ;;  %v491_v15 = vmul.f32 %v4619_v52, %v4562_v16  ;;  %v490_v13 = vmul.f32 %v4619_v52, %v4564_v17 }
  0xb3   : > { %v4568_v20 = vpop.permute.xlu1 %467  ;;  %v4570_v21 = vpop.permute.xlu0 %462 }
  0xb4   : > { %1017 = vperm.xlu1 %4358, %v990_v18   ;;  %1012 = vperm.xlu0 %4357, %v989_v19   ;;  %v493_v16 = vmul.f32 %v4619_v52, %v4568_v20 }
  0xb7   : > { %v4574_v24 = vpop.permute.xlu1 %522  ;;  %v4576_v25 = vpop.permute.xlu0 %517 }
  0xb8   : > { %1027 = vperm.xlu1 %4358, %v992_v22   ;;  %1022 = vperm.xlu0 %4357, %v991_v23  }
  0xbb   : > { %v4580_v28 = vpop.permute.xlu1 %532  ;;  %v4582_v29 = vpop.permute.xlu0 %527 }
  0xbc   : > { %1037 = vperm.xlu1 %4358, %v994_v26   ;;  %1032 = vperm.xlu0 %4357, %v993_v27   ;;  %v1155_v26 = vld [vmem:[%s4468_s15 + $0x1c] sm:$0xff]  ;;  %v1154_v27 = vld [vmem:[%s4468_s15 + $0x14] sm:$0xff] }
  0xbf   : > { %v4586_v32 = vpop.permute.xlu1 %542  ;;  %v4588_v33 = vpop.permute.xlu0 %537 }
  0xc0   : > { %1047 = vperm.xlu1 %4358, %v996_v30   ;;  %1042 = vperm.xlu0 %4357, %v995_v31  }
  0xc3   : > { %v4592_v36 = vpop.permute.xlu1 %552  ;;  %v4594_v37 = vpop.permute.xlu0 %547 }
  0xc4   : > { %1057 = vperm.xlu1 %4358, %v998_v34   ;;  %1052 = vperm.xlu0 %4357, %v997_v35   ;;  %v492_v35 = vmul.f32 %v4619_v52, %v4570_v21 }
  0xc7   : > { %v4598_v40 = vpop.permute.xlu1 %562  ;;  %v4600_v41 = vpop.permute.xlu0 %557 }
  0xc8   : > { %1067 = vperm.xlu1 %4358, %v1000_v38   ;;  %1062 = vperm.xlu0 %4357, %v999_v39  }
  0xcb   : > { %v4604_v44 = vpop.permute.xlu1 %572  ;;  %v4606_v45 = vpop.permute.xlu0 %567 }
  0xcc   : > { %6398 = vst [vmem:[#allocation8_spill] sm:$0xff] %v4604_v44  ;;  %6399 = vst [vmem:[#allocation9_spill] sm:$0xff] %v4606_v45  ;;  %1077 = vperm.xlu1 %4358, %v1002_v42   ;;  %1072 = vperm.xlu0 %4357, %v1001_v43   ;;  %v4656_v42 = vld [vmem:[%s4468_s15 + $0x2c] sm:$0xff]  ;;  %v4659_v43 = vld [vmem:[%s4468_s15 + $0x24] sm:$0xff] }
  0xcf   : > { %v4610_v48 = vpop.permute.xlu1 %582  ;;  %v4612_v49 = vpop.permute.xlu0 %577 }
  0xd0   : > { %6400 = vst [vmem:[#allocation10_spill] sm:$0xff] %v4610_v48  ;;  %6401 = vst [vmem:[#allocation11_spill] sm:$0xff] %v4612_v49  ;;  %1087 = vperm.xlu1 %4358, %v1004_v46   ;;  %1082 = vperm.xlu0 %4357, %v1003_v47  }
  0xd3   : > { %v593_v55 = vpop.permute.xlu1 %592  ;;  %v588_v56 = vpop.permute.xlu0 %587 }
  0xd4   : > { %v634_v58 = vmul.f32 %v4625_v54, %v593_v55  ;;  %v633_v59 = vmul.f32 %v4625_v54, %v588_v56  ;;  %1097 = vperm.xlu1 %4358, %v1006_v50   ;;  %1092 = vperm.xlu0 %4357, %v1005_v51   ;;  %v4672_v50 = vld [vmem:[%s4468_s15 + $0x3c] sm:$0xff]  ;;  %v4675_v51 = vld [vmem:[%s4468_s15 + $0x34] sm:$0xff]  ;;  %v4684_v56 = vld [vmem:[%s4468_s15 + $0x4c] sm:$0xff] }
  0xd6   : > { %v4633_v12 = vadd.f32 %v634_v58, %v489_v53  ;;  %v4635_v14 = vadd.f32 %v633_v59, %v488_v57  ;;  %v4687_v57 = vld [vmem:[%s4468_s15 + $0x44] sm:$0xff] }
  0xd7   : > { %v603_v18 = vpop.permute.xlu1 %602  ;;  %v598_v19 = vpop.permute.xlu0 %597 }
  0xd8   : > { %v636_v22 = vmul.f32 %v4625_v54, %v603_v18  ;;  %v635_v23 = vmul.f32 %v4625_v54, %v598_v19  ;;  %1107 = vperm.xlu1 %4358, %v1008_v60   ;;  %1102 = vperm.xlu0 %4357, %v1007_v61   ;;  %v1163_v60 = vld [vmem:[%s4468_s15 + $0x5c] sm:$0xff]  ;;  %v1162_v61 = vld [vmem:[%s4468_s15 + $0x54] sm:$0xff]  ;;  %v1165_v19 = vld [vmem:[%s4468_s15 + $0x6c] sm:$0xff] }
  0xda   : > { %v4645_v30 = vadd.f32 %v636_v22, %v491_v15  ;;  %v4647_v31 = vadd.f32 %v635_v23, %v490_v13  ;;  %v1164_v13 = vld [vmem:[%s4468_s15 + $0x64] sm:$0xff] }
  0xdb   : > { %v613_v34 = vpop.permute.xlu1 %612  ;;  %v608_v17 = vpop.permute.xlu0 %607 }
  0xdc   : > { %v638_v38 = vmul.f32 %v4625_v54, %v613_v34  ;;  %v637_v39 = vmul.f32 %v4625_v54, %v608_v17  ;;  %1182 = vperm.xlu1 %4358, %v1155_v26   ;;  %1177 = vperm.xlu0 %4357, %v1154_v27   ;;  %v1167_v26 = vld [vmem:[%s4468_s15 + $0x7c] sm:$0xff]  ;;  %v1166_v27 = vld [vmem:[%s4468_s15 + $0x74] sm:$0xff]  ;;  %v1169_v17 = vld [vmem:[%s4468_s15 + $0x8c] sm:$0xff] }
  0xde   : > { %v4661_v20 = vadd.f32 %v638_v38, %v493_v16  ;;  %v4663_v46 = vadd.f32 %v637_v39, %v492_v35  ;;  %v1168_v35 = vld [vmem:[%s4468_s15 + $0x84] sm:$0xff] }
  0xdf   : > { %v4665_v47 = vpop.permute.xlu1 %687  ;;  %v4667_v21 = vpop.permute.xlu0 %682 }
  0xe0   : > { %6402 = vst [vmem:[#allocation12_spill] sm:$0xff] %v4665_v47  ;;  %6403 = vst [vmem:[#allocation13_spill] sm:$0xff] %v4667_v21  ;;  %1192 = vperm.xlu1 %4358, %v4656_v42   ;;  %1187 = vperm.xlu0 %4357, %v4659_v43  }
  0xe3   : > { %v4677_v53 = vpop.permute.xlu1 %697  ;;  %v4679_v55 = vpop.permute.xlu0 %692 }
  0xe4   : > { %6404 = vst [vmem:[#allocation14_spill] sm:$0xff] %v4677_v53  ;;  %6405 = vst [vmem:[#allocation15_spill] sm:$0xff] %v4679_v55  ;;  %1202 = vperm.xlu1 %4358, %v4672_v50   ;;  %1197 = vperm.xlu0 %4357, %v4675_v51  }
  0xe7   : > { %v4689_v58 = vpop.permute.xlu1 %707  ;;  %v4691_v59 = vpop.permute.xlu0 %702 }
  0xe8   : > { %6406 = vst [vmem:[#allocation16_spill] sm:$0xff] %v4689_v58  ;;  %6407 = vst [vmem:[#allocation17_spill] sm:$0xff] %v4691_v59  ;;  %1212 = vperm.xlu1 %4358, %v4684_v56   ;;  %1207 = vperm.xlu0 %4357, %v4687_v57   ;;  %v1172_v58 = vld [vmem:[%s4468_s15 + $0xa4] sm:$0xff] }
  0xeb   : > { %v4697_v15 = vpop.permute.xlu1 %717  ;;  %v4699_v18 = vpop.permute.xlu0 %712 }
  0xec   : > { %6408 = vst [vmem:[#allocation18_spill] sm:$0xff] %v4697_v15  ;;  %6409 = vst [vmem:[#allocation19_spill] sm:$0xff] %v4699_v18  ;;  %1222 = vperm.xlu1 %4358, %v1163_v60   ;;  %1217 = vperm.xlu0 %4357, %v1162_v61  }
  0xef   : > { %v4703_v22 = vpop.permute.xlu1 %727  ;;  %v4705_v23 = vpop.permute.xlu0 %722 }
  0xf0   : > { %6410 = vst [vmem:[#allocation20_spill] sm:$0xff] %v4703_v22  ;;  %6411 = vst [vmem:[#allocation21_spill] sm:$0xff] %v4705_v23  ;;  %1232 = vperm.xlu1 %4358, %v1165_v19   ;;  %1227 = vperm.xlu0 %4357, %v1164_v13   ;;  %v1171_v23 = vld [vmem:[%s4468_s15 + $0x9c] sm:$0xff]  ;;  %v1170_v22 = vld [vmem:[%s4468_s15 + $0x94] sm:$0xff] }
  0xf3   : > { %v4709_v16 = vpop.permute.xlu1 %737  ;;  %v4711_v34 = vpop.permute.xlu0 %732 }
  0xf4   : > { %6412 = vst [vmem:[#allocation22_spill] sm:$0xff] %v4709_v16  ;;  %6413 = vst [vmem:[#allocation23_spill] sm:$0xff] %v4711_v34  ;;  %1242 = vperm.xlu1 %4358, %v1167_v26   ;;  %1237 = vperm.xlu0 %4357, %v1166_v27   ;;  %v4724_v16 = vld [vmem:[%s6384_s1 + $0x2] ss:$0 sm:$0xff] }
  0xf7   : > { %v4715_v38 = vpop.permute.xlu1 %747  ;;  %v4717_v39 = vpop.permute.xlu0 %742 }
  0xf8   : > { %6414 = vst [vmem:[#allocation24_spill] sm:$0xff] %v4715_v38  ;;  %6415 = vst [vmem:[#allocation25_spill] sm:$0xff] %v4717_v39  ;;  %1252 = vperm.xlu1 %4358, %v1169_v17   ;;  %1247 = vperm.xlu0 %4357, %v1168_v35   ;;  %v1173_v38 = vld [vmem:[%s4468_s15 + $0xac] sm:$0xff] }
  0xfb   : > { %v758_v34 = vpop.permute.xlu1 %757  ;;  %v753_v18 = vpop.permute.xlu0 %752 }
  0xfc   : > { %v799_v15 = vmul.f32 %v4724_v16, %v758_v34  ;;  %v798_v59 = vmul.f32 %v4724_v16, %v753_v18  ;;  %1262 = vperm.xlu1 %4358, %v1171_v23   ;;  %1257 = vperm.xlu0 %4357, %v1170_v22  }
  0xfe   : > { %v819_v39 = vadd.f32 %v799_v15, %v4633_v12  ;;  %v818_v55 = vadd.f32 %v798_v59, %v4635_v14  ;;  %v1485_v15 = vld [vmem:[%s4468_s15 + $0x2d] sm:$0xff] }
  0xff   : > { %v768_v53 = vpop.permute.xlu1 %767  ;;  %v763_v21 = vpop.permute.xlu0 %762 }
 0x100   : > { %v801_v47 = vmul.f32 %v4724_v16, %v768_v53  ;;  %v800_v49 = vmul.f32 %v4724_v16, %v763_v21  ;;  %1272 = vperm.xlu1 %4358, %v1173_v38   ;;  %1267 = vperm.xlu0 %4357, %v1172_v58  }
 0x102   : > { %v821_v34 = vadd.f32 %v801_v47, %v4645_v30  ;;  %v820_v18 = vadd.f32 %v800_v49, %v4647_v31 }
 0x103   : > { %v778_v48 = vpop.permute.xlu1 %777  ;;  %v773_v45 = vpop.permute.xlu0 %772 }
 0x104   : > { %v803_v44 = vmul.f32 %v4724_v16, %v778_v48  ;;  %v802_v12 = vmul.f32 %v4724_v16, %v773_v45  ;;  %1347 = vperm.xlu1 %4358, %v4656_v42   ;;  %1342 = vperm.xlu0 %4357, %v4659_v43  }
 0x106   : > { %v823_v14 = vadd.f32 %v803_v44, %v4661_v20  ;;  %v822_v21 = vadd.f32 %v802_v12, %v4663_v46  ;;  %v1486_v12 = vld [vmem:[%s4468_s15 + $0x35] sm:$0xff] }
 0x107   : > { %v4742_v53 = vpop.permute.xlu1 %852  ;;  %v4744_v59 = vpop.permute.xlu0 %847 }
 0x108   : > { %1357 = vperm.xlu1 %4358, %v4672_v50   ;;  %1352 = vperm.xlu0 %4357, %v4675_v51   ;;  %v4777_v51 = vld [vmem:[%s6384_s1 + $0x3] ss:$0 sm:$0xff] }
 0x10b   : > { %v4748_v49 = vpop.permute.xlu1 %862  ;;  %v4750_v48 = vpop.permute.xlu0 %857 }
 0x10c   : > { %1367 = vperm.xlu1 %4358, %v4684_v56   ;;  %1362 = vperm.xlu0 %4357, %v4687_v57  }
 0x10f   : > { %v4754_v45 = vpop.permute.xlu1 %872  ;;  %v4756_v44 = vpop.permute.xlu0 %867 }
 0x110   : > { %6416 = vst [vmem:[#allocation26_spill] sm:$0xff] %v4754_v45  ;;  %1377 = vperm.xlu1 %4358, %v1163_v60   ;;  %1372 = vperm.xlu0 %4357, %v1162_v61  }
 0x113   : > { %v4758_v30 = vpop.permute.xlu1 %882  ;;  %v4760_v31 = vpop.permute.xlu0 %877 }
 0x114   : > { %6417 = vst [vmem:[#allocation27_spill] sm:$0xff] %v4758_v30  ;;  %6418 = vst [vmem:[#allocation28_spill] sm:$0xff] %v4760_v31  ;;  %1387 = vperm.xlu1 %4358, %v1165_v19   ;;  %1382 = vperm.xlu0 %4357, %v1164_v13   ;;  %v1484_v19 = vld [vmem:[%s4468_s15 + $0x25] sm:$0xff] }
 0x117   : > { %v4762_v42 = vpop.permute.xlu1 %892  ;;  %v4764_v43 = vpop.permute.xlu0 %887 }
 0x118   : > { %6419 = vst [vmem:[#allocation29_spill] sm:$0xff] %v4762_v42  ;;  %6420 = vst [vmem:[#allocation30_spill] sm:$0xff] %v4764_v43  ;;  %1397 = vperm.xlu1 %4358, %v1167_v26   ;;  %1392 = vperm.xlu0 %4357, %v1166_v27  }
 0x11b   : > { %v4766_v20 = vpop.permute.xlu1 %902  ;;  %v4768_v46 = vpop.permute.xlu0 %897 }
 0x11c   : > { %6421 = vst [vmem:[#allocation31_spill] sm:$0xff] %v4766_v20  ;;  %6422 = vst [vmem:[#allocation32_spill] sm:$0xff] %v4768_v46  ;;  %1407 = vperm.xlu1 %4358, %v1169_v17   ;;  %1402 = vperm.xlu0 %4357, %v1168_v35   ;;  %v1487_v35 = vld [vmem:[%s4468_s15 + $0x3d] sm:$0xff] }
 0x11f   : > { %v4770_v47 = vpop.permute.xlu1 %912  ;;  %v4772_v50 = vpop.permute.xlu0 %907 }
 0x120   : > { %6423 = vst [vmem:[#allocation33_spill] sm:$0xff] %v4770_v47  ;;  %6424 = vst [vmem:[#allocation34_spill] sm:$0xff] %v4772_v50  ;;  %1417 = vperm.xlu1 %4358, %v1171_v23   ;;  %1412 = vperm.xlu0 %4357, %v1170_v22  }
 0x123   : > { %v923_v56 = vpop.permute.xlu1 %922  ;;  %v918_v57 = vpop.permute.xlu0 %917 }
 0x124   : > { %v964_v60 = vmul.f32 %v4777_v51, %v923_v56  ;;  %v963_v61 = vmul.f32 %v4777_v51, %v918_v57  ;;  %1427 = vperm.xlu1 %4358, %v1173_v38   ;;  %1422 = vperm.xlu0 %4357, %v1172_v58  }
 0x126   : > { %v4783_v13 = vadd.f32 %v964_v60, %v819_v39  ;;  %v4785_v22 = vadd.f32 %v963_v61, %v818_v55  ;;  %v1649_v60 = vld [vmem:[%s4468_s15 + $0x26] sm:$0xff] }
 0x127   : > { %v933_v23 = vpop.permute.xlu1 %932  ;;  %v928_v26 = vpop.permute.xlu0 %927  ;;  %v1488_v61 = vld [vmem:[%s4468_s15 + $0x45] sm:$0xff] }
 0x128   : > { %v966_v27 = vmul.f32 %v4777_v51, %v933_v23  ;;  %v965_v17 = vmul.f32 %v4777_v51, %v928_v26  ;;  %1512 = vperm.xlu1 %4358, %v1485_v15   ;;  %1507 = vperm.xlu0 %4357, %v1484_v19   ;;  %v1651_v23 = vld [vmem:[%s4468_s15 + $0x36] sm:$0xff]  ;;  %v1650_v26 = vld [vmem:[%s4468_s15 + $0x2e] sm:$0xff] }
 0x12a   : > { %v4791_v38 = vadd.f32 %v966_v27, %v821_v34  ;;  %v4793_v58 = vadd.f32 %v965_v17, %v820_v18 }
 0x12b   : > { %v943_v55 = vpop.permute.xlu1 %942  ;;  %v938_v39 = vpop.permute.xlu0 %937 }
 0x12c   : > { %v968_v56 = vmul.f32 %v4777_v51, %v943_v55  ;;  %v967_v57 = vmul.f32 %v4777_v51, %v938_v39  ;;  %1522 = vperm.xlu1 %4358, %v1487_v35   ;;  %1517 = vperm.xlu0 %4357, %v1486_v12   ;;  %v1490_v55 = vld [vmem:[%s4468_s15 + $0x55] sm:$0xff]  ;;  %v1489_v39 = vld [vmem:[%s4468_s15 + $0x4d] sm:$0xff] }
 0x12e   : > { %v4799_v15 = vadd.f32 %v968_v56, %v823_v14  ;;  %v4801_v34 = vadd.f32 %v967_v57, %v822_v21  ;;  %v1653_v14 = vld [vmem:[%s4468_s15 + $0x46] sm:$0xff]  ;;  %v1652_v21 = vld [vmem:[%s4468_s15 + $0x3e] sm:$0xff] }
 0x12f   : > { %v4803_v19 = vpop.permute.xlu1 %1017  ;;  %v4805_v18 = vpop.permute.xlu0 %1012 }
 0x130   : > { %1672 = vperm.xlu1 %4358, %v1649_v60   ;;  %1527 = vperm.xlu0 %4357, %v1488_v61   ;;  %v1492_v60 = vld [vmem:[%s4468_s15 + $0x65] sm:$0xff]  ;;  %v1491_v61 = vld [vmem:[%s4468_s15 + $0x5d] sm:$0xff] }
 0x133   : > { %v4809_v27 = vpop.permute.xlu1 %1027  ;;  %v4811_v17 = vpop.permute.xlu0 %1022 }
 0x134   : > { %1682 = vperm.xlu1 %4358, %v1651_v23   ;;  %1677 = vperm.xlu0 %4357, %v1650_v26  }
 0x137   : > { %v4815_v35 = vpop.permute.xlu1 %1037  ;;  %v4817_v12 = vpop.permute.xlu0 %1032 }
 0x138   : > { %6425 = vst [vmem:[#allocation35_spill] sm:$0xff] %v4815_v35  ;;  %1692 = vperm.xlu1 %4358, %v1653_v14   ;;  %1687 = vperm.xlu0 %4357, %v1652_v21   ;;  %v1494_v14 = vld [vmem:[%s4468_s15 + $0x75] sm:$0xff]  ;;  %v1493_v21 = vld [vmem:[%s4468_s15 + $0x6d] sm:$0xff] }
 0x13b   : > { %v4821_v56 = vpop.permute.xlu1 %1047  ;;  %v4823_v57 = vpop.permute.xlu0 %1042 }
 0x13c   : > { %6426 = vst [vmem:[#allocation36_spill] sm:$0xff] %v4821_v56  ;;  %6427 = vst [vmem:[#allocation37_spill] sm:$0xff] %v4823_v57  ;;  %1537 = vperm.xlu1 %4358, %v1490_v55   ;;  %1532 = vperm.xlu0 %4357, %v1489_v39   ;;  %v1496_v57 = vld [vmem:[%s4468_s15 + $0x85] sm:$0xff]  ;;  %v1495_v56 = vld [vmem:[%s4468_s15 + $0x7d] sm:$0xff] }
 0x13f   : > { %v4827_v23 = vpop.permute.xlu1 %1057  ;;  %v4829_v26 = vpop.permute.xlu0 %1052 }
 0x140   : > { %6428 = vst [vmem:[#allocation38_spill] sm:$0xff] %v4827_v23  ;;  %6429 = vst [vmem:[#allocation39_spill] sm:$0xff] %v4829_v26  ;;  %1547 = vperm.xlu1 %4358, %v1492_v60   ;;  %1542 = vperm.xlu0 %4357, %v1491_v61   ;;  %v6393_v60 = vmov 0.0   ;;  %v4874_v61 = vld [vmem:[%s6384_s1 + $0x4] ss:$0 sm:$0xff] }
 0x141   : > { %335 = vst.msk [vmem:[#allocation3] sm:$0xff] %vm334_vm0, %v6393_v60  ;;  %336 = vst.msk [vmem:[#allocation3 + $0x8] sm:$0xff] %vm334_vm0, %v6393_v60  ;;  %4281 = vmatprep.subr.bf16.mxu0 %v6393_v60  ;;  %4329 = vmatprep.subr.bf16.mxu1 %v6393_v60  ;;  %v4359_v23 = vld [vmem:[%s6386_s3] sm:$0xff]  }
 0x142   : > { %337 = vst.msk [vmem:[#allocation3 + $0x10] sm:$0xff] %vm334_vm0, %v6393_v60  ;;  %338 = vst.msk [vmem:[#allocation3 + $0x18] sm:$0xff] %vm334_vm0, %v6393_v60  ;;  %4282 = vmatpush3.bf16.msra.mxu0 %v4359_v23  ;;  %4330 = vmatpush3.bf16.msra.mxu1 %v4359_v23 }
 0x143   : > { %v4833_v35 = vpop.permute.xlu1 %1067  ;;  %v4835_v50 = vpop.permute.xlu0 %1062  ;;  %339 = vst.msk [vmem:[#allocation3 + $0x20] sm:$0xff] %vm334_vm0, %v6393_v60  ;;  %340 = vst.msk [vmem:[#allocation3 + $0x28] sm:$0xff] %vm334_vm0, %v6393_v60 }
 0x144   : > { %6430 = vst [vmem:[#allocation40_spill] sm:$0xff] %v4833_v35  ;;  %6431 = vst [vmem:[#allocation41_spill] sm:$0xff] %v4835_v50  ;;  %1557 = vperm.xlu1 %4358, %v1494_v14   ;;  %1552 = vperm.xlu0 %4357, %v1493_v21   ;;  %v1656_v50 = vld [vmem:[%s4468_s15 + $0x5e] sm:$0xff]  ;;  %v1655_v35 = vld [vmem:[%s4468_s15 + $0x56] sm:$0xff] }
 0x145   : > { %341 = vst.msk [vmem:[#allocation3 + $0x30] sm:$0xff] %vm334_vm0, %v6393_v60  ;;  %342 = vst.msk [vmem:[#allocation3 + $0x38] sm:$0xff] %vm334_vm0, %v6393_v60 }
 0x146   : > { %343 = vst.msk [vmem:[#allocation3 + $0x40] sm:$0xff] %vm334_vm0, %v6393_v60  ;;  %344 = vst.msk [vmem:[#allocation3 + $0x48] sm:$0xff] %vm334_vm0, %v6393_v60 }
 0x147   : > { %v4839_v55 = vpop.permute.xlu1 %1077  ;;  %v4841_v39 = vpop.permute.xlu0 %1072  ;;  %345 = vst.msk [vmem:[#allocation3 + $0x50] sm:$0xff] %vm334_vm0, %v6393_v60  ;;  %346 = vst.msk [vmem:[#allocation3 + $0x58] sm:$0xff] %vm334_vm0, %v6393_v60 }
 0x148   : > { %6432 = vst [vmem:[#allocation42_spill] sm:$0xff] %v4839_v55  ;;  %6433 = vst [vmem:[#allocation43_spill] sm:$0xff] %v4841_v39  ;;  %1567 = vperm.xlu1 %4358, %v1496_v57   ;;  %1562 = vperm.xlu0 %4357, %v1495_v56   ;;  %v1654_v56 = vld [vmem:[%s4468_s15 + $0x4e] sm:$0xff] }
 0x149   : > { %v1497_v57 = vld [vmem:[%s4468_s15 + $0x8d] sm:$0xff] }
 0x14b   : > { %v1088_v14 = vpop.permute.xlu1 %1087  ;;  %v1083_v21 = vpop.permute.xlu0 %1082 }
 0x14c   : > { %v1129_v39 = vmul.f32 %v4874_v61, %v1088_v14  ;;  %v1128_v55 = vmul.f32 %v4874_v61, %v1083_v21  ;;  %1697 = vperm.xlu1 %4358, %v1654_v56   ;;  %1572 = vperm.xlu0 %4357, %v1497_v57   ;;  %v1658_v56 = vld [vmem:[%s4468_s15 + $0x6e] sm:$0xff]  ;;  %v1657_v57 = vld [vmem:[%s4468_s15 + $0x66] sm:$0xff] }
 0x14e   : > { %v4881_v26 = vadd.f32 %v1129_v39, %v4783_v13  ;;  %v4884_v60 = vadd.f32 %v1128_v55, %v4785_v22  ;;  %v6434_v55 = vmov 0.0  }
 0x14f   : > { %v1098_v47 = vpop.permute.xlu1 %1097  ;;  %v1093_v46 = vpop.permute.xlu0 %1092  ;;  %4283 = vmatprep.mubr.msk.bf16.mxu0 %vm4386_vm1, %v6434_v55  ;;  %4303 = vmatprep.mubr.msk.bf16.mxu1 %vm4386_vm1, %v6434_v55 }
 0x150   : > { %v1131_v14 = vmul.f32 %v4874_v61, %v1098_v47  ;;  %v1130_v21 = vmul.f32 %v4874_v61, %v1093_v46  ;;  %1707 = vperm.xlu1 %4358, %v1656_v50   ;;  %1702 = vperm.xlu0 %4357, %v1655_v35   ;;  %v1659_v35 = vld [vmem:[%s4468_s15 + $0x76] sm:$0xff] }
 0x151   : > { %4311 = vmatprep.subr.bf16.mxu1 %v6434_v55 }
 0x152   : > { %v4894_v13 = vadd.f32 %v1131_v14, %v4791_v38  ;;  %v4897_v22 = vadd.f32 %v1130_v21, %v4793_v58  ;;  %v1660_v58 = vld [vmem:[%s4468_s15 + $0x7e] sm:$0xff] }
 0x153   : > { %v1108_v46 = vpop.permute.xlu1 %1107  ;;  %v1103_v47 = vpop.permute.xlu0 %1102 }
 0x154   : > { %v1133_v50 = vmul.f32 %v4874_v61, %v1108_v46  ;;  %v1132_v38 = vmul.f32 %v4874_v61, %v1103_v47  ;;  %1717 = vperm.xlu1 %4358, %v1658_v56   ;;  %1712 = vperm.xlu0 %4357, %v1657_v57   ;;  %v1662_v56 = vld [vmem:[%s4468_s15 + $0x8e] sm:$0xff]  ;;  %v1661_v46 = vld [vmem:[%s4468_s15 + $0x86] sm:$0xff] }
 0x156   : > { %v4909_v23 = vadd.f32 %v1133_v50, %v4799_v15  ;;  %v4912_v39 = vadd.f32 %v1132_v38, %v4801_v34  ;;  %v1882_v15 = vld [vmem:[%s4468_s15 + $0xa8] sm:$0xff]  ;;  %v1881_v34 = vld [vmem:[%s4468_s15 + $0xa0] sm:$0xff] }
 0x157   : > { %v4914_v14 = vpop.permute.xlu1 %1182  ;;  %v4916_v21 = vpop.permute.xlu0 %1177 }
 0x158   : > { %1727 = vperm.xlu1 %4358, %v1660_v58   ;;  %1722 = vperm.xlu0 %4357, %v1659_v35   ;;  %v1884_v58 = vld [vmem:[%s4468_s15 + $0xb8] sm:$0xff]  ;;  %v1883_v35 = vld [vmem:[%s4468_s15 + $0xb0] sm:$0xff] }
 0x15b   : > { %v4920_v57 = vpop.permute.xlu1 %1192  ;;  %v4922_v47 = vpop.permute.xlu0 %1187 }
 0x15c   : > { %1737 = vperm.xlu1 %4358, %v1662_v56   ;;  %1732 = vperm.xlu0 %4357, %v1661_v46   ;;  %v1886_v56 = vld [vmem:[%s4468_s15 + $0xc8] sm:$0xff]  ;;  %v1885_v46 = vld [vmem:[%s4468_s15 + $0xc0] sm:$0xff] }
 0x15f   : > { %v4926_v50 = vpop.permute.xlu1 %1202  ;;  %v4928_v38 = vpop.permute.xlu0 %1197 }
 0x160   : > { %6435 = vst [vmem:[#allocation44_spill] sm:$0xff] %v4926_v50  ;;  %1905 = vperm.xlu1 %4358, %v1882_v15   ;;  %1900 = vperm.xlu0 %4357, %v1881_v34   ;;  %v1998_v15 = vld [vmem:[%s4468_s15 + $0xa1] sm:$0xff]  ;;  %v1887_v34 = vld [vmem:[%s4468_s15 + $0xd0] sm:$0xff] }
 0x163   : > { %v4932_v55 = vpop.permute.xlu1 %1212  ;;  %v4934_v20 = vpop.permute.xlu0 %1207 }
 0x164   : > { %6436 = vst [vmem:[#allocation45_spill] sm:$0xff] %v4932_v55  ;;  %6437 = vst [vmem:[#allocation46_spill] sm:$0xff] %v4934_v20  ;;  %1915 = vperm.xlu1 %4358, %v1884_v58   ;;  %1910 = vperm.xlu0 %4357, %v1883_v35   ;;  %v2000_v58 = vld [vmem:[%s4468_s15 + $0xb1] sm:$0xff]  ;;  %v1999_v35 = vld [vmem:[%s4468_s15 + $0xa9] sm:$0xff] }
 0x167   : > { %v4938_v43 = vpop.permute.xlu1 %1222  ;;  %v4940_v50 = vpop.permute.xlu0 %1217 }
 0x168   : > { %6438 = vst [vmem:[#allocation47_spill] sm:$0xff] %v4938_v43  ;;  %6439 = vst [vmem:[#allocation48_spill] sm:$0xff] %v4940_v50  ;;  %1925 = vperm.xlu1 %4358, %v1886_v56   ;;  %1920 = vperm.xlu0 %4357, %v1885_v46   ;;  %v2002_v56 = vld [vmem:[%s4468_s15 + $0xc1] sm:$0xff]  ;;  %v2001_v46 = vld [vmem:[%s4468_s15 + $0xb9] sm:$0xff] }
 0x16b   : > { %v4944_v42 = vpop.permute.xlu1 %1232  ;;  %v4946_v55 = vpop.permute.xlu0 %1227 }
 0x16c   : > { %6440 = vst [vmem:[#allocation49_spill] sm:$0xff] %v4944_v42  ;;  %6441 = vst [vmem:[#allocation50_spill] sm:$0xff] %v4946_v55  ;;  %2017 = vperm.xlu1 %4358, %v1998_v15   ;;  %1930 = vperm.xlu0 %4357, %v1887_v34   ;;  %v4959_v42 = vld [vmem:[%s6384_s1 + $0x5] ss:$0 sm:$0xff] }
 0x16f   : > { %v4950_v20 = vpop.permute.xlu1 %1242  ;;  %v4952_v43 = vpop.permute.xlu0 %1237 }
 0x170   : > { %6442 = vst [vmem:[#allocation51_spill] sm:$0xff] %v4950_v20  ;;  %6443 = vst [vmem:[#allocation52_spill] sm:$0xff] %v4952_v43  ;;  %2027 = vperm.xlu1 %4358, %v2000_v58   ;;  %2022 = vperm.xlu0 %4357, %v1999_v35   ;;  %v2004_v43 = vld [vmem:[%s4468_s15 + $0xd1] sm:$0xff]  ;;  %v2003_v58 = vld [vmem:[%s4468_s15 + $0xc9] sm:$0xff] }
 0x173   : > { %v1253_v55 = vpop.permute.xlu1 %1252  ;;  %v1248_v15 = vpop.permute.xlu0 %1247 }
 0x174   : > { %v1294_v34 = vmul.f32 %v4959_v42, %v1253_v55  ;;  %v1293_v50 = vmul.f32 %v4959_v42, %v1248_v15  ;;  %2037 = vperm.xlu1 %4358, %v2002_v56   ;;  %2032 = vperm.xlu0 %4357, %v2001_v46   ;;  %v2132_v56 = vld [vmem:[%s4468_s15 + $0xaa] sm:$0xff]  ;;  %v2131_v46 = vld [vmem:[%s4468_s15 + $0xa2] sm:$0xff] }
 0x176   : > { %v4966_v35 = vadd.f32 %v1294_v34, %v4881_v26  ;;  %v4969_v20 = vadd.f32 %v1293_v50, %v4884_v60 }
 0x177   : > { %v1263_v31 = vpop.permute.xlu1 %1262  ;;  %v1258_v30 = vpop.permute.xlu0 %1257 }
 0x178   : > { %6444 = vst [vmem:[#allocation53_spill] sm:$0xff] %v4966_v35  ;;  %6445 = vst [vmem:[#allocation54_spill] sm:$0xff] %v4969_v20  ;;  %v1296_v45 = vmul.f32 %v4959_v42, %v1263_v31  ;;  %v1295_v55 = vmul.f32 %v4959_v42, %v1258_v30  ;;  %2047 = vperm.xlu1 %4358, %v2004_v43   ;;  %2042 = vperm.xlu0 %4357, %v2003_v58   ;;  %v2134_v30 = vld [vmem:[%s4468_s15 + $0xba] sm:$0xff]  ;;  %v2133_v43 = vld [vmem:[%s4468_s15 + $0xb2] sm:$0xff] }
 0x17a   : > { %v4976_v15 = vadd.f32 %v1296_v45, %v4894_v13  ;;  %v4979_v26 = vadd.f32 %v1295_v55, %v4897_v22  ;;  %v2136_v55 = vld [vmem:[%s4468_s15 + $0xca] sm:$0xff] }
 0x17b   : > { %v1273_v60 = vpop.permute.xlu1 %1272  ;;  %v1268_v50 = vpop.permute.xlu0 %1267 }
 0x17c   : > { %6446 = vst [vmem:[#allocation55_spill] sm:$0xff] %v4976_v15  ;;  %6447 = vst [vmem:[#allocation56_spill] sm:$0xff] %v4979_v26  ;;  %v1298_v34 = vmul.f32 %v4959_v42, %v1273_v60  ;;  %v1297_v31 = vmul.f32 %v4959_v42, %v1268_v50  ;;  %2155 = vperm.xlu1 %4358, %v2132_v56   ;;  %2150 = vperm.xlu0 %4357, %v2131_v46   ;;  %v2135_v56 = vld [vmem:[%s4468_s15 + $0xc2] sm:$0xff]  ;;  %v1501_v15 = vld [vmem:[%s4468_s15 + $0xad] sm:$0xff] }
 0x17e   : > { %v4986_v45 = vadd.f32 %v1298_v34, %v4909_v23  ;;  %v4989_v13 = vadd.f32 %v1297_v31, %v4912_v39  ;;  %v1498_v23 = vld [vmem:[%s4468_s15 + $0x95] sm:$0xff]  ;;  %v1500_v31 = vld [vmem:[%s4468_s15 + $0xa5] sm:$0xff] }
 0x17f   : > { %v4991_v22 = vpop.permute.xlu1 %1347  ;;  %v4993_v58 = vpop.permute.xlu0 %1342  ;;  %v2137_v39 = vld [vmem:[%s4468_s15 + $0xd2] sm:$0xff] }
 0x180   : > { %6448 = vst [vmem:[#allocation57_spill] sm:$0xff] %v4986_v45  ;;  %6449 = vst [vmem:[#allocation58_spill] sm:$0xff] %v4989_v13  ;;  %2165 = vperm.xlu1 %4358, %v2134_v30   ;;  %2160 = vperm.xlu0 %4357, %v2133_v43   ;;  %v1499_v13 = vld [vmem:[%s4468_s15 + $0x9d] sm:$0xff] }
 0x183   : > { %v4997_v46 = vpop.permute.xlu1 %1357  ;;  %v4999_v60 = vpop.permute.xlu0 %1352 }
 0x184   : > { %2175 = vperm.xlu1 %4358, %v2136_v55   ;;  %2170 = vperm.xlu0 %4357, %v2135_v56  }
 0x187   : > { %v5003_v50 = vpop.permute.xlu1 %1367  ;;  %v5005_v34 = vpop.permute.xlu0 %1362 }
 0x188   : > { %6450 = vst [vmem:[#allocation59_spill] sm:$0xff] %v5003_v50  ;;  %6451 = vst [vmem:[#allocation60_spill] sm:$0xff] %v5005_v34  ;;  %1577 = vperm.xlu1 %4358, %v1498_v23   ;;  %2180 = vperm.xlu0 %4357, %v2137_v39   ;;  %v476_v23 = vmul.f32 %v4619_v52, %v4530_v62  ;;  %v481_v62 = vmul.f32 %v4619_v52, %v4542_v4 }
 0x18b   : > { %v5009_v45 = vpop.permute.xlu1 %1377  ;;  %v5011_v26 = vpop.permute.xlu0 %1372 }
 0x18c   : > { %1587 = vperm.xlu1 %4358, %v1500_v31   ;;  %1582 = vperm.xlu0 %4357, %v1499_v13   ;;  %v474_v31 = vmul.f32 %v4619_v52, %v4532_v63  ;;  %v477_v13 = vmul.f32 %v4619_v52, %v4534_v0  ;;  %v620_v63 = vmul.f32 %v4625_v54, %v4574_v24 }
 0x18d   : > { %v483_v0 = vmul.f32 %v4619_v52, %v4546_v6  ;;  %v485_v24 = vmul.f32 %v4619_v52, %v4550_v8  ;;  %v621_v6 = vmul.f32 %v4625_v54, %v4582_v29  ;;  %v626_v8 = vmul.f32 %v4625_v54, %v4592_v36  ;;  %v5070_v29 = vld [vmem:[%s4468_s15 + $0xda] sm:$0xff] }
 0x18e   : > { %v627_v36 = vmul.f32 %v4625_v54, %v4600_v41  ;;  %v6460_v41 = vld [vmem:[#allocation10_spill] sm:$0xff] }
 0x18f   : > { %v5014_v20 = vpop.permute.xlu1 %1387  ;;  %v5016_v35 = vpop.permute.xlu0 %1382 }
 0x190   : > { %6452 = vst [vmem:[#allocation61_spill] sm:$0xff] %v5016_v35  ;;  %2283 = vperm.xlu1 %4358, %v2133_v43   ;;  %1592 = vperm.xlu0 %4357, %v1501_v15   ;;  %v475_v35 = vmul.f32 %v4619_v52, %v4536_v1  ;;  %v479_v15 = vmul.f32 %v4619_v52, %v4538_v2 }
 0x191   : > { %v478_v43 = vmul.f32 %v4619_v52, %v4540_v3  ;;  %v482_v1 = vmul.f32 %v4619_v52, %v4548_v7  ;;  %v619_v2 = vmul.f32 %v4625_v54, %v4576_v25  ;;  %v622_v3 = vmul.f32 %v4625_v54, %v4580_v28 }
 0x192   : > { %v484_v7 = vmul.f32 %v4619_v52, %v4552_v9  ;;  %v487_v25 = vmul.f32 %v4619_v52, %v4554_v10  ;;  %v623_v28 = vmul.f32 %v4625_v54, %v4588_v33  ;;  %v625_v9 = vmul.f32 %v4625_v54, %v4594_v37  ;;  %v6459_v37 = vld [vmem:[#allocation9_spill] sm:$0xff] }
 0x193   : > { %v5018_v50 = vpop.permute.xlu1 %1397  ;;  %v5020_v34 = vpop.permute.xlu0 %1392  ;;  %v628_v10 = vmul.f32 %v4625_v54, %v4598_v40  ;;  %v642_v33 = vadd.f32 %v622_v3, %v477_v13  ;;  %v632_v13 = vmul.f32 %v4625_v54, %v6460_v41  ;;  %v6465_v41 = vld [vmem:[#allocation15_spill] sm:$0xff] }
 0x194   : > { %6453 = vst [vmem:[#allocation62_spill] sm:$0xff] %v5018_v50  ;;  %6454 = vst [vmem:[#allocation63_spill] sm:$0xff] %v5020_v34  ;;  %2293 = vperm.xlu1 %4358, %v2135_v56   ;;  %2288 = vperm.xlu0 %4357, %v2134_v30   ;;  %v480_v30 = vmul.f32 %v4619_v52, %v4544_v5  ;;  %v624_v56 = vmul.f32 %v4625_v54, %v4586_v32 }
 0x195   : > { %v486_v32 = vmul.f32 %v4619_v52, %v4556_v11  ;;  %v641_v52 = vadd.f32 %v621_v6, %v476_v23  ;;  %v643_v40 = vadd.f32 %v623_v28, %v478_v43  ;;  %v6462_v6 = vld [vmem:[#allocation12_spill] sm:$0xff] }
 0x196   : > { %v5098_v23 = vadd.f32 %v625_v9, %v480_v30  ;;  %v786_v30 = vmul.f32 %v4724_v16, %v6465_v41 }
 0x197   : > { %v5048_v4 = vpop.permute.xlu1 %1407  ;;  %v5050_v5 = vpop.permute.xlu0 %1402 }
 0x198   : > { %6455 = vst [vmem:[#allocation64_spill] sm:$0xff] %v5048_v4  ;;  %6456 = vst [vmem:[#allocation65_spill] sm:$0xff] %v5050_v5  ;;  %2303 = vperm.xlu1 %4358, %v2137_v39   ;;  %2298 = vperm.xlu0 %4357, %v2136_v55   ;;  %v5067_v5 = vld [vmem:[%s4468_s15 + $0xe2] sm:$0xff]  ;;  %v640_v55 = vadd.f32 %v620_v63, %v475_v35  ;;  %v639_v39 = vadd.f32 %v619_v2, %v474_v31  ;;  %v6457_v4 = vld [vmem:[#allocation8_spill] sm:$0xff] }
 0x199   : > { %v630_v34 = vmul.f32 %v4625_v54, %v6457_v4  ;;  %v644_v35 = vadd.f32 %v624_v56, %v479_v15  ;;  %v629_v63 = vmul.f32 %v4625_v54, %v6459_v37  ;;  %v5090_v31 = vadd.f32 %v626_v8, %v481_v62  ;;  %v6461_v2 = vld [vmem:[#allocation11_spill] sm:$0xff]  ;;  %v1664_v4 = vld [vmem:[%s4468_s15 + $0x9e] sm:$0xff] }
 0x19a   : > { %v631_v3 = vmul.f32 %v4625_v54, %v6461_v2  ;;  %v5100_v15 = vadd.f32 %v628_v10, %v483_v0  ;;  %v785_v56 = vmul.f32 %v4724_v16, %v6462_v6  ;;  %v6463_v37 = vld [vmem:[#allocation13_spill] sm:$0xff]  ;;  %v5106_v62 = vadd.f32 %v627_v36, %v482_v1  ;;  %v6464_v8 = vld [vmem:[#allocation14_spill] sm:$0xff]  ;;  %v6467_v2 = vld [vmem:[#allocation16_spill] sm:$0xff] }
 0x19b   : > { %v5082_v50 = vpop.permute.xlu1 %1417  ;;  %v5084_v11 = vpop.permute.xlu0 %1412  ;;  %v784_v43 = vmul.f32 %v4724_v16, %v6463_v37  ;;  %v5108_v28 = vadd.f32 %v630_v34, %v485_v24  ;;  %v787_v54 = vmul.f32 %v4724_v16, %v6464_v8  ;;  %v5118_v10 = vadd.f32 %v629_v63, %v484_v7  ;;  %v6468_v36 = vld [vmem:[#allocation17_spill] sm:$0xff]  ;;  %v1666_v7 = vld [vmem:[%s4468_s15 + $0xae] sm:$0xff]  ;;  %v1665_v63 = vld [vmem:[%s4468_s15 + $0xa6] sm:$0xff] }
 0x19c   : > { %6458 = vst [vmem:[#allocation8_spill] sm:$0xff] %v5084_v11  ;;  %2313 = vperm.xlu1 %4358, %v5067_v5   ;;  %2308 = vperm.xlu0 %4357, %v5070_v29   ;;  %v1663_v11 = vld [vmem:[%s4468_s15 + $0x96] sm:$0xff]  ;;  %v789_v6 = vmul.f32 %v4724_v16, %v6467_v2  ;;  %v949_v1 = vmul.f32 %v4777_v51, %v4744_v59 }
 0x19d   : > { %v5124_v34 = vadd.f32 %v632_v13, %v487_v25  ;;  %v5126_v24 = vadd.f32 %v631_v3, %v486_v32  ;;  %v788_v37 = vmul.f32 %v4724_v16, %v6468_v36  ;;  %v950_v8 = vmul.f32 %v4777_v51, %v4742_v53 }
 0x19e   : > { %v805_v41 = vadd.f32 %v785_v56, %v640_v55  ;;  %v952_v2 = vmul.f32 %v4777_v51, %v4748_v49  ;;  %v1114_v59 = vmul.f32 %v4874_v61, %v4805_v18  ;;  %v807_v25 = vadd.f32 %v787_v54, %v642_v33  ;;  %v5145_v55 = vld [vmem:[%s6384_s1 + $0x6] ss:$0 sm:$0xff]  ;;  %v2397_v56 = vld [vmem:[%s4468_s15 + $0xb3] sm:$0xff] }
 0x19f   : > { %v5114_v0 = vpop.permute.xlu1 %1427  ;;  %v5116_v9 = vpop.permute.xlu0 %1422  ;;  %v951_v32 = vmul.f32 %v4777_v51, %v4750_v48  ;;  %v953_v53 = vmul.f32 %v4777_v51, %v4756_v44  ;;  %v5147_v13 = vadd.f32 %v789_v6, %v644_v35  ;;  %v1279_v33 = vmul.f32 %v4959_v42, %v4916_v21  ;;  %v2398_v35 = vld [vmem:[%s4468_s15 + $0xbb] sm:$0xff] }
 0x1a0   : > { %6466 = vst [vmem:[#allocation9_spill] sm:$0xff] %v5116_v9  ;;  %1747 = vperm.xlu1 %4358, %v1664_v4   ;;  %1742 = vperm.xlu0 %4357, %v1663_v11   ;;  %v804_v9 = vadd.f32 %v784_v43, %v639_v39  ;;  %v806_v11 = vadd.f32 %v786_v30, %v641_v52  ;;  %v5158_v4 = vld [vmem:[%s6384_s1 + $0x7] ss:$0 sm:$0xff] }
 0x1a1   : > { %v808_v48 = vadd.f32 %v788_v37, %v643_v40  ;;  %v970_v52 = vadd.f32 %v950_v8, %v805_v41  ;;  %v1115_v44 = vmul.f32 %v4874_v61, %v4803_v19  ;;  %v1116_v3 = vmul.f32 %v4874_v61, %v4811_v17 }
 0x1a2   : > { %v969_v18 = vadd.f32 %v949_v1, %v804_v9  ;;  %v972_v43 = vadd.f32 %v952_v2, %v807_v25  ;;  %v1117_v21 = vmul.f32 %v4874_v61, %v4809_v27  ;;  %v1444_v40 = vmul.f32 %v5145_v55, %v4993_v58 }
 0x1a3   : > { %v1513_v39 = vpop.permute.xlu1 %1512  ;;  %v1508_v49 = vpop.permute.xlu0 %1507  ;;  %v971_v30 = vadd.f32 %v951_v32, %v806_v11  ;;  %v973_v19 = vadd.f32 %v953_v53, %v808_v48  ;;  %v1280_v17 = vmul.f32 %v4959_v42, %v4914_v14  ;;  %v1281_v9 = vmul.f32 %v4959_v42, %v4922_v47  ;;  %v5180_v47 = vld [vmem:[%s6384_s1 + $0x8] ss:$0 sm:$0xff] }
 0x1a4   : > { %1757 = vperm.xlu1 %4358, %v1666_v7   ;;  %1752 = vperm.xlu0 %4357, %v1665_v63   ;;  %v1134_v54 = vadd.f32 %v1114_v59, %v969_v18  ;;  %v1118_v36 = vmul.f32 %v4874_v61, %v4817_v12  ;;  %v1609_v27 = vmul.f32 %v5158_v4, %v1508_v49  ;;  %v2400_v63 = vld [vmem:[%s4468_s15 + $0xcb] sm:$0xff]  ;;  %v2399_v12 = vld [vmem:[%s4468_s15 + $0xc3] sm:$0xff] }
 0x1a5   : > { %v1135_v58 = vadd.f32 %v1115_v44, %v970_v52  ;;  %v1136_v8 = vadd.f32 %v1116_v3, %v971_v30  ;;  %v1445_v7 = vmul.f32 %v5145_v55, %v4991_v22  ;;  %v1446_v14 = vmul.f32 %v5145_v55, %v4999_v60  ;;  %v6469_v44 = vld [vmem:[#allocation60_spill] sm:$0xff] }
 0x1a6   : > { %v1299_v37 = vadd.f32 %v1279_v33, %v1134_v54  ;;  %v1137_v41 = vadd.f32 %v1117_v21, %v972_v43  ;;  %v1282_v2 = vmul.f32 %v4959_v42, %v4920_v57  ;;  %v1283_v59 = vmul.f32 %v4959_v42, %v4928_v38  ;;  %v6470_v43 = vld [vmem:[#allocation18_spill] sm:$0xff] }
 0x1a7   : > { %v1523_v6 = vpop.permute.xlu1 %1522  ;;  %v1518_v1 = vpop.permute.xlu0 %1517  ;;  %v1300_v11 = vadd.f32 %v1280_v17, %v1135_v58  ;;  %v1301_v22 = vadd.f32 %v1281_v9, %v1136_v8  ;;  %v1610_v60 = vmul.f32 %v5158_v4, %v1513_v39  ;;  %v1138_v18 = vadd.f32 %v1118_v36, %v973_v19  ;;  %v5198_v39 = vld [vmem:[%s6385_s2] ss:$0 sm:$0xff]  ;;  %v6471_v8 = vld [vmem:[#allocation19_spill] sm:$0xff] }
 0x1a8   : > { %2421 = vperm.xlu1 %4358, %v2398_v35   ;;  %2416 = vperm.xlu0 %4357, %v2397_v56   ;;  %v1464_v25 = vadd.f32 %v1444_v40, %v1299_v37  ;;  %v1611_v32 = vmul.f32 %v5158_v4, %v1518_v1  ;;  %v1447_v38 = vmul.f32 %v5145_v55, %v4997_v46  ;;  %v2402_v35 = vld [vmem:[%s4468_s15 + $0xdb] sm:$0xff]  ;;  %v2401_v56 = vld [vmem:[%s4468_s15 + $0xd3] sm:$0xff] }
 0x1a9   : > { %v1465_v57 = vadd.f32 %v1445_v7, %v1300_v11  ;;  %v1466_v52 = vadd.f32 %v1446_v14, %v1301_v22  ;;  %v1448_v3 = vmul.f32 %v5145_v55, %v6469_v44  ;;  %v791_v54 = vmul.f32 %v4724_v16, %v6470_v43  ;;  %v6472_v14 = vld [vmem:[#allocation20_spill] sm:$0xff] }
 0x1aa   : > { %v1629_v33 = vadd.f32 %v1609_v27, %v1464_v25  ;;  %v1302_v21 = vadd.f32 %v1282_v2, %v1137_v41  ;;  %v1303_v40 = vadd.f32 %v1283_v59, %v1138_v18  ;;  %v1612_v46 = vmul.f32 %v5158_v4, %v1523_v6  ;;  %v1888_v41 = vld [vmem:[%s4468_s15 + $0xd8] sm:$0xff] }
 0x1ab   : > { %v1673_v53 = vpop.permute.xlu1 %1672  ;;  %v1528_v49 = vpop.permute.xlu0 %1527  ;;  %v1630_v19 = vadd.f32 %v1610_v60, %v1465_v57  ;;  %v1631_v17 = vadd.f32 %v1611_v32, %v1466_v52  ;;  %v790_v7 = vmul.f32 %v4724_v16, %v6471_v8  ;;  %v793_v6 = vmul.f32 %v4724_v16, %v6472_v14  ;;  %v6473_v2 = vld [vmem:[#allocation21_spill] sm:$0xff]  ;;  %v2403_v60 = vld [vmem:[%s4468_s15 + $0xe3] sm:$0xff] }
 0x1ac   : > { %v1774_v48 = vmul.f32 %v5180_v47, %v1673_v53  ;;  %2431 = vperm.xlu1 %4358, %v2400_v63   ;;  %2426 = vperm.xlu0 %4357, %v2399_v12   ;;  %v1613_v9 = vmul.f32 %v5158_v4, %v1528_v49  ;;  %v1467_v63 = vadd.f32 %v1447_v38, %v1302_v21  ;;  %v6474_v32 = vld [vmem:[#allocation22_spill] sm:$0xff]  ;;  %v6475_v49 = vld [vmem:[#allocation23_spill] sm:$0xff]  ;;  %v6476_v21 = vld [vmem:[#allocation24_spill] sm:$0xff] }
 0x1ad   : > { %v1468_v12 = vadd.f32 %v1448_v3, %v1303_v40  ;;  %v792_v59 = vmul.f32 %v4724_v16, %v6473_v2  ;;  %v795_v53 = vmul.f32 %v4724_v16, %v6474_v32  ;;  %v794_v18 = vmul.f32 %v4724_v16, %v6475_v49  ;;  %v6481_v2 = vld [vmem:[#allocation29_spill] sm:$0xff]  ;;  %v1891_v49 = vld [vmem:[%s4468_s15 + $0xf0] sm:$0xff] }
 0x1ae   : > { %v1794_v30 = vadd.f32 %v1774_v48, %v1629_v33  ;;  %v1632_v33 = vadd.f32 %v1612_v46, %v1467_v63  ;;  %v810_v43 = vadd.f32 %v790_v7, %v5098_v23  ;;  %v797_v40 = vmul.f32 %v4724_v16, %v6476_v21  ;;  %v1890_v46 = vld [vmem:[%s4468_s15 + $0xe8] sm:$0xff] }
 0x1af   : > { %v1683_v1 = vpop.permute.xlu1 %1682  ;;  %v1678_v36 = vpop.permute.xlu0 %1677  ;;  %v1633_v48 = vadd.f32 %v1613_v9, %v1468_v12  ;;  %v815_v14 = vadd.f32 %v795_v53, %v5108_v28  ;;  %v814_v63 = vadd.f32 %v794_v18, %v5118_v10  ;;  %v6480_v12 = vld [vmem:[#allocation28_spill] sm:$0xff]  ;;  %v958_v28 = vmul.f32 %v4777_v51, %v6481_v2 }
 0x1b0   : > { %v1821_v37 = vadd.f32 %v5198_v39, %v1794_v30  ;;  %v1776_v27 = vmul.f32 %v5180_v47, %v1683_v1  ;;  %v1775_v58 = vmul.f32 %v5180_v47, %v1678_v36  ;;  %2441 = vperm.xlu1 %4358, %v2402_v35   ;;  %2436 = vperm.xlu0 %4357, %v2401_v56   ;;  %v6477_v30 = vld [vmem:[#allocation25_spill] sm:$0xff] }
 0x1b1   : > { %v811_v56 = vadd.f32 %v791_v54, %v5090_v31  ;;  %v6478_v31 = vld [vmem:[#allocation26_spill] sm:$0xff]  ;;  %v6479_v54 = vld [vmem:[#allocation27_spill] sm:$0xff] }
 0x1b2   : > { %v1841_v25 = vmax.f32 %v1821_v37, 0.0  ;;  %v1796_v11 = vadd.f32 %v1776_v27, %v1631_v17  ;;  %v1795_v22 = vadd.f32 %v1775_v58, %v1630_v19  ;;  %v796_v19 = vmul.f32 %v4724_v16, %v6477_v30  ;;  %v1889_v37 = vld [vmem:[%s4468_s15 + $0xe0] sm:$0xff] }
 0x1b3   : > { %v1693_v57 = vpop.permute.xlu1 %1692  ;;  %v1688_v38 = vpop.permute.xlu0 %1687  ;;  %v813_v27 = vadd.f32 %v793_v6, %v5100_v15  ;;  %v812_v58 = vadd.f32 %v792_v59, %v5106_v62  ;;  %v954_v23 = vmul.f32 %v4777_v51, %v6478_v31  ;;  %v956_v8 = vmul.f32 %v4777_v51, %v6479_v54  ;;  %v6482_v59 = vld [vmem:[#allocation30_spill] sm:$0xff] }
 0x1b4   : > { %1861 = vst.msk [vmem:[#allocation2] sm:$0xff] %vm334_vm0, %v1841_v25  ;;  %v1823_v52 = vadd.f32 %v5198_v39, %v1796_v11  ;;  %v1822_v44 = vadd.f32 %v5198_v39, %v1795_v22  ;;  %v1778_v3 = vmul.f32 %v5180_v47, %v1693_v57  ;;  %v1777_v35 = vmul.f32 %v5180_v47, %v1688_v38  ;;  %v1892_v25 = vld [vmem:[%s4468_s15 + $0xf8] sm:$0xff]  ;;  %v6483_v22 = vld [vmem:[#allocation31_spill] sm:$0xff] }
 0x1b5   : > { %1935 = vperm.xlu1 %4358, %v1888_v41   ;;  %2446 = vperm.xlu0 %4357, %v2403_v60   ;;  %v817_v6 = vadd.f32 %v797_v40, %v5124_v34  ;;  %v955_v41 = vmul.f32 %v4777_v51, %v6480_v12  ;;  %v957_v10 = vmul.f32 %v4777_v51, %v6482_v59  ;;  %v6485_v57 = vld [vmem:[#allocation33_spill] sm:$0xff]  ;;  %v6488_v40 = vld [vmem:[#allocation36_spill] sm:$0xff] }
 0x1b6   : > { %v1843_v17 = vmax.f32 %v1823_v52, 0.0  ;;  %v1842_v9 = vmax.f32 %v1822_v44, 0.0  ;;  %v1798_v1 = vadd.f32 %v1778_v3, %v1633_v48  ;;  %v1797_v36 = vadd.f32 %v1777_v35, %v1632_v33  ;;  %v6484_v33 = vld [vmem:[#allocation32_spill] sm:$0xff]  ;;  %v6487_v35 = vld [vmem:[#allocation35_spill] sm:$0xff] }
 0x1b7   : > { %v5240_v7 = vpop.permute.xlu1 %1537  ;;  %v5242_v16 = vpop.permute.xlu0 %1532  ;;  %v816_v11 = vadd.f32 %v796_v19, %v5126_v24  ;;  %v960_v60 = vmul.f32 %v4777_v51, %v6483_v22  ;;  %v974_v34 = vadd.f32 %v954_v23, %v5147_v13  ;;  %v976_v18 = vadd.f32 %v956_v8, %v811_v56  ;;  %v6486_v24 = vld [vmem:[#allocation34_spill] sm:$0xff]  ;;  %v6489_v56 = vld [vmem:[#allocation37_spill] sm:$0xff]  ;;  %v6492_v23 = vld [vmem:[#allocation40_spill] sm:$0xff] }
 0x1b8   : > { %1863 = vst.msk [vmem:[#allocation2 + $0x10] sm:$0xff] %vm334_vm0, %v1843_v17  ;;  %1862 = vst.msk [vmem:[#allocation2 + $0x8] sm:$0xff] %vm334_vm0, %v1842_v9  ;;  %v1825_v15 = vadd.f32 %v5198_v39, %v1798_v1  ;;  %v1824_v62 = vadd.f32 %v5198_v39, %v1797_v36  ;;  %v959_v48 = vmul.f32 %v4777_v51, %v6484_v33  ;;  %v6490_v9 = vld [vmem:[#allocation38_spill] sm:$0xff]  ;;  %v6493_v8 = vld [vmem:[#allocation41_spill] sm:$0xff] }
 0x1b9   : > { %1945 = vperm.xlu1 %4358, %v1890_v46   ;;  %1940 = vperm.xlu0 %4357, %v1889_v37   ;;  %v962_v38 = vmul.f32 %v4777_v51, %v6485_v57  ;;  %v961_v3 = vmul.f32 %v4777_v51, %v6486_v24  ;;  %v1119_v21 = vmul.f32 %v4874_v61, %v6487_v35  ;;  %v2006_v1 = vld [vmem:[%s4468_s15 + $0xe1] sm:$0xff]  ;;  %v6491_v37 = vld [vmem:[#allocation39_spill] sm:$0xff] }
 0x1ba   : > { %v1845_v32 = vmax.f32 %v1825_v15, 0.0  ;;  %v1844_v53 = vmax.f32 %v1824_v62, 0.0  ;;  %v1121_v13 = vmul.f32 %v4874_v61, %v6488_v40  ;;  %v1120_v30 = vmul.f32 %v4874_v61, %v6489_v56  ;;  %v2005_v62 = vld [vmem:[%s4468_s15 + $0xd9] sm:$0xff]  ;;  %v2007_v35 = vld [vmem:[%s4468_s15 + $0xe9] sm:$0xff]  ;;  %v6501_v56 = vld [vmem:[#allocation48_spill] sm:$0xff] }
 0x1bb   : > { %v5267_v52 = vpop.permute.xlu1 %1547  ;;  %v5269_v44 = vpop.permute.xlu0 %1542  ;;  %v975_v19 = vadd.f32 %v955_v41, %v810_v43  ;;  %v978_v46 = vadd.f32 %v958_v28, %v813_v27  ;;  %v977_v17 = vadd.f32 %v957_v10, %v812_v58  ;;  %v1123_v51 = vmul.f32 %v4874_v61, %v6490_v9  ;;  %v6494_v27 = vld [vmem:[#allocation42_spill] sm:$0xff]  ;;  %v6495_v41 = vld [vmem:[#allocation44_spill] sm:$0xff] }
 0x1bc   : > { %1865 = vst.msk [vmem:[#allocation2 + $0x20] sm:$0xff] %vm334_vm0, %v1845_v32  ;;  %1864 = vst.msk [vmem:[#allocation2 + $0x18] sm:$0xff] %vm334_vm0, %v1844_v53  ;;  %v980_v36 = vadd.f32 %v960_v60, %v815_v14  ;;  %v1122_v31 = vmul.f32 %v4874_v61, %v6491_v37  ;;  %v1125_v54 = vmul.f32 %v4874_v61, %v6492_v23  ;;  %v6497_v32 = vld [vmem:[#allocation45_spill] sm:$0xff] }
 0x1bd   : > { %1955 = vperm.xlu1 %4358, %v1892_v25   ;;  %1950 = vperm.xlu0 %4357, %v1891_v49   ;;  %v1124_v15 = vmul.f32 %v4874_v61, %v6493_v8  ;;  %v979_v12 = vadd.f32 %v959_v48, %v814_v63  ;;  %v982_v43 = vadd.f32 %v962_v38, %v817_v6  ;;  %v6496_v63 = vld [vmem:[#allocation43_spill] sm:$0xff]  ;;  %v6498_v49 = vld [vmem:[#allocation46_spill] sm:$0xff]  ;;  %v2008_v38 = vld [vmem:[%s4468_s15 + $0xf1] sm:$0xff] }
 0x1be   : > { %v1127_v58 = vmul.f32 %v4874_v61, %v6494_v27  ;;  %v1284_v2 = vmul.f32 %v4959_v42, %v6495_v41  ;;  %v981_v59 = vadd.f32 %v961_v3, %v816_v11  ;;  %v1139_v10 = vadd.f32 %v1119_v21, %v974_v34 }
 0x1bf   : > { %v5295_v14 = vpop.permute.xlu1 %1557  ;;  %v5297_v28 = vpop.permute.xlu0 %1552  ;;  %v1141_v25 = vadd.f32 %v1121_v13, %v976_v18  ;;  %v1140_v22 = vadd.f32 %v1120_v30, %v975_v19  ;;  %v1143_v60 = vadd.f32 %v1123_v51, %v978_v46  ;;  %v1126_v6 = vmul.f32 %v4874_v61, %v6496_v63  ;;  %v3117_v48 = vld [vmem:[#allocation2] ss:$2 sm:$0xff]  ;;  %v3119_v57 = vld [vmem:[#allocation2 + $0x1] ss:$2 sm:$0xff] }
 0x1c0   : > { %v1286_v53 = vmul.f32 %v4959_v42, %v6497_v32  ;;  %v1285_v33 = vmul.f32 %v4959_v42, %v6498_v49  ;;  %v1142_v11 = vadd.f32 %v1122_v31, %v977_v17  ;;  %v1145_v34 = vadd.f32 %v1125_v54, %v980_v36  ;;  %v6499_v18 = vld [vmem:[#allocation59_spill] sm:$0xff]  ;;  %v6502_v51 = vld [vmem:[#allocation49_spill] sm:$0xff] }
 0x1c1   : > { %2057 = vperm.xlu1 %4358, %v2006_v1   ;;  %2052 = vperm.xlu0 %4357, %v2005_v62   ;;  %v1144_v24 = vadd.f32 %v1124_v15, %v979_v12  ;;  %v1449_v3 = vmul.f32 %v5145_v55, %v6499_v18  ;;  %v1147_v21 = vadd.f32 %v1127_v58, %v982_v43  ;;  %v6500_v61 = vld [vmem:[#allocation47_spill] sm:$0xff]  ;;  %v5324_v62 = vld [vmem:[%s4468_s15 + $0xb4] sm:$0xff]  ;;  %v6503_v12 = vld [vmem:[#allocation50_spill] sm:$0xff] }
 0x1c2   : > { %v1304_v40 = vadd.f32 %v1284_v2, %v1139_v10  ;;  %v1288_v13 = vmul.f32 %v4959_v42, %v6500_v61  ;;  %v1287_v30 = vmul.f32 %v4959_v42, %v6501_v56  ;;  %v1290_v1 = vmul.f32 %v4959_v42, %v6502_v51  ;;  %v2009_v2 = vld [vmem:[%s4468_s15 + $0xf9] sm:$0xff] }
 0x1c3   : > { %v3122_v19 = vld [vmem:[#allocation2 + $0x12] ss:$2 sm:$0xff]  ;;  %v3124_v46 = vld [vmem:[#allocation2 + $0x13] ss:$2 sm:$0xff]  ;;  %v5313_v9 = vpop.permute.xlu1 %1567  ;;  %v5315_v17 = vpop.permute.xlu0 %1562  ;;  %v3120_v36 = vmax.f32 %v3117_v48, %v3119_v57  ;;  %v1614_v31 = vmul.f32 %v5158_v4, %v5242_v16  ;;  %v1146_v23 = vadd.f32 %v1126_v6, %v981_v59  ;;  %v1306_v54 = vadd.f32 %v1286_v53, %v1141_v25  ;;  %v6504_v59 = vld [vmem:[#allocation51_spill] sm:$0xff] }
 0x1c4   : > { %v3125_v37 = vmax.f32 %v3122_v19, %v3124_v46  ;;  %v1305_v8 = vadd.f32 %v1285_v33, %v1140_v22  ;;  %v1450_v15 = vmul.f32 %v5145_v55, %v5011_v26  ;;  %v1289_v43 = vmul.f32 %v4959_v42, %v6503_v12  ;;  %v6506_v48 = vld [vmem:[#allocation61_spill] sm:$0xff] }
 0x1c5   : > { %2067 = vperm.xlu1 %4358, %v2008_v38   ;;  %2062 = vperm.xlu0 %4357, %v2007_v35   ;;  %v1469_v27 = vadd.f32 %v1449_v3, %v1304_v40  ;;  %v1451_v58 = vmul.f32 %v5145_v55, %v5009_v45  ;;  %v1308_v16 = vadd.f32 %v1288_v13, %v1143_v60  ;;  %v6505_v60 = vld [vmem:[#allocation52_spill] sm:$0xff]  ;;  %v5349_v38 = vld [vmem:[%s4468_s15 + $0xc4] sm:$0xff]  ;;  %v5354_v35 = vld [vmem:[%s4468_s15 + $0xbc] sm:$0xff] }
 0x1c6   : > { %v3126_v41 = vmax.f32 %v3120_v36, %v3125_v37  ;;  %v1307_v10 = vadd.f32 %v1287_v30, %v1142_v11  ;;  %v1292_v25 = vmul.f32 %v4959_v42, %v6504_v59  ;;  %v1615_v26 = vmul.f32 %v5158_v4, %v5240_v7  ;;  %v6508_v36 = vld [vmem:[#allocation63_spill] sm:$0xff]  ;;  %v3212_v12 = vld [vmem:[#allocation3] sm:$0xff] }
 0x1c7   : > { %v1698_v22 = vpop.permute.xlu1 %1697  ;;  %v5335_v63 = vpop.permute.xlu0 %1572  ;;  %v1310_v6 = vadd.f32 %v1290_v1, %v1145_v34  ;;  %v1634_v32 = vadd.f32 %v1614_v31, %v1469_v27  ;;  %v1616_v45 = vmul.f32 %v5158_v4, %v5269_v44  ;;  %v1291_v49 = vmul.f32 %v4959_v42, %v6505_v60  ;;  %v6507_v34 = vld [vmem:[#allocation62_spill] sm:$0xff] }
 0x1c8   : > { %v1779_v53 = vmul.f32 %v5180_v47, %v1698_v22  ;;  %3127 = vst.msk [vmem:[#allocation3 + $0xb] sm:$0xff] %vm334_vm0, %v3126_v41  ;;  %v1470_v33 = vadd.f32 %v1450_v15, %v1305_v8  ;;  %v1453_v7 = vmul.f32 %v5145_v55, %v5014_v20  ;;  %v1452_v57 = vmul.f32 %v5145_v55, %v6506_v48  ;;  %v5371_v15 = vld [vmem:[%s4468_s15 + $0xcc] sm:$0xff]  ;;  %v5392_v48 = vld [vmem:[%s4468_s15 + $0xdc] sm:$0xff] }
 0x1c9   : > { %2549 = vperm.xlu1 %4358, %v5324_v62   ;;  %2072 = vperm.xlu0 %4357, %v2009_v2   ;;  %v1309_v44 = vadd.f32 %v1289_v43, %v1144_v24  ;;  %v1471_v11 = vadd.f32 %v1451_v58, %v1306_v54  ;;  %v1455_v18 = vmul.f32 %v5145_v55, %v6507_v34  ;;  %v6509_v22 = vld [vmem:[#allocation64_spill] sm:$0xff] }
 0x1ca   : > { %v1799_v3 = vadd.f32 %v1779_v53, %v1634_v32  ;;  %v1312_v40 = vadd.f32 %v1292_v25, %v1147_v21  ;;  %v1635_v42 = vadd.f32 %v1615_v26, %v1470_v33  ;;  %v1617_v20 = vmul.f32 %v5158_v4, %v5267_v52  ;;  %v5389_v53 = vld [vmem:[%s4468_s15 + $0xe4] sm:$0xff] }
 0x1cb   : > { %v1618_v61 = vmul.f32 %v5158_v4, %v5297_v28  ;;  %v1708_v13 = vpop.permute.xlu1 %1707  ;;  %v1703_v56 = vpop.permute.xlu0 %1702  ;;  %v1636_v24 = vadd.f32 %v1616_v45, %v1471_v11  ;;  %v1311_v21 = vadd.f32 %v1291_v49, %v1146_v23  ;;  %v1473_v51 = vadd.f32 %v1453_v7, %v1308_v16  ;;  %v5368_v28 = vld [vmem:[%s4468_s15 + $0xd4] sm:$0xff] }
 0x1cc   : > { %v1826_v30 = vadd.f32 %v5198_v39, %v1799_v3  ;;  %v1781_v19 = vmul.f32 %v5180_v47, %v1708_v13  ;;  %v1780_v46 = vmul.f32 %v5180_v47, %v1703_v56  ;;  %v1472_v1 = vadd.f32 %v1452_v57, %v1307_v10 }
 0x1cd   : > { %2559 = vperm.xlu1 %4358, %v5349_v38   ;;  %v1454_v52 = vmul.f32 %v5145_v55, %v6508_v36  ;;  %2554 = vperm.xlu0 %4357, %v5354_v35   ;;  %v1475_v37 = vadd.f32 %v1455_v18, %v1310_v6  ;;  %v1619_v23 = vmul.f32 %v5158_v4, %v5295_v14  ;;  %v6510_v6 = vld [vmem:[#allocation65_spill] sm:$0xff]  ;;  %v6511_v56 = vmov 0.0  }
 0x1ce   : > { %v1846_v31 = vmax.f32 %v1826_v30, 0.0  ;;  %v1801_v54 = vadd.f32 %v1781_v19, %v1636_v24  ;;  %v1800_v8 = vadd.f32 %v1780_v46, %v1635_v42  ;;  %v1637_v43 = vadd.f32 %v1617_v20, %v1472_v1 }
 0x1cf   : > { %v1638_v27 = vadd.f32 %v1618_v61, %v1473_v51  ;;  %v1620_v58 = vmul.f32 %v5158_v4, %v5315_v17  ;;  %v1718_v41 = vpop.permute.xlu1 %1717  ;;  %v1713_v2 = vpop.permute.xlu0 %1712  ;;  %v3213_v16 = vld [vmem:[#allocation3 + $0x8] sm:$0xff]  ;;  %v1474_v14 = vadd.f32 %v1454_v52, %v1309_v44  ;;  %v1457_v17 = vmul.f32 %v5145_v55, %v6509_v22 }
 0x1d0   : > { %1866 = vst.msk [vmem:[#allocation2 + $0x28] sm:$0xff] %vm334_vm0, %v1846_v31  ;;  %v1828_v10 = vadd.f32 %v5198_v39, %v1801_v54  ;;  %v1827_v59 = vadd.f32 %v5198_v39, %v1800_v8  ;;  %v1783_v25 = vmul.f32 %v5180_v47, %v1718_v41  ;;  %v1782_v26 = vmul.f32 %v5180_v47, %v1713_v2  ;;  %v5428_v2 = vld [vmem:[%s4468_s15 + $0xf2] sm:$0xff] }
 0x1d1   : > { %2569 = vperm.xlu1 %4358, %v5368_v28   ;;  %v1456_v32 = vmul.f32 %v5145_v55, %v6510_v6  ;;  %2564 = vperm.xlu0 %4357, %v5371_v15   ;;  %v3225_v45 = vpack.c.bf16 %v3213_v16, %v3212_v12  ;;  %v1639_v57 = vadd.f32 %v1619_v23, %v1474_v14 }
 0x1d2   : > { %v1848_v60 = vmax.f32 %v1828_v10, 0.0  ;;  %v1847_v49 = vmax.f32 %v1827_v59, 0.0  ;;  %v1803_v33 = vadd.f32 %v1783_v25, %v1638_v27  ;;  %v1802_v7 = vadd.f32 %v1782_v26, %v1637_v43  ;;  %v5431_v59 = vld [vmem:[%s4468_s15 + $0xea] sm:$0xff] }
 0x1d3   : > { %v1621_v44 = vmul.f32 %v5158_v4, %v5313_v9  ;;  %v1640_v11 = vadd.f32 %v1620_v58, %v1475_v37  ;;  %v1622_v34 = vmul.f32 %v5158_v4, %v5335_v63  ;;  %4284 = vmatmul.mubr.msk.bf16.vlgmr.msra.gmra.mxu0 %vm334_vm0, %v3225_v45  ;;  %v1728_v18 = vpop.permute.xlu1 %1727  ;;  %v1723_v3 = vpop.permute.xlu0 %1722  ;;  %v1477_v13 = vadd.f32 %v1457_v17, %v1312_v40 }
 0x1d4   : > { %1868 = vst.msk [vmem:[#allocation2 + $0x38] sm:$0xff] %vm334_vm0, %v1848_v60  ;;  %1867 = vst.msk [vmem:[#allocation2 + $0x30] sm:$0xff] %vm334_vm0, %v1847_v49  ;;  %v1830_v42 = vadd.f32 %v5198_v39, %v1803_v33  ;;  %v1829_v20 = vadd.f32 %v5198_v39, %v1802_v7  ;;  %v1785_v61 = vmul.f32 %v5180_v47, %v1728_v18  ;;  %4287 = vmatprep.mubr.msk.bf16.mxu0 %vm4386_vm1, %v6511_v56 }
 0x1d5   : > { %v1784_v9 = vmul.f32 %v5180_v47, %v1723_v3  ;;  %2579 = vperm.xlu1 %4358, %v5389_v53   ;;  %v1476_v63 = vadd.f32 %v1456_v32, %v1311_v21  ;;  %2574 = vperm.xlu0 %4357, %v5392_v48   ;;  %v1642_v1 = vadd.f32 %v1622_v34, %v1477_v13 }
 0x1d6   : > { %v1850_v24 = vmax.f32 %v1830_v42, 0.0  ;;  %v1849_v30 = vmax.f32 %v1829_v20, 0.0  ;;  %v1805_v19 = vadd.f32 %v1785_v61, %v1640_v11  ;;  %v5465_v42 = vld [vmem:[%s4468_s15 + $0xf4] sm:$0xff]  ;;  %v5468_v20 = vld [vmem:[%s4468_s15 + $0xec] sm:$0xff]  ;;  %v1503_v61 = vld [vmem:[%s4468_s15 + $0xbd] sm:$0xff] }
 0x1d7   : > { %v1804_v46 = vadd.f32 %v1784_v9, %v1639_v57  ;;  %v1641_v51 = vadd.f32 %v1621_v44, %v1476_v63  ;;  %v1738_v36 = vpop.permute.xlu1 %1737  ;;  %v1733_v52 = vpop.permute.xlu0 %1732  ;;  %v1502_v9 = vld [vmem:[%s4468_s15 + $0xb5] sm:$0xff] }
 0x1d8   : > { %1870 = vst.msk [vmem:[#allocation2 + $0x48] sm:$0xff] %vm334_vm0, %v1850_v24  ;;  %1869 = vst.msk [vmem:[#allocation2 + $0x40] sm:$0xff] %vm334_vm0, %v1849_v30  ;;  %v1832_v40 = vadd.f32 %v5198_v39, %v1805_v19  ;;  %v1787_v37 = vmul.f32 %v5180_v47, %v1738_v36  ;;  %v1786_v31 = vmul.f32 %v5180_v47, %v1733_v52  ;;  %v1894_v30 = vld [vmem:[%s4468_s15 + $0x108] sm:$0xff]  ;;  %v1893_v19 = vld [vmem:[%s4468_s15 + $0x100] sm:$0xff] }
 0x1d9   : > { %v1831_v21 = vadd.f32 %v5198_v39, %v1804_v46  ;;  %1437 = vperm.xlu1 %4358, %v5354_v35   ;;  %1432 = vperm.xlu0 %4357, %v5324_v62   ;;  %v1895_v36 = vld [vmem:[%s4468_s15 + $0x110] sm:$0xff] }
 0x1da   : > { %v1852_v54 = vmax.f32 %v1832_v40, 0.0  ;;  %v1807_v12 = vadd.f32 %v1787_v37, %v1642_v1  ;;  %v1806_v43 = vadd.f32 %v1786_v31, %v1641_v51  ;;  %v1896_v1 = vld [vmem:[%s4468_s15 + $0x118] sm:$0xff]  ;;  %v2010_v37 = vld [vmem:[%s4468_s15 + $0x101] sm:$0xff] }
 0x1db   : > { %v1851_v8 = vmax.f32 %v1831_v21, 0.0  ;;  %v5417_v23 = vpop.permute.xlu1 %1905  ;;  %v5419_v27 = vpop.permute.xlu0 %1900  ;;  %v3129_v62 = vld [vmem:[#allocation2 + $0x24] ss:$2 sm:$0xff]  ;;  %v3131_v41 = vld [vmem:[#allocation2 + $0x25] ss:$2 sm:$0xff] }
 0x1dc   : > { %1872 = vst.msk [vmem:[#allocation2 + $0x58] sm:$0xff] %vm334_vm0, %v1852_v54  ;;  %v1834_v58 = vadd.f32 %v5198_v39, %v1807_v12  ;;  %v1833_v35 = vadd.f32 %v5198_v39, %v1806_v43  ;;  %v3132_v17 = vmax.f32 %v3129_v62, %v3131_v41  ;;  %v2011_v21 = vld [vmem:[%s4468_s15 + $0x109] sm:$0xff]  ;;  %v2012_v12 = vld [vmem:[%s4468_s15 + $0x111] sm:$0xff] }
 0x1dd   : > { %1871 = vst.msk [vmem:[#allocation2 + $0x50] sm:$0xff] %vm334_vm0, %v1851_v8  ;;  %2190 = vperm.xlu1 %4358, %v5067_v5   ;;  %2185 = vperm.xlu0 %4357, %v5070_v29   ;;  %v5442_v29 = vld [vmem:[%s4468_s15 + $0xfa] sm:$0xff]  ;;  %v5510_v41 = vld [vmem:[%s4468_s15 + $0x102] sm:$0xff] }
 0x1de   : > { %v1854_v16 = vmax.f32 %v1834_v58, 0.0  ;;  %v1853_v10 = vmax.f32 %v1833_v35, 0.0  ;;  %v2013_v8 = vld [vmem:[%s4468_s15 + $0x119] sm:$0xff] }
 0x1df   : > { %v3134_v25 = vld [vmem:[#allocation2 + $0x36] ss:$2 sm:$0xff]  ;;  %v3136_v26 = vld [vmem:[#allocation2 + $0x37] ss:$2 sm:$0xff]  ;;  %v5433_v14 = vpop.permute.xlu1 %1915  ;;  %v5435_v22 = vpop.permute.xlu0 %1910 }
 0x1e0   : > { %v3137_v6 = vmax.f32 %v3134_v25, %v3136_v26  ;;  %1874 = vst.msk [vmem:[#allocation2 + $0x68] sm:$0xff] %vm334_vm0, %v1854_v16  ;;  %1873 = vst.msk [vmem:[#allocation2 + $0x60] sm:$0xff] %vm334_vm0, %v1853_v10  ;;  %v2796_v25 = vld [vmem:[%s4468_s15 + $0xc5] sm:$0xff] }
 0x1e1   : > { %2200 = vperm.xlu1 %4358, %v5428_v2   ;;  %2195 = vperm.xlu0 %4357, %v5431_v59   ;;  %v5518_v26 = vld [vmem:[%s4468_s15 + $0x10a] sm:$0xff] }
 0x1e2   : > { %v3138_v5 = vmax.f32 %v3132_v17, %v3137_v6 }
 0x1e3   : > { %v5444_v32 = vpop.permute.xlu1 %1925  ;;  %v5446_v45 = vpop.permute.xlu0 %1920 }
 0x1e4   : > { %3139 = vst.msk [vmem:[#allocation3 + $0x15] sm:$0xff] %vm334_vm0, %v3138_v5  ;;  %v3141_v60 = vld [vmem:[#allocation2 + $0x48] ss:$2 sm:$0xff]  ;;  %v3143_v49 = vld [vmem:[#allocation2 + $0x49] ss:$2 sm:$0xff] }
 0x1e5   : > { %2682 = vperm.xlu1 %4358, %v5349_v38   ;;  %2205 = vperm.xlu0 %4357, %v5442_v29   ;;  %v3144_v11 = vmax.f32 %v3141_v60, %v3143_v49  ;;  %v1459_v49 = vmul.f32 %v5145_v55, %v5082_v50  ;;  %v2802_v50 = vld [vmem:[%s4468_s15 + $0xf5] sm:$0xff] }
 0x1e7   : > { %v3146_v33 = vld [vmem:[#allocation2 + $0x5a] ss:$2 sm:$0xff]  ;;  %v3148_v7 = vld [vmem:[#allocation2 + $0x5b] ss:$2 sm:$0xff]  ;;  %v5451_v57 = vpop.permute.xlu1 %2017  ;;  %v5453_v44 = vpop.permute.xlu0 %1930 }
 0x1e8   : > { %v3149_v34 = vmax.f32 %v3146_v33, %v3148_v7  ;;  %v6512_v33 = vld [vmem:[#allocation8_spill] sm:$0xff] }
 0x1e9   : > { %2692 = vperm.xlu1 %4358, %v5368_v28   ;;  %2687 = vperm.xlu0 %4357, %v5371_v15   ;;  %v1458_v7 = vmul.f32 %v5145_v55, %v6512_v33  ;;  %v1668_v33 = vld [vmem:[%s4468_s15 + $0xbe] sm:$0xff] }
 0x1ea   : > { %v3150_v38 = vmax.f32 %v3144_v11, %v3149_v34  ;;  %v2799_v11 = vld [vmem:[%s4468_s15 + $0xdd] sm:$0xff] }
 0x1eb   : > { %v5457_v18 = vpop.permute.xlu1 %2027  ;;  %v5459_v3 = vpop.permute.xlu0 %2022  ;;  %v3214_v13 = vld [vmem:[#allocation3 + $0x10] sm:$0xff] }
 0x1ec   : > { %3151 = vst.msk [vmem:[#allocation3 + $0x1f] sm:$0xff] %vm334_vm0, %v3150_v38 }
 0x1ed   : > { %2702 = vperm.xlu1 %4358, %v5389_v53   ;;  %2697 = vperm.xlu0 %4357, %v5392_v48  }
 0x1ef   : > { %v5470_v28 = vpop.permute.xlu1 %2037  ;;  %v5472_v15 = vpop.permute.xlu0 %2032 }
 0x1f1   : > { %2712 = vperm.xlu1 %4358, %v5465_v42   ;;  %2707 = vperm.xlu0 %4357, %v5468_v20  }
 0x1f3   : > { %v5478_v53 = vpop.permute.xlu1 %2047  ;;  %v5480_v48 = vpop.permute.xlu0 %2042  ;;  %v3215_v63 = vld [vmem:[#allocation3 + $0x18] sm:$0xff] }
 0x1f4   : > { %v3226_v24 = vpack.c.bf16 %v3215_v63, %v3214_v13  ;;  %v1461_v13 = vmul.f32 %v5145_v55, %v5114_v0  ;;  %v6513_v63 = vld [vmem:[#allocation9_spill] sm:$0xff] }
 0x1f5   : > { %1602 = vperm.xlu1 %4358, %v1503_v61   ;;  %1597 = vperm.xlu0 %4357, %v1502_v9  }
 0x1f6   : > { %4288 = vmatmul.mubr.msk.bf16.gmra.mxu0 %vm334_vm0, %v3226_v24  ;;  %v1460_v24 = vmul.f32 %v5145_v55, %v6513_v63 }
 0x1f7   : > { %v5485_v46 = vpop.permute.xlu1 %2155  ;;  %v5487_v51 = vpop.permute.xlu0 %2150  ;;  %4291 = vmatprep.mubr.msk.bf16.mxu0 %vm4386_vm1, %v6511_v56 }
 0x1f9   : > { %1965 = vperm.xlu1 %4358, %v1894_v30   ;;  %1960 = vperm.xlu0 %4357, %v1893_v19   ;;  %v6514_v30 = vld [vmem:[#allocation53_spill] sm:$0xff] }
 0x1fa   : > { %v1479_v19 = vadd.f32 %v1459_v49, %v6514_v30 }
 0x1fb   : > { %v5493_v52 = vpop.permute.xlu1 %2165  ;;  %v5495_v40 = vpop.permute.xlu0 %2160 }
 0x1fd   : > { %1975 = vperm.xlu1 %4358, %v1896_v1   ;;  %1970 = vperm.xlu0 %4357, %v1895_v36   ;;  %v6515_v1 = vld [vmem:[#allocation54_spill] sm:$0xff] }
 0x1fe   : > { %v1478_v36 = vadd.f32 %v1458_v7, %v6515_v1 }
 0x1ff   : > { %v5499_v31 = vpop.permute.xlu1 %2175  ;;  %v5501_v54 = vpop.permute.xlu0 %2170 }
 0x201   : > { %2082 = vperm.xlu1 %4358, %v2011_v21   ;;  %2077 = vperm.xlu0 %4357, %v2010_v37   ;;  %v2801_v21 = vld [vmem:[%s4468_s15 + $0xed] sm:$0xff] }
 0x203   : > { %v1578_v43 = vpop.permute.xlu1 %1577  ;;  %v5505_v58 = vpop.permute.xlu0 %2180 }
 0x204   : > { %v1623_v61 = vmul.f32 %v5158_v4, %v1578_v43 }
 0x205   : > { %2092 = vperm.xlu1 %4358, %v2013_v8   ;;  %2087 = vperm.xlu0 %4357, %v2012_v12  }
 0x207   : > { %v1588_v35 = vpop.permute.xlu1 %1587  ;;  %v1583_v62 = vpop.permute.xlu0 %1582 }
 0x208   : > { %v1624_v9 = vmul.f32 %v5158_v4, %v1583_v62  ;;  %v1625_v37 = vmul.f32 %v5158_v4, %v1588_v35  ;;  %v1643_v62 = vadd.f32 %v1623_v61, %v1478_v36  ;;  %v1667_v35 = vld [vmem:[%s4468_s15 + $0xb6] sm:$0xff] }
 0x209   : > { %2323 = vperm.xlu1 %4358, %v5428_v2   ;;  %2318 = vperm.xlu0 %4357, %v5431_v59   ;;  %v2798_v2 = vld [vmem:[%s4468_s15 + $0xd5] sm:$0xff]  ;;  %v2797_v59 = vld [vmem:[%s4468_s15 + $0xcd] sm:$0xff] }
 0x20a   : > { %v1644_v0 = vadd.f32 %v1624_v9, %v1479_v19 }
 0x20b   : > { %v5512_v16 = vpop.permute.xlu1 %2283  ;;  %v1593_v10 = vpop.permute.xlu0 %1592 }
 0x20c   : > { %v1626_v8 = vmul.f32 %v5158_v4, %v1593_v10 }
 0x20d   : > { %2333 = vperm.xlu1 %4358, %v5510_v41   ;;  %2328 = vperm.xlu0 %4357, %v5442_v29   ;;  %v2800_v29 = vld [vmem:[%s4468_s15 + $0xe5] sm:$0xff] }
 0x20f   : > { %v5520_v17 = vpop.permute.xlu1 %2293  ;;  %v5522_v6 = vpop.permute.xlu0 %2288 }
 0x211   : > { %2815 = vperm.xlu1 %4358, %v2796_v25   ;;  %2338 = vperm.xlu0 %4357, %v5518_v26  }
 0x213   : > { %v5527_v5 = vpop.permute.xlu1 %2303  ;;  %v5529_v60 = vpop.permute.xlu0 %2298 }
 0x215   : > { %2825 = vperm.xlu1 %4358, %v2798_v2   ;;  %2820 = vperm.xlu0 %4357, %v2797_v59   ;;  %v6516_v2 = vld [vmem:[#allocation55_spill] sm:$0xff] }
 0x216   : > { %v1481_v59 = vadd.f32 %v1461_v13, %v6516_v2 }
 0x217   : > { %v5537_v34 = vpop.permute.xlu1 %2313  ;;  %v5539_v38 = vpop.permute.xlu0 %2308 }
 0x218   : > { %v1646_v4 = vadd.f32 %v1626_v8, %v1481_v59 }
 0x219   : > { %2835 = vperm.xlu1 %4358, %v2800_v29   ;;  %2830 = vperm.xlu0 %4357, %v2799_v11   ;;  %v6517_v29 = vld [vmem:[#allocation56_spill] sm:$0xff] }
 0x21a   : > { %v1480_v49 = vadd.f32 %v1460_v24, %v6517_v29 }
 0x21b   : > { %v1748_v12 = vpop.permute.xlu1 %1747  ;;  %v1743_v43 = vpop.permute.xlu0 %1742 }
 0x21c   : > { %v1789_v25 = vmul.f32 %v5180_v47, %v1748_v12  ;;  %v1788_v55 = vmul.f32 %v5180_v47, %v1743_v43  ;;  %v1645_v63 = vadd.f32 %v1625_v37, %v1480_v49  ;;  %v2146_v12 = vld [vmem:[%s4468_s15 + $0x11a] sm:$0xff]  ;;  %v2407_v49 = vld [vmem:[%s4468_s15 + $0x103] sm:$0xff] }
 0x21d   : > { %2845 = vperm.xlu1 %4358, %v2802_v50   ;;  %2840 = vperm.xlu0 %4357, %v2801_v21  }
 0x21e   : > { %v1809_v7 = vadd.f32 %v1789_v25, %v1644_v0  ;;  %v1808_v11 = vadd.f32 %v1788_v55, %v1643_v62  ;;  %v2145_v0 = vld [vmem:[%s4468_s15 + $0x112] sm:$0xff] }
 0x21f   : > { %v1758_v10 = vpop.permute.xlu1 %1757  ;;  %v1753_v30 = vpop.permute.xlu0 %1752 }
 0x220   : > { %v1836_v61 = vadd.f32 %v5198_v39, %v1809_v7  ;;  %v1835_v9 = vadd.f32 %v5198_v39, %v1808_v11  ;;  %v1791_v19 = vmul.f32 %v5180_v47, %v1758_v10  ;;  %v1790_v13 = vmul.f32 %v5180_v47, %v1753_v30  ;;  %v2929_v30 = vld [vmem:[%s4468_s15 + $0xc6] sm:$0xff] }
 0x221   : > { %1767 = vperm.xlu1 %4358, %v1668_v33   ;;  %1762 = vperm.xlu0 %4357, %v1667_v35   ;;  %v2406_v33 = vld [vmem:[%s4468_s15 + $0xfb] sm:$0xff] }
 0x222   : > { %v1856_v24 = vmax.f32 %v1836_v61, 0.0  ;;  %v1855_v50 = vmax.f32 %v1835_v9, 0.0  ;;  %v1811_v1 = vadd.f32 %v1791_v19, %v1646_v4  ;;  %v1810_v36 = vadd.f32 %v1790_v13, %v1645_v63  ;;  %v2408_v9 = vld [vmem:[%s4468_s15 + $0x10b] sm:$0xff] }
 0x223   : > { %v5563_v21 = vpop.permute.xlu1 %2421  ;;  %v5565_v37 = vpop.permute.xlu0 %2416 }
 0x224   : > { %1876 = vst.msk [vmem:[#allocation2 + $0x78] sm:$0xff] %vm334_vm0, %v1856_v24  ;;  %1875 = vst.msk [vmem:[#allocation2 + $0x70] sm:$0xff] %vm334_vm0, %v1855_v50  ;;  %v1838_v8 = vadd.f32 %v5198_v39, %v1811_v1  ;;  %v1837_v47 = vadd.f32 %v5198_v39, %v1810_v36  ;;  %v2405_v39 = vld [vmem:[%s4468_s15 + $0xf3] sm:$0xff] }
 0x225   : > { %2215 = vperm.xlu1 %4358, %v5518_v26   ;;  %2210 = vperm.xlu0 %4357, %v5510_v41   ;;  %v2404_v26 = vld [vmem:[%s4468_s15 + $0xeb] sm:$0xff]  ;;  %v2931_v24 = vld [vmem:[%s4468_s15 + $0xd6] sm:$0xff] }
 0x226   : > { %v1858_v43 = vmax.f32 %v1838_v8, 0.0  ;;  %v1857_v62 = vmax.f32 %v1837_v47, 0.0  ;;  %v2930_v50 = vld [vmem:[%s4468_s15 + $0xce] sm:$0xff]  ;;  %v2933_v8 = vld [vmem:[%s4468_s15 + $0xe6] sm:$0xff]  ;;  %v2932_v47 = vld [vmem:[%s4468_s15 + $0xde] sm:$0xff] }
 0x227   : > { %v5575_v25 = vpop.permute.xlu1 %2431  ;;  %v5577_v55 = vpop.permute.xlu0 %2426 }
 0x228   : > { %1878 = vst.msk [vmem:[#allocation2 + $0x88] sm:$0xff] %vm334_vm0, %v1858_v43  ;;  %1877 = vst.msk [vmem:[#allocation2 + $0x80] sm:$0xff] %vm334_vm0, %v1857_v62  ;;  %v3216_v62 = vld [vmem:[#allocation3 + $0x20] sm:$0xff] }
 0x229   : > { %2225 = vperm.xlu1 %4358, %v2146_v12   ;;  %2220 = vperm.xlu0 %4357, %v2145_v0  }
 0x22b   : > { %v5583_v2 = vpop.permute.xlu1 %2441  ;;  %v5585_v41 = vpop.permute.xlu0 %2436  ;;  %v3153_v59 = vld [vmem:[#allocation2 + $0x6c] ss:$2 sm:$0xff]  ;;  %v3155_v29 = vld [vmem:[#allocation2 + $0x6d] ss:$2 sm:$0xff] }
 0x22c   : > { %v3156_v63 = vmax.f32 %v3153_v59, %v3155_v29  ;;  %v2935_v29 = vld [vmem:[%s4468_s15 + $0xf6] sm:$0xff] }
 0x22d   : > { %2456 = vperm.xlu1 %4358, %v2405_v39   ;;  %2451 = vperm.xlu0 %4357, %v2404_v26  }
 0x22f   : > { %v3158_v7 = vld [vmem:[#allocation2 + $0x7e] ss:$2 sm:$0xff]  ;;  %v3160_v11 = vld [vmem:[#allocation2 + $0x7f] ss:$2 sm:$0xff] }
 0x230   : > { %v5589_v35 = vpop.permute.xlu1 %1935  ;;  %v3161_v4 = vmax.f32 %v3158_v7, %v3160_v11  ;;  %v5591_v10 = vpop.permute.xlu0 %2446 }
 0x231   : > { %6518 = vst [vmem:[#allocation10_spill] sm:$0xff] %v5589_v35  ;;  %2466 = vperm.xlu1 %4358, %v2407_v49   ;;  %2461 = vperm.xlu0 %4357, %v2406_v33   ;;  %v2934_v49 = vld [vmem:[%s4468_s15 + $0xee] sm:$0xff] }
 0x232   : > { %v3162_v61 = vmax.f32 %v3156_v63, %v3161_v4  ;;  %v2279_v4 = vld [vmem:[%s4468_s15 + $0x12a] sm:$0xff] }
 0x234   : > { %v5595_v19 = vpop.permute.xlu1 %1945  ;;  %3163 = vst.msk [vmem:[#allocation3 + $0x29] sm:$0xff] %vm334_vm0, %v3162_v61  ;;  %v5598_v13 = vpop.permute.xlu0 %1940 }
 0x235   : > { %6519 = vst [vmem:[#allocation11_spill] sm:$0xff] %v5595_v19  ;;  %6520 = vst [vmem:[#allocation12_spill] sm:$0xff] %v5598_v13  ;;  %2948 = vperm.xlu1 %4358, %v2929_v30   ;;  %2471 = vperm.xlu0 %4357, %v2408_v9   ;;  %v2278_v30 = vld [vmem:[%s4468_s15 + $0x122] sm:$0xff] }
 0x238   : > { %v5602_v1 = vpop.permute.xlu1 %1955  ;;  %v5604_v36 = vpop.permute.xlu0 %1950 }
 0x239   : > { %6521 = vst [vmem:[#allocation13_spill] sm:$0xff] %v5602_v1  ;;  %6522 = vst [vmem:[#allocation14_spill] sm:$0xff] %v5604_v36  ;;  %2958 = vperm.xlu1 %4358, %v2931_v24   ;;  %2953 = vperm.xlu0 %4357, %v2930_v50  }
 0x23b   : > { %v3217_v39 = vld [vmem:[#allocation3 + $0x28] sm:$0xff] }
 0x23c   : > { %v5608_v43 = vpop.permute.xlu1 %2057  ;;  %v5610_v26 = vpop.permute.xlu0 %2052  ;;  %v3227_v59 = vpack.c.bf16 %v3217_v39, %v3216_v62  ;;  %v2409_v62 = vld [vmem:[%s4468_s15 + $0x113] sm:$0xff] }
 0x23d   : > { %6523 = vst [vmem:[#allocation15_spill] sm:$0xff] %v5608_v43  ;;  %6524 = vst [vmem:[#allocation16_spill] sm:$0xff] %v5610_v26  ;;  %2968 = vperm.xlu1 %4358, %v2933_v8   ;;  %2963 = vperm.xlu0 %4357, %v2932_v47   ;;  %v2541_v39 = vld [vmem:[%s4468_s15 + $0x10c] sm:$0xff]  ;;  %v2807_v26 = vld [vmem:[%s4468_s15 + $0x11d] sm:$0xff] }
 0x23e   : > { %4292 = vmatmul.mubr.msk.bf16.gmra.mxu0 %vm334_vm0, %v3227_v59 }
 0x23f   : > { %4295 = vmatprep.mubr.msk.bf16.mxu0 %vm4386_vm1, %v6511_v56  ;;  %v6557_v56 = vld [vmem:[#allocation57_spill] sm:$0xff] }
 0x240   : > { %v5615_v33 = vpop.permute.xlu1 %2067  ;;  %v5619_v7 = vpop.permute.xlu0 %2062 }
 0x241   : > { %6525 = vst [vmem:[#allocation17_spill] sm:$0xff] %v5615_v33  ;;  %6526 = vst [vmem:[#allocation60_spill] sm:$0xff] %v5619_v7  ;;  %2978 = vperm.xlu1 %4358, %v2935_v29   ;;  %2973 = vperm.xlu0 %4357, %v2934_v49  }
 0x244   : > { %v5621_v11 = vpop.permute.xlu1 %2549  ;;  %v5623_v63 = vpop.permute.xlu0 %2072 }
 0x245   : > { %6527 = vst [vmem:[#allocation18_spill] sm:$0xff] %v5623_v63  ;;  %2348 = vperm.xlu1 %4358, %v2146_v12   ;;  %2343 = vperm.xlu0 %4357, %v2145_v0   ;;  %v2540_v12 = vld [vmem:[%s4468_s15 + $0x104] sm:$0xff]  ;;  %v2539_v0 = vld [vmem:[%s4468_s15 + $0xfc] sm:$0xff] }
 0x246   : > { %v2803_v63 = vld [vmem:[%s4468_s15 + $0xfd] sm:$0xff] }
 0x248   : > { %v5627_v61 = vpop.permute.xlu1 %2559  ;;  %v5629_v9 = vpop.permute.xlu0 %2554 }
 0x249   : > { %2358 = vperm.xlu1 %4358, %v2279_v4   ;;  %2353 = vperm.xlu0 %4357, %v2278_v30   ;;  %v2412_v30 = vld [vmem:[%s4468_s15 + $0x12b] sm:$0xff] }
 0x24c   : > { %v5631_v24 = vpop.permute.xlu1 %2569  ;;  %v5633_v50 = vpop.permute.xlu0 %2564 }
 0x24d   : > { %2589 = vperm.xlu1 %4358, %v5465_v42   ;;  %2584 = vperm.xlu0 %4357, %v5468_v20   ;;  %v2411_v42 = vld [vmem:[%s4468_s15 + $0x123] sm:$0xff]  ;;  %v2410_v20 = vld [vmem:[%s4468_s15 + $0x11b] sm:$0xff] }
 0x250   : > { %v5639_v8 = vpop.permute.xlu1 %2579  ;;  %v5641_v47 = vpop.permute.xlu0 %2574 }
 0x251   : > { %6528 = vst [vmem:[#allocation19_spill] sm:$0xff] %v5639_v8  ;;  %6529 = vst [vmem:[#allocation20_spill] sm:$0xff] %v5641_v47  ;;  %2599 = vperm.xlu1 %4358, %v2540_v12   ;;  %2594 = vperm.xlu0 %4357, %v2539_v0   ;;  %v5748_v47 = vld [vmem:[%s6384_s1] ss:$0 sm:$0xff] }
 0x254   : > { %v5645_v59 = vpop.permute.xlu1 %1437  ;;  %v5647_v29 = vpop.permute.xlu0 %1432 }
 0x255   : > { %2476 = vperm.xlu1 %4358, %v2409_v62   ;;  %2604 = vperm.xlu0 %4357, %v2541_v39  }
 0x258   : > { %v5651_v49 = vpop.permute.xlu1 %2190  ;;  %v5653_v4 = vpop.permute.xlu0 %2185 }
 0x259   : > { %6530 = vst [vmem:[#allocation21_spill] sm:$0xff] %v5651_v49  ;;  %6531 = vst [vmem:[#allocation22_spill] sm:$0xff] %v5653_v4  ;;  %2486 = vperm.xlu1 %4358, %v2411_v42   ;;  %2481 = vperm.xlu0 %4357, %v2410_v20   ;;  %v2674_v49 = vld [vmem:[%s4468_s15 + $0x11c] sm:$0xff]  ;;  %v2673_v4 = vld [vmem:[%s4468_s15 + $0x114] sm:$0xff] }
 0x25c   : > { %v5656_v1 = vpop.permute.xlu1 %2200  ;;  %v5658_v19 = vpop.permute.xlu0 %2195 }
 0x25d   : > { %6532 = vst [vmem:[#allocation23_spill] sm:$0xff] %v5656_v1  ;;  %6533 = vst [vmem:[#allocation24_spill] sm:$0xff] %v5658_v19  ;;  %2717 = vperm.xlu1 %4358, %v2539_v0   ;;  %2491 = vperm.xlu0 %4357, %v2412_v30   ;;  %v2804_v1 = vld [vmem:[%s4468_s15 + $0x105] sm:$0xff] }
 0x260   : > { %v5660_v62 = vpop.permute.xlu1 %2682  ;;  %v5662_v36 = vpop.permute.xlu0 %2205 }
 0x261   : > { %6534 = vst [vmem:[#allocation25_spill] sm:$0xff] %v5662_v36  ;;  %2727 = vperm.xlu1 %4358, %v2541_v39   ;;  %2722 = vperm.xlu0 %4357, %v2540_v12   ;;  %v2545_v39 = vld [vmem:[%s4468_s15 + $0x12c] sm:$0xff]  ;;  %v2544_v12 = vld [vmem:[%s4468_s15 + $0x124] sm:$0xff] }
 0x264   : > { %v5666_v42 = vpop.permute.xlu1 %2692  ;;  %v5668_v20 = vpop.permute.xlu0 %2687 }
 0x265   : > { %2737 = vperm.xlu1 %4358, %v2674_v49   ;;  %2732 = vperm.xlu0 %4357, %v2673_v4  }
 0x268   : > { %v5670_v0 = vpop.permute.xlu1 %2702  ;;  %v5672_v30 = vpop.permute.xlu0 %2697 }
 0x269   : > { %6535 = vst [vmem:[#allocation26_spill] sm:$0xff] %v5670_v0  ;;  %6536 = vst [vmem:[#allocation27_spill] sm:$0xff] %v5672_v30  ;;  %2614 = vperm.xlu1 %4358, %v2674_v49   ;;  %2609 = vperm.xlu0 %4357, %v2673_v4   ;;  %v2806_v49 = vld [vmem:[%s4468_s15 + $0x115] sm:$0xff]  ;;  %v2805_v4 = vld [vmem:[%s4468_s15 + $0x10d] sm:$0xff] }
 0x26a   : > { %v4372_v30 = vld [vmem:[%s6384_s1 + $0x6] ss:$0 sm:$0xff] }
 0x26c   : > { %v5676_v36 = vpop.permute.xlu1 %2712  ;;  %v5678_v19 = vpop.permute.xlu0 %2707 }
 0x26d   : > { %6537 = vst [vmem:[#allocation28_spill] sm:$0xff] %v5676_v36  ;;  %6538 = vst [vmem:[#allocation29_spill] sm:$0xff] %v5678_v19  ;;  %2624 = vperm.xlu1 %4358, %v2545_v39   ;;  %2619 = vperm.xlu0 %4357, %v2544_v12  }
 0x270   : > { %v5682_v7 = vpop.permute.xlu1 %1602  ;;  %v5684_v13 = vpop.permute.xlu0 %1597 }
 0x271   : > { %2855 = vperm.xlu1 %4358, %v2804_v1   ;;  %2850 = vperm.xlu0 %4357, %v2803_v63   ;;  %v2677_v1 = vld [vmem:[%s4468_s15 + $0x134] sm:$0xff] }
 0x274   : > { %v5688_v35 = vpop.permute.xlu1 %1965  ;;  %v5690_v33 = vpop.permute.xlu0 %1960 }
 0x275   : > { %6539 = vst [vmem:[#allocation30_spill] sm:$0xff] %v5688_v35  ;;  %6540 = vst [vmem:[#allocation31_spill] sm:$0xff] %v5690_v33  ;;  %2865 = vperm.xlu1 %4358, %v2806_v49   ;;  %2860 = vperm.xlu0 %4357, %v2805_v4   ;;  %v2936_v49 = vld [vmem:[%s4468_s15 + $0xfe] sm:$0xff] }
 0x276   : > { %v2678_v4 = vld [vmem:[%s4468_s15 + $0x13c] sm:$0xff] }
 0x278   : > { %v5693_v43 = vpop.permute.xlu1 %1975  ;;  %v5695_v19 = vpop.permute.xlu0 %1970 }
 0x279   : > { %6541 = vst [vmem:[#allocation32_spill] sm:$0xff] %v5693_v43  ;;  %6542 = vst [vmem:[#allocation33_spill] sm:$0xff] %v5695_v19  ;;  %2742 = vperm.xlu1 %4358, %v2544_v12   ;;  %2870 = vperm.xlu0 %4357, %v2807_v26   ;;  %v2938_v26 = vld [vmem:[%s4468_s15 + $0x10e] sm:$0xff]  ;;  %v2937_v12 = vld [vmem:[%s4468_s15 + $0x106] sm:$0xff] }
 0x27c   : > { %v5698_v63 = vpop.permute.xlu1 %2082  ;;  %v5700_v36 = vpop.permute.xlu0 %2077 }
 0x27d   : > { %6543 = vst [vmem:[#allocation34_spill] sm:$0xff] %v5698_v63  ;;  %6544 = vst [vmem:[#allocation35_spill] sm:$0xff] %v5700_v36  ;;  %2752 = vperm.xlu1 %4358, %v2677_v1   ;;  %2747 = vperm.xlu0 %4357, %v2545_v39   ;;  %v2940_v39 = vld [vmem:[%s4468_s15 + $0x11e] sm:$0xff]  ;;  %v2939_v1 = vld [vmem:[%s4468_s15 + $0x116] sm:$0xff] }
 0x280   : > { %v5704_v33 = vpop.permute.xlu1 %2092  ;;  %v5706_v43 = vpop.permute.xlu0 %2087 }
 0x281   : > { %6545 = vst [vmem:[#allocation36_spill] sm:$0xff] %v5704_v33  ;;  %6546 = vst [vmem:[#allocation37_spill] sm:$0xff] %v5706_v43  ;;  %2983 = vperm.xlu1 %4358, %v2936_v49   ;;  %2757 = vperm.xlu0 %4357, %v2678_v4   ;;  %v2809_v49 = vld [vmem:[%s4468_s15 + $0x12d] sm:$0xff]  ;;  %v2808_v4 = vld [vmem:[%s4468_s15 + $0x125] sm:$0xff] }
 0x284   : > { %v5710_v19 = vpop.permute.xlu1 %2323  ;;  %v5712_v35 = vpop.permute.xlu0 %2318 }
 0x285   : > { %6547 = vst [vmem:[#allocation38_spill] sm:$0xff] %v5710_v19  ;;  %6548 = vst [vmem:[#allocation39_spill] sm:$0xff] %v5712_v35  ;;  %2993 = vperm.xlu1 %4358, %v2938_v26   ;;  %2988 = vperm.xlu0 %4357, %v2937_v12   ;;  %v2811_v26 = vld [vmem:[%s4468_s15 + $0x13d] sm:$0xff]  ;;  %v2810_v12 = vld [vmem:[%s4468_s15 + $0x135] sm:$0xff] }
 0x288   : > { %v5716_v36 = vpop.permute.xlu1 %2333  ;;  %v5718_v33 = vpop.permute.xlu0 %2328 }
 0x289   : > { %6549 = vst [vmem:[#allocation40_spill] sm:$0xff] %v5716_v36  ;;  %6550 = vst [vmem:[#allocation41_spill] sm:$0xff] %v5718_v33  ;;  %3003 = vperm.xlu1 %4358, %v2940_v39   ;;  %2998 = vperm.xlu0 %4357, %v2939_v1   ;;  %v2942_v39 = vld [vmem:[%s4468_s15 + $0x12e] sm:$0xff]  ;;  %v2941_v1 = vld [vmem:[%s4468_s15 + $0x126] sm:$0xff] }
 0x28c   : > { %v5722_v43 = vpop.permute.xlu1 %2815  ;;  %v5724_v19 = vpop.permute.xlu0 %2338 }
 0x28d   : > { %6551 = vst [vmem:[#allocation42_spill] sm:$0xff] %v5724_v19  ;;  %2880 = vperm.xlu1 %4358, %v2809_v49   ;;  %2875 = vperm.xlu0 %4357, %v2808_v4   ;;  %v2944_v19 = vld [vmem:[%s4468_s15 + $0x13e] sm:$0xff] }
 0x290   : > { %v5728_v35 = vpop.permute.xlu1 %2825  ;;  %v5730_v36 = vpop.permute.xlu0 %2820 }
 0x291   : > { %6552 = vst [vmem:[#allocation44_spill] sm:$0xff] %v5730_v36  ;;  %2890 = vperm.xlu1 %4358, %v2811_v26   ;;  %2885 = vperm.xlu0 %4357, %v2810_v12   ;;  %v1463_v26 = vmul.f32 %v4372_v30, %v5645_v59  ;;  %v2943_v12 = vld [vmem:[%s4468_s15 + $0x136] sm:$0xff]  ;;  %v4373_v59 = vld [vmem:[%s6384_s1 + $0x7] ss:$0 sm:$0xff]  ;;  %v1982_v36 = vmul.f32 %v5748_v47, %v5419_v27 }
 0x293   : > { %v3295_v33 = vpop.f32.mrf.mxu0  ;;  %v1483_v0 = vadd.f32 %v1463_v26, %v6557_v56  ;;  %v4374_v56 = vld [vmem:[%s6384_s1 + $0x8] ss:$0 sm:$0xff] }
 0x294   : > { %v5734_v63 = vpop.permute.xlu1 %2835  ;;  %3350 = vst.msk [vmem:[#allocation4] sm:$0xff] %vm3349_vm2, %v3295_v33  ;;  %v5737_v49 = vpop.permute.xlu0 %2830  ;;  %v1462_v33 = vmul.f32 %v4372_v30, %v5647_v29  ;;  %v1627_v29 = vmul.f32 %v4373_v59, %v5684_v13  ;;  %v1985_v13 = vmul.f32 %v5748_v47, %v5433_v14  ;;  %v1986_v14 = vmul.f32 %v5748_v47, %v5446_v45 }
 0x295   : > { %6553 = vst [vmem:[#allocation43_spill] sm:$0xff] %v5734_v63  ;;  %6554 = vst [vmem:[#allocation45_spill] sm:$0xff] %v5737_v49  ;;  %3013 = vperm.xlu1 %4358, %v2942_v39   ;;  %v4285_v4 = vpop.f32.mrf.mxu0  ;;  %3008 = vperm.xlu0 %4357, %v2941_v1   ;;  %v5756_v39 = vld [vmem:[%s6384_s1 + $0x1] ss:$0 sm:$0xff]  ;;  %v1628_v1 = vmul.f32 %v4373_v59, %v5682_v7 }
 0x296   : > { %v2099_v7 = vmul.f32 %v5756_v39, %v5451_v57  ;;  %v1984_v57 = vmul.f32 %v5748_v47, %v5435_v22 }
 0x297   : > { %v3298_v63 = vpop.f32.mrf.mxu0 }
 0x298   : > { %v5751_v49 = vpop.permute.xlu1 %2845  ;;  %3351 = vst.msk [vmem:[#allocation4 + $0x8] sm:$0xff] %vm3349_vm2, %v3298_v63  ;;  %v5763_v4 = vpop.permute.xlu0 %2840  ;;  %v2101_v63 = vmul.f32 %v5756_v39, %v5457_v18  ;;  %v1987_v18 = vmul.f32 %v5748_v47, %v5444_v32  ;;  %v2102_v32 = vmul.f32 %v5756_v39, %v5472_v15 }
 0x299   : > { %6555 = vst [vmem:[#allocation46_spill] sm:$0xff] %v5751_v49  ;;  %6556 = vst [vmem:[#allocation59_spill] sm:$0xff] %v5763_v4  ;;  %3023 = vperm.xlu1 %4358, %v2944_v19   ;;  %v4286_v30 = vpop.f32.mrf.mxu0  ;;  %3018 = vperm.xlu0 %4357, %v2943_v12   ;;  %v1983_v49 = vmul.f32 %v5748_v47, %v5417_v23  ;;  %v6558_v4 = vld [vmem:[#allocation58_spill] sm:$0xff]  ;;  %v2100_v23 = vmul.f32 %v5756_v39, %v5459_v3 }
 0x29a   : > { %v1482_v19 = vadd.f32 %v1462_v33, %v6558_v4  ;;  %v1648_v12 = vadd.f32 %v1628_v1, %v1483_v0  ;;  %v1988_v3 = vmul.f32 %v5748_v47, %v5453_v44  ;;  %v2103_v0 = vmul.f32 %v5756_v39, %v5470_v28 }
 0x29b   : > { %v2115_v1 = vadd.f32 %v2099_v7, %v1982_v36  ;;  %v2117_v4 = vadd.f32 %v2101_v63, %v1984_v57  ;;  %v2105_v44 = vmul.f32 %v5756_v39, %v5478_v53  ;;  %v2104_v28 = vmul.f32 %v5756_v39, %v5480_v48  ;;  %v5821_v48 = vld [vmem:[%s6384_s1 + $0x3] ss:$0 sm:$0xff]  ;;  %v5834_v57 = vld [vmem:[%s6384_s1 + $0x4] ss:$0 sm:$0xff] }
 0x29c   : > { %v1768_v8 = vpop.permute.xlu1 %1767  ;;  %v1763_v26 = vpop.permute.xlu0 %1762  ;;  %v1647_v33 = vadd.f32 %v1627_v29, %v1482_v19  ;;  %v2116_v19 = vadd.f32 %v2100_v23, %v1983_v49  ;;  %v2119_v23 = vadd.f32 %v2103_v0, %v1986_v14 }
 0x29d   : > { %v1793_v27 = vmul.f32 %v4374_v56, %v1768_v8  ;;  %v1792_v59 = vmul.f32 %v4374_v56, %v1763_v26  ;;  %v5796_v8 = vld [vmem:[%s6384_s1 + $0x2] ss:$0 sm:$0xff]  ;;  %v2118_v26 = vadd.f32 %v2102_v32, %v1985_v13  ;;  %v2120_v14 = vadd.f32 %v2104_v28, %v1987_v18  ;;  %v5850_v18 = vld [vmem:[%s6384_s1 + $0x5] ss:$0 sm:$0xff] }
 0x29e   : > { %v2233_v7 = vmul.f32 %v5796_v8, %v5485_v46  ;;  %v2232_v49 = vmul.f32 %v5796_v8, %v5487_v51  ;;  %v2235_v53 = vmul.f32 %v5796_v8, %v5493_v52  ;;  %v2234_v56 = vmul.f32 %v5796_v8, %v5495_v40 }
 0x29f   : > { %v1813_v22 = vadd.f32 %v1793_v27, %v1648_v12  ;;  %v1812_v29 = vadd.f32 %v1792_v59, %v1647_v33  ;;  %v3374_v45 = vld [vmem:[#allocation4 + $0x1] sm:$0xff]  ;;  %v4375_v12 = vld [vmem:[%s6385_s2] ss:$0 sm:$0xff]  ;;  %v2237_v27 = vmul.f32 %v5796_v8, %v5499_v31  ;;  %v2236_v51 = vmul.f32 %v5796_v8, %v5501_v54 }
 0x2a0   : > { %v5800_v30 = vpop.permute.xlu1 %2215  ;;  %3394 = vrot.lane.b32.xlu0 %v3374_v45, %s4387_s8  ;;  %v5810_v15 = vpop.permute.xlu0 %2210  ;;  %v2238_v52 = vmul.f32 %v5796_v8, %v5505_v58  ;;  %v2121_v40 = vadd.f32 %v2105_v44, %v1988_v3  ;;  %v2365_v31 = vmul.f32 %v5821_v48, %v5512_v16  ;;  %v2367_v13 = vmul.f32 %v5821_v48, %v5520_v17  ;;  %v5864_v44 = vld [vmem:[%s6384_s1 + $0x6] ss:$0 sm:$0xff] }
 0x2a1   : > { %v1840_v36 = vadd.f32 %v4375_v12, %v1813_v22  ;;  %v1839_v63 = vadd.f32 %v4375_v12, %v1812_v29  ;;  %v2249_v58 = vadd.f32 %v2233_v7, %v2116_v19  ;;  %v2248_v0 = vadd.f32 %v2232_v49, %v2115_v1 }
 0x2a2   : > { %v2251_v22 = vadd.f32 %v2235_v53, %v2118_v26  ;;  %v2366_v32 = vmul.f32 %v5821_v48, %v5522_v6  ;;  %v2250_v16 = vadd.f32 %v2234_v56, %v2117_v4  ;;  %v2253_v3 = vadd.f32 %v2237_v27, %v2120_v14  ;;  %v5883_v53 = vld [vmem:[%s6384_s1 + $0x7] ss:$0 sm:$0xff] }
 0x2a3   : > { %v1860_v46 = vmax.f32 %v1840_v36, 0.0  ;;  %v1859_v33 = vmax.f32 %v1839_v63, 0.0  ;;  %v2369_v17 = vmul.f32 %v5821_v48, %v5527_v5  ;;  %v2498_v29 = vmul.f32 %v5834_v57, %v5565_v37 }
 0x2a4   : > { %v5836_v59 = vpop.permute.xlu1 %2225  ;;  %v5843_v54 = vpop.permute.xlu0 %2220  ;;  %v2252_v1 = vadd.f32 %v2236_v51, %v2119_v23  ;;  %v2254_v45 = vadd.f32 %v2238_v52, %v2121_v40  ;;  %v2368_v6 = vmul.f32 %v5821_v48, %v5529_v60  ;;  %v2371_v19 = vmul.f32 %v5821_v48, %v5537_v34 }
 0x2a5   : > { %1880 = vst.msk [vmem:[#allocation2 + $0x98] sm:$0xff] %vm334_vm0, %v1860_v46  ;;  %1879 = vst.msk [vmem:[#allocation2 + $0x90] sm:$0xff] %vm334_vm0, %v1859_v33  ;;  %v2381_v28 = vadd.f32 %v2365_v31, %v2248_v0  ;;  %v2383_v5 = vadd.f32 %v2367_v13, %v2250_v16  ;;  %v2370_v37 = vmul.f32 %v5821_v48, %v5539_v38 }
 0x2a6   : > { %v2631_v12 = vmul.f32 %v5850_v18, %v5621_v11  ;;  %v2382_v60 = vadd.f32 %v2366_v32, %v2249_v58  ;;  %v2499_v34 = vmul.f32 %v5834_v57, %v5563_v21  ;;  %v2501_v7 = vmul.f32 %v5834_v57, %v5575_v25 }
 0x2a7   : > { %v2500_v49 = vmul.f32 %v5834_v57, %v5577_v55  ;;  %v2385_v38 = vadd.f32 %v2369_v17, %v2252_v1  ;;  %v2514_v63 = vadd.f32 %v2498_v29, %v2381_v28  ;;  %v2503_v11 = vmul.f32 %v5834_v57, %v5583_v2 }
 0x2a8   : > { %v5866_v4 = vpop.permute.xlu1 %2456  ;;  %v5872_v36 = vpop.permute.xlu0 %2451  ;;  %v2764_v23 = vmul.f32 %v5864_v44, %v5660_v62  ;;  %v2384_v21 = vadd.f32 %v2368_v6, %v2251_v22  ;;  %v2387_v56 = vadd.f32 %v2371_v19, %v2254_v45  ;;  %v2502_v25 = vmul.f32 %v5834_v57, %v5585_v41  ;;  %v6560_v45 = vld [vmem:[#allocation44_spill] sm:$0xff] }
 0x2a9   : > { %v2504_v55 = vmul.f32 %v5834_v57, %v5591_v10  ;;  %v2386_v46 = vadd.f32 %v2370_v37, %v2253_v3  ;;  %v2647_v26 = vadd.f32 %v2631_v12, %v2514_v63  ;;  %v2633_v51 = vmul.f32 %v5850_v18, %v5627_v61  ;;  %v5906_v10 = vld [vmem:[%s6384_s1 + $0x8] ss:$0 sm:$0xff] }
 0x2aa   : > { %v2897_v2 = vmul.f32 %v5883_v53, %v5722_v43  ;;  %v2515_v62 = vadd.f32 %v2499_v34, %v2382_v60  ;;  %v2517_v33 = vadd.f32 %v2501_v7, %v2384_v21  ;;  %v2516_v40 = vadd.f32 %v2500_v49, %v2383_v5  ;;  %v6563_v60 = vld [vmem:[#allocation20_spill] sm:$0xff]  ;;  %v6564_v49 = vld [vmem:[#allocation27_spill] sm:$0xff] }
 0x2ab   : > { %v2632_v41 = vmul.f32 %v5850_v18, %v5629_v9  ;;  %v2519_v14 = vadd.f32 %v2503_v11, %v2386_v46  ;;  %v2635_v61 = vmul.f32 %v5850_v18, %v5631_v24  ;;  %v2780_v31 = vadd.f32 %v2764_v23, %v2647_v26  ;;  %v6565_v23 = vld [vmem:[#allocation43_spill] sm:$0xff] }
 0x2ac   : > { %v5893_v27 = vpop.permute.xlu1 %2466  ;;  %v5899_v52 = vpop.permute.xlu0 %2461  ;;  %v2766_v43 = vmul.f32 %v5864_v44, %v5666_v42  ;;  %v2518_v13 = vadd.f32 %v2502_v25, %v2385_v38  ;;  %v2520_v58 = vadd.f32 %v2504_v55, %v2387_v56  ;;  %v2634_v0 = vmul.f32 %v5850_v18, %v5633_v50  ;;  %v6559_v42 = vld [vmem:[#allocation19_spill] sm:$0xff] }
 0x2ad   : > { %v2765_v9 = vmul.f32 %v5864_v44, %v5668_v20  ;;  %v2649_v32 = vadd.f32 %v2633_v51, %v2516_v40  ;;  %v2913_v16 = vadd.f32 %v2897_v2, %v2780_v31  ;;  %v2899_v3 = vmul.f32 %v5883_v53, %v5728_v35  ;;  %v5928_v20 = vld [vmem:[%s6385_s2] ss:$0 sm:$0xff]  ;;  %v6561_v35 = vld [vmem:[#allocation26_spill] sm:$0xff]  ;;  %v6567_v40 = vld [vmem:[#allocation28_spill] sm:$0xff] }
 0x2ae   : > { %v2648_v29 = vadd.f32 %v2632_v41, %v2515_v62  ;;  %v2637_v1 = vmul.f32 %v5850_v18, %v6559_v42  ;;  %v2898_v50 = vmul.f32 %v5883_v53, %v6560_v45  ;;  %v2651_v6 = vadd.f32 %v2635_v61, %v2518_v13  ;;  %v6566_v51 = vld [vmem:[#allocation45_spill] sm:$0xff] }
 0x2af   : > { %v2782_v19 = vadd.f32 %v2766_v43, %v2649_v32  ;;  %v2768_v28 = vmul.f32 %v5864_v44, %v6561_v35  ;;  %v6562_v37 = vmov 0.0   ;;  %v2650_v12 = vadd.f32 %v2634_v0, %v2517_v33 }
 0x2b0   : > { %v2949_v22 = vpop.permute.xlu1 %2948  ;;  %v5919_v17 = vpop.permute.xlu0 %2471  ;;  %348 = vst.msk [vmem:[#allocation3 + $0x60] sm:$0x3f] %vm347_vm3, %v6562_v37  ;;  %v2636_v34 = vmul.f32 %v5850_v18, %v6563_v60  ;;  %v2781_v7 = vadd.f32 %v2765_v9, %v2648_v29  ;;  %v2767_v38 = vmul.f32 %v5864_v44, %v6564_v49  ;;  %v2901_v21 = vmul.f32 %v5883_v53, %v6565_v23  ;;  %v6568_v9 = vld [vmem:[#allocation29_spill] sm:$0xff] }
 0x2b1   : > { %v3030_v24 = vmul.f32 %v5906_v10, %v2949_v22  ;;  %v2915_v11 = vadd.f32 %v2899_v3, %v2782_v19  ;;  %v2653_v46 = vadd.f32 %v2637_v1, %v2520_v58  ;;  %v2900_v2 = vmul.f32 %v5883_v53, %v6566_v51  ;;  %v6569_v3 = vld [vmem:[#allocation46_spill] sm:$0xff] }
 0x2b2   : > { %v2914_v26 = vadd.f32 %v2898_v50, %v2781_v7  ;;  %v2784_v33 = vadd.f32 %v2768_v28, %v2651_v6  ;;  %v2770_v41 = vmul.f32 %v5864_v44, %v6567_v40  ;;  %v2652_v13 = vadd.f32 %v2636_v34, %v2519_v14  ;;  %v6570_v50 = vld [vmem:[#allocation59_spill] sm:$0xff] }
 0x2b3   : > { %v3046_v5 = vadd.f32 %v3030_v24, %v2913_v16  ;;  %v2783_v0 = vadd.f32 %v2767_v38, %v2650_v12  ;;  %v2769_v22 = vmul.f32 %v5864_v44, %v6568_v9  ;;  %v2903_v24 = vmul.f32 %v5883_v53, %v6569_v3 }
 0x2b4   : > { %v2959_v63 = vpop.permute.xlu1 %2958  ;;  %v2954_v55 = vpop.permute.xlu0 %2953  ;;  %v2917_v16 = vadd.f32 %v2901_v21, %v2784_v33  ;;  %v2902_v6 = vmul.f32 %v5883_v53, %v6570_v50  ;;  %v2786_v28 = vadd.f32 %v2770_v41, %v2653_v46 }
 0x2b5   : > { %v3069_v56 = vadd.f32 %v5928_v20, %v3046_v5  ;;  %v3032_v25 = vmul.f32 %v5906_v10, %v2959_v63  ;;  %v3031_v62 = vmul.f32 %v5906_v10, %v2954_v55  ;;  %v2916_v45 = vadd.f32 %v2900_v2, %v2783_v0 }
 0x2b6   : > { %v3303_v43 = vpop.f32.mrf.mxu0  ;;  %v2785_v34 = vadd.f32 %v2769_v22, %v2652_v13  ;;  %v2919_v63 = vadd.f32 %v2903_v24, %v2786_v28  ;;  %v3167_v13 = vld [vmem:[#allocation2 + $0x91] ss:$2 sm:$0xff] }
 0x2b7   : > { %v3085_v61 = vmax.f32 %v3069_v56, 0.0  ;;  %v3048_v31 = vadd.f32 %v3032_v25, %v2915_v11  ;;  %v3047_v32 = vadd.f32 %v3031_v62, %v2914_v26  ;;  %3352 = vst.msk [vmem:[#allocation4 + $0x10] sm:$0xff] %vm3349_vm2, %v3303_v43  ;;  %v3165_v43 = vld [vmem:[#allocation2 + $0x90] ss:$2 sm:$0xff] }
 0x2b8   : > { %v2969_v58 = vpop.permute.xlu1 %2968  ;;  %v2964_v1 = vpop.permute.xlu0 %2963  ;;  %v2918_v25 = vadd.f32 %v2902_v6, %v2785_v34  ;;  %v3168_v24 = vmax.f32 %v3165_v43, %v3167_v13  ;;  %v6583_v43 = vld [vmem:[#allocation16_spill] sm:$0xff] }
 0x2b9   : > { %3101 = vst.msk [vmem:[#allocation2 + $0xa0] sm:$0xff] %vm334_vm0, %v3085_v61  ;;  %v3071_v29 = vadd.f32 %v5928_v20, %v3048_v31  ;;  %v3034_v42 = vmul.f32 %v5906_v10, %v2969_v58  ;;  %v4289_v14 = vpop.f32.mrf.mxu0  ;;  %v3070_v19 = vadd.f32 %v5928_v20, %v3047_v32  ;;  %v3033_v35 = vmul.f32 %v5906_v10, %v2964_v1 }
 0x2ba   : > { %v2106_v13 = vmul.f32 %v5756_v39, %v6583_v43  ;;  %v6593_v43 = vld [vmem:[#allocation11_spill] sm:$0xff] }
 0x2bb   : > { %v3087_v5 = vmax.f32 %v3071_v29, 0.0  ;;  %v3050_v12 = vadd.f32 %v3034_v42, %v2917_v16  ;;  %v3306_v60 = vpop.f32.mrf.mxu0  ;;  %v3086_v7 = vmax.f32 %v3070_v19, 0.0  ;;  %v3049_v49 = vadd.f32 %v3033_v35, %v2916_v45 }
 0x2bc   : > { %3353 = vst.msk [vmem:[#allocation4 + $0x18] sm:$0xff] %vm3349_vm2, %v3306_v60  ;;  %v2979_v38 = vpop.permute.xlu1 %2978  ;;  %v2974_v21 = vpop.permute.xlu0 %2973 }
 0x2bd   : > { %3103 = vst.msk [vmem:[#allocation2 + $0xb0] sm:$0xff] %vm334_vm0, %v3087_v5  ;;  %v3073_v11 = vadd.f32 %v5928_v20, %v3050_v12  ;;  %v3036_v23 = vmul.f32 %v5906_v10, %v2979_v38  ;;  %v4290_v56 = vpop.f32.mrf.mxu0  ;;  %3102 = vst.msk [vmem:[#allocation2 + $0xa8] sm:$0xff] %vm334_vm0, %v3086_v7  ;;  %v3072_v55 = vadd.f32 %v5928_v20, %v3049_v49 }
 0x2be   : > { %v3035_v46 = vmul.f32 %v5906_v10, %v2974_v21  ;;  %v3375_v2 = vld [vmem:[#allocation4 + $0x9] sm:$0xff] }
 0x2bf   : > { %v3089_v26 = vmax.f32 %v3073_v11, 0.0  ;;  %v3052_v51 = vadd.f32 %v3036_v23, %v2919_v63  ;;  %v3088_v62 = vmax.f32 %v3072_v55, 0.0  ;;  %3396 = vrot.lane.b32.xlu1 %v3375_v2, %s4387_s8 }
 0x2c0   : > { %v3051_v33 = vadd.f32 %v3035_v46, %v2918_v25  ;;  %v5965_v40 = vpop.permute.xlu1 %2348  ;;  %v5970_v61 = vpop.permute.xlu0 %2343 }
 0x2c1   : > { %3105 = vst.msk [vmem:[#allocation2 + $0xc0] sm:$0xff] %vm334_vm0, %v3089_v26  ;;  %v3075_v41 = vadd.f32 %v5928_v20, %v3052_v51  ;;  %6571 = vst [vmem:[#allocation47_spill] sm:$0xff] %v5970_v61  ;;  %v6599_v61 = vld [vmem:[#allocation30_spill] sm:$0xff] }
 0x2c2   : > { %3104 = vst.msk [vmem:[#allocation2 + $0xb8] sm:$0xff] %vm334_vm0, %v3088_v62  ;;  %v3074_v31 = vadd.f32 %v5928_v20, %v3051_v33 }
 0x2c3   : > { %v3091_v0 = vmax.f32 %v3075_v41, 0.0  ;;  %v3376_v9 = vld [vmem:[#allocation4 + $0x11] sm:$0xff]  ;;  %v6582_v41 = vld [vmem:[#allocation15_spill] sm:$0xff] }
 0x2c4   : > { %v3090_v22 = vmax.f32 %v3074_v31, 0.0  ;;  %v5974_v32 = vpop.permute.xlu1 %2358  ;;  %3398 = vrot.lane.b32.xlu0 %v3376_v9, %s4387_s8  ;;  %v3170_v58 = vld [vmem:[#allocation2 + $0xa2] ss:$2 sm:$0xff]  ;;  %v3172_v16 = vld [vmem:[#allocation2 + $0xa3] ss:$2 sm:$0xff]  ;;  %v5978_v3 = vpop.permute.xlu0 %2353  ;;  %v2107_v31 = vmul.f32 %v5756_v39, %v6582_v41 }
 0x2c5   : > { %6572 = vst [vmem:[#allocation48_spill] sm:$0xff] %v5974_v32  ;;  %3107 = vst.msk [vmem:[#allocation2 + $0xd0] sm:$0xff] %vm334_vm0, %v3091_v0  ;;  %v3173_v29 = vmax.f32 %v3170_v58, %v3172_v16  ;;  %v6584_v0 = vld [vmem:[#allocation17_spill] sm:$0xff]  ;;  %v6586_v16 = vld [vmem:[#allocation12_spill] sm:$0xff] }
 0x2c6   : > { %6573 = vst [vmem:[#allocation49_spill] sm:$0xff] %v5978_v3  ;;  %3106 = vst.msk [vmem:[#allocation2 + $0xc8] sm:$0xff] %vm334_vm0, %v3090_v22  ;;  %v2109_v9 = vmul.f32 %v5756_v39, %v6584_v0  ;;  %v6585_v22 = vld [vmem:[#allocation10_spill] sm:$0xff]  ;;  %v1991_v0 = vmul.f32 %v5748_v47, %v6593_v43 }
 0x2c7   : > { %v3174_v42 = vmax.f32 %v3168_v24, %v3173_v29  ;;  %v1989_v58 = vmul.f32 %v5748_v47, %v6585_v22  ;;  %v1990_v24 = vmul.f32 %v5748_v47, %v6586_v16  ;;  %v6587_v29 = vld [vmem:[#allocation60_spill] sm:$0xff]  ;;  %v6594_v22 = vld [vmem:[#allocation13_spill] sm:$0xff] }
 0x2c8   : > { %v5981_v1 = vpop.permute.xlu1 %2589  ;;  %v5983_v14 = vpop.permute.xlu0 %2584  ;;  %v1993_v16 = vmul.f32 %v5748_v47, %v6594_v22  ;;  %v6597_v22 = vld [vmem:[#allocation34_spill] sm:$0xff] }
 0x2c9   : > { %3175 = vst.msk [vmem:[#allocation3 + $0x33] sm:$0xff] %vm334_vm0, %v3174_v42  ;;  %v3177_v45 = vld [vmem:[#allocation2 + $0xb4] ss:$2 sm:$0xff]  ;;  %v3179_v50 = vld [vmem:[#allocation2 + $0xb5] ss:$2 sm:$0xff]  ;;  %v2108_v42 = vmul.f32 %v5756_v39, %v6587_v29  ;;  %v2112_v3 = vmul.f32 %v5756_v39, %v6597_v22 }
 0x2ca   : > { %v3180_v5 = vmax.f32 %v3177_v45, %v3179_v50  ;;  %v6588_v45 = vld [vmem:[#allocation18_spill] sm:$0xff]  ;;  %v6595_v29 = vld [vmem:[#allocation24_spill] sm:$0xff] }
 0x2cb   : > { %v2110_v50 = vmul.f32 %v5756_v39, %v6588_v45  ;;  %v2241_v45 = vmul.f32 %v5796_v8, %v6595_v29  ;;  %v6598_v29 = vld [vmem:[#allocation39_spill] sm:$0xff] }
 0x2cc   : > { %v5986_v6 = vpop.permute.xlu1 %2599  ;;  %v5988_v28 = vpop.permute.xlu0 %2594  ;;  %v2372_v32 = vmul.f32 %v5821_v48, %v6598_v29 }
 0x2cd   : > { %v3182_v19 = vld [vmem:[#allocation2 + $0xc6] ss:$2 sm:$0xff]  ;;  %v3184_v35 = vld [vmem:[#allocation2 + $0xc7] ss:$2 sm:$0xff] }
 0x2ce   : > { %v3185_v12 = vmax.f32 %v3182_v19, %v3184_v35  ;;  %v6589_v19 = vld [vmem:[#allocation14_spill] sm:$0xff] }
 0x2cf   : > { %v1992_v35 = vmul.f32 %v5748_v47, %v6589_v19  ;;  %v6596_v19 = vld [vmem:[#allocation25_spill] sm:$0xff] }
 0x2d0   : > { %v3186_v60 = vmax.f32 %v3180_v5, %v3185_v12  ;;  %v5990_v34 = vpop.permute.xlu1 %2476  ;;  %v5992_v7 = vpop.permute.xlu0 %2604  ;;  %v3218_v23 = vld [vmem:[#allocation3 + $0x30] sm:$0xff]  ;;  %v6590_v5 = vld [vmem:[#allocation21_spill] sm:$0xff] }
 0x2d1   : > { %6574 = vst [vmem:[#allocation50_spill] sm:$0xff] %v5990_v34  ;;  %v2240_v12 = vmul.f32 %v5796_v8, %v6590_v5  ;;  %v2243_v5 = vmul.f32 %v5796_v8, %v6596_v19 }
 0x2d2   : > { %3187 = vst.msk [vmem:[#allocation3 + $0x3d] sm:$0xff] %vm334_vm0, %v3186_v60  ;;  %v6591_v60 = vld [vmem:[#allocation22_spill] sm:$0xff] }
 0x2d4   : > { %v5995_v49 = vpop.permute.xlu1 %2486  ;;  %v5997_v38 = vpop.permute.xlu0 %2481 }
 0x2d5   : > { %6575 = vst [vmem:[#allocation51_spill] sm:$0xff] %v5995_v49  ;;  %6576 = vst [vmem:[#allocation52_spill] sm:$0xff] %v5997_v38 }
 0x2d8   : > { %v5999_v63 = vpop.permute.xlu1 %2717  ;;  %v6001_v11 = vpop.permute.xlu0 %2491 }
 0x2d9   : > { %6577 = vst [vmem:[#allocation61_spill] sm:$0xff] %v6001_v11  ;;  %v3219_v21 = vld [vmem:[#allocation3 + $0x38] sm:$0xff] }
 0x2da   : > { %v3228_v56 = vpack.c.bf16 %v3219_v21, %v3218_v23  ;;  %v2239_v23 = vmul.f32 %v5796_v8, %v6591_v60  ;;  %v6592_v21 = vld [vmem:[#allocation23_spill] sm:$0xff]  ;;  %v2122_v60 = vadd.f32 %v2106_v13, %v1989_v58  ;;  %v6602_v58 = vld [vmem:[#allocation37_spill] sm:$0xff] }
 0x2db   : > { %v6600_v13 = vld [vmem:[#allocation35_spill] sm:$0xff] }
 0x2dc   : > { %4296 = vmatmul.mubr.msk.bf16.gmra.mxu0 %vm334_vm0, %v3228_v56  ;;  %v6004_v25 = vpop.permute.xlu1 %2727  ;;  %v6006_v55 = vpop.permute.xlu0 %2722  ;;  %v2242_v56 = vmul.f32 %v5796_v8, %v6592_v21  ;;  %v2126_v21 = vadd.f32 %v2110_v50, %v1993_v16  ;;  %v2255_v49 = vadd.f32 %v2239_v23, %v2122_v60  ;;  %v6604_v50 = vld [vmem:[#allocation32_spill] sm:$0xff]  ;;  %v6609_v60 = vld [vmem:[#allocation42_spill] sm:$0xff] }
 0x2dd   : > { %4299 = vmatprep.mubr.msk.bf16.mxu0 %vm4386_vm1, %v6562_v37  ;;  %v6607_v16 = vld [vmem:[#allocation40_spill] sm:$0xff] }
 0x2de   : > { %v2259_v34 = vadd.f32 %v2243_v5, %v2126_v21  ;;  %v6608_v5 = vld [vmem:[#allocation41_spill] sm:$0xff]  ;;  %v2376_v21 = vmul.f32 %v5821_v48, %v6609_v60 }
 0x2e0   : > { %v6010_v46 = vpop.permute.xlu1 %2737  ;;  %v6012_v26 = vpop.permute.xlu0 %2732 }
 0x2e4   : > { %v6014_v51 = vpop.permute.xlu1 %2614  ;;  %v6016_v2 = vpop.permute.xlu0 %2609 }
 0x2e5   : > { %6578 = vst [vmem:[#allocation62_spill] sm:$0xff] %v6014_v51  ;;  %6579 = vst [vmem:[#allocation63_spill] sm:$0xff] %v6016_v2  ;;  %v2124_v2 = vadd.f32 %v2108_v42, %v1991_v0 }
 0x2e7   : > { %v2257_v43 = vadd.f32 %v2241_v45, %v2124_v2  ;;  %v2113_v2 = vmul.f32 %v5756_v39, %v6602_v58  ;;  %v2375_v45 = vmul.f32 %v5821_v48, %v6607_v16 }
 0x2e8   : > { %v6018_v62 = vpop.permute.xlu1 %2624  ;;  %v6020_v33 = vpop.permute.xlu0 %2619 }
 0x2e9   : > { %6580 = vst [vmem:[#allocation64_spill] sm:$0xff] %v6018_v62  ;;  %6581 = vst [vmem:[#allocation65_spill] sm:$0xff] %v6020_v33  ;;  %v2123_v33 = vadd.f32 %v2107_v31, %v1990_v24  ;;  %v2125_v62 = vadd.f32 %v2109_v9, %v1992_v35  ;;  %v1995_v31 = vmul.f32 %v5748_v47, %v6599_v61  ;;  %v6603_v24 = vld [vmem:[#allocation31_spill] sm:$0xff] }
 0x2ea   : > { %v2111_v9 = vmul.f32 %v5756_v39, %v6600_v13  ;;  %v1994_v42 = vmul.f32 %v5748_v47, %v6603_v24  ;;  %v1997_v35 = vmul.f32 %v5748_v47, %v6604_v50  ;;  %v2505_v61 = vmul.f32 %v5834_v57, %v5872_v36 }
 0x2eb   : > { %v2256_v11 = vadd.f32 %v2240_v12, %v2123_v33  ;;  %v2258_v51 = vadd.f32 %v2242_v56, %v2125_v62  ;;  %v6601_v33 = vld [vmem:[#allocation36_spill] sm:$0xff]  ;;  %v6605_v12 = vld [vmem:[#allocation38_spill] sm:$0xff]  ;;  %v6606_v56 = vld [vmem:[#allocation33_spill] sm:$0xff]  ;;  %v2128_v29 = vadd.f32 %v2112_v3, %v1995_v31  ;;  %v2388_v13 = vadd.f32 %v2372_v32, %v2255_v49 }
 0x2ec   : > { %v6044_v41 = vpop.permute.xlu1 %2855  ;;  %v2851_v37 = vpop.permute.xlu0 %2850  ;;  %v2114_v62 = vmul.f32 %v5756_v39, %v6601_v33  ;;  %v2373_v23 = vmul.f32 %v5821_v48, %v6605_v12  ;;  %v1996_v0 = vmul.f32 %v5748_v47, %v6606_v56  ;;  %v2374_v39 = vmul.f32 %v5821_v48, %v6608_v5 }
 0x2ed   : > { %v2245_v33 = vmul.f32 %v5796_v8, %v5800_v30  ;;  %v2638_v36 = vmul.f32 %v5850_v18, %v5983_v14  ;;  %v2127_v58 = vadd.f32 %v2111_v9, %v1994_v42  ;;  %v2244_v12 = vmul.f32 %v5796_v8, %v5810_v15 }
 0x2ee   : > { %v2130_v24 = vadd.f32 %v2114_v62, %v1997_v35  ;;  %v6090_v50 = vadd.f32 %v2113_v2, %v1996_v0  ;;  %v2389_v56 = vadd.f32 %v2373_v23, %v2256_v11  ;;  %v2521_v16 = vadd.f32 %v2505_v61, %v2388_v13 }
 0x2ef   : > { %v2507_v3 = vmul.f32 %v5834_v57, %v5899_v52  ;;  %v2771_v32 = vmul.f32 %v5864_v44, %v5999_v63  ;;  %v2391_v30 = vadd.f32 %v2375_v45, %v2258_v51  ;;  %v2390_v49 = vadd.f32 %v2374_v39, %v2257_v43 }
 0x2f0   : > { %v6054_v38 = vpop.permute.xlu1 %2865  ;;  %v2861_v19 = vpop.permute.xlu0 %2860  ;;  %v2392_v31 = vadd.f32 %v2376_v21, %v2259_v34  ;;  %v2506_v14 = vmul.f32 %v5834_v57, %v5866_v4  ;;  %v6102_v62 = vadd.f32 %v2245_v33, %v2128_v29  ;;  %v2654_v2 = vadd.f32 %v2638_v36, %v2521_v16 }
 0x2f1   : > { %v2640_v15 = vmul.f32 %v5850_v18, %v5988_v28  ;;  %v2904_v11 = vmul.f32 %v5883_v53, %v2851_v37  ;;  %v6109_v42 = vadd.f32 %v2244_v12, %v2127_v58  ;;  %v2247_v34 = vmul.f32 %v5796_v8, %v5836_v59 }
 0x2f2   : > { %v2509_v4 = vmul.f32 %v5834_v57, %v5919_v17  ;;  %v2639_v63 = vmul.f32 %v5850_v18, %v5981_v1  ;;  %v2246_v51 = vmul.f32 %v5796_v8, %v5843_v54  ;;  %v2523_v43 = vadd.f32 %v2507_v3, %v2390_v49 }
 0x2f3   : > { %v2787_v28 = vadd.f32 %v2771_v32, %v2654_v2  ;;  %v2773_v37 = vmul.f32 %v5864_v44, %v6004_v25  ;;  %v2522_v35 = vadd.f32 %v2506_v14, %v2389_v56  ;;  %v2508_v23 = vmul.f32 %v5834_v57, %v5893_v27  ;;  %v6610_v2 = vld [vmem:[#allocation47_spill] sm:$0xff] }
 0x2f4   : > { %v6084_v22 = vpop.permute.xlu1 %2742  ;;  %v2871_v47 = vpop.permute.xlu0 %2870  ;;  %v2642_v59 = vmul.f32 %v5850_v18, %v5992_v7  ;;  %v2772_v17 = vmul.f32 %v5864_v44, %v6006_v55  ;;  %v2656_v1 = vadd.f32 %v2640_v15, %v2523_v43  ;;  %v2906_v8 = vmul.f32 %v5883_v53, %v2861_v19  ;;  %v6612_v43 = vld [vmem:[#allocation49_spill] sm:$0xff] }
 0x2f5   : > { %v2920_v0 = vadd.f32 %v2904_v11, %v2787_v28  ;;  %v2525_v25 = vadd.f32 %v2509_v4, %v2392_v31  ;;  %v2655_v5 = vadd.f32 %v2639_v63, %v2522_v35  ;;  %v2641_v27 = vmul.f32 %v5850_v18, %v5986_v6  ;;  %v6611_v11 = vld [vmem:[#allocation48_spill] sm:$0xff] }
 0x2f6   : > { %v2905_v7 = vmul.f32 %v5883_v53, %v6044_v41  ;;  %v2263_v39 = vadd.f32 %v2247_v34, %v2130_v24  ;;  %v2789_v60 = vadd.f32 %v2773_v37, %v2656_v1  ;;  %v2775_v55 = vmul.f32 %v5864_v44, %v6010_v46 }
 0x2f7   : > { %v2524_v19 = vadd.f32 %v2508_v23, %v2391_v30  ;;  %v2658_v13 = vadd.f32 %v2642_v59, %v2525_v25  ;;  %v2788_v33 = vadd.f32 %v2772_v17, %v2655_v5  ;;  %v2774_v36 = vmul.f32 %v5864_v44, %v6012_v26 }
 0x2f8   : > { %v6100_v9 = vpop.permute.xlu1 %2752  ;;  %v6107_v52 = vpop.permute.xlu0 %2747  ;;  %v2922_v6 = vadd.f32 %v2906_v8, %v2789_v60  ;;  %v2908_v12 = vmul.f32 %v5883_v53, %v2871_v47  ;;  %v2907_v32 = vmul.f32 %v5883_v53, %v6054_v38  ;;  %v2378_v26 = vmul.f32 %v5821_v48, %v5965_v40  ;;  %v6613_v8 = vld [vmem:[#allocation50_spill] sm:$0xff] }
 0x2f9   : > { %v2657_v16 = vadd.f32 %v2641_v27, %v2524_v19  ;;  %v2921_v3 = vadd.f32 %v2905_v7, %v2788_v33  ;;  %v2791_v49 = vadd.f32 %v2775_v55, %v2658_v13  ;;  %v2377_v15 = vmul.f32 %v5821_v48, %v6610_v2  ;;  %v6615_v13 = vld [vmem:[#allocation62_spill] sm:$0xff] }
 0x2fa   : > { %v2380_v34 = vmul.f32 %v5821_v48, %v6611_v11  ;;  %v2379_v28 = vmul.f32 %v5821_v48, %v6612_v43  ;;  %v2262_v17 = vadd.f32 %v2246_v51, %v6090_v50  ;;  %v6614_v48 = vld [vmem:[#allocation52_spill] sm:$0xff]  ;;  %v2394_v60 = vadd.f32 %v2378_v26, %v6102_v62 }
 0x2fb   : > { %v2790_v4 = vadd.f32 %v2774_v36, %v2657_v16  ;;  %v2924_v37 = vadd.f32 %v2908_v12, %v2791_v49  ;;  %v2511_v25 = vmul.f32 %v5834_v57, %v6614_v48  ;;  %v2393_v55 = vadd.f32 %v2377_v15, %v6109_v42  ;;  %v6617_v12 = vld [vmem:[#allocation61_spill] sm:$0xff] }
 0x2fc   : > { %v2984_v61 = vpop.permute.xlu1 %2983  ;;  %v6129_v45 = vpop.permute.xlu0 %2757  ;;  %v2395_v19 = vadd.f32 %v2379_v28, %v2262_v17  ;;  %v2644_v33 = vmul.f32 %v5850_v18, %v6615_v13  ;;  %v2513_v42 = vmul.f32 %v5834_v57, %v6617_v12  ;;  %v2777_v16 = vmul.f32 %v5864_v44, %v6107_v52  ;;  %v6620_v49 = vld [vmem:[#allocation65_spill] sm:$0xff] }
 0x2fd   : > { %v3037_v54 = vmul.f32 %v5906_v10, %v2984_v61  ;;  %v2923_v61 = vadd.f32 %v2907_v32, %v2790_v4 }
 0x2fe   : > { %v3311_v29 = vpop.f32.mrf.mxu0 }
 0x2ff   : > { %v3053_v21 = vadd.f32 %v3037_v54, %v2920_v0  ;;  %3354 = vst.msk [vmem:[#allocation4 + $0x20] sm:$0xff] %vm3349_vm2, %v3311_v29  ;;  %v2510_v54 = vmul.f32 %v5834_v57, %v6613_v8  ;;  %v2396_v29 = vadd.f32 %v2380_v34, %v2263_v39 }
 0x300   : > { %v2994_v58 = vpop.permute.xlu1 %2993  ;;  %v2989_v56 = vpop.permute.xlu0 %2988 }
 0x301   : > { %v3076_v41 = vadd.f32 %v5928_v20, %v3053_v21  ;;  %v3039_v24 = vmul.f32 %v5906_v10, %v2994_v58  ;;  %v4293_v46 = vpop.f32.mrf.mxu0  ;;  %v3038_v30 = vmul.f32 %v5906_v10, %v2989_v56  ;;  %v2526_v56 = vadd.f32 %v2510_v54, %v2393_v55 }
 0x302   : > { %v2527_v46 = vadd.f32 %v2511_v25, %v2394_v60  ;;  %v2529_v34 = vadd.f32 %v2513_v42, %v2396_v29 }
 0x303   : > { %v3092_v31 = vmax.f32 %v3076_v41, 0.0  ;;  %v3055_v14 = vadd.f32 %v3039_v24, %v2922_v6  ;;  %v3314_v47 = vpop.f32.mrf.mxu0  ;;  %v3054_v63 = vadd.f32 %v3038_v30, %v2921_v3  ;;  %v6616_v6 = vld [vmem:[#allocation51_spill] sm:$0xff]  ;;  %v6619_v30 = vld [vmem:[#allocation64_spill] sm:$0xff] }
 0x304   : > { %3355 = vst.msk [vmem:[#allocation4 + $0x28] sm:$0xff] %vm3349_vm2, %v3314_v47  ;;  %v3004_v38 = vpop.permute.xlu1 %3003  ;;  %v2999_v23 = vpop.permute.xlu0 %2998  ;;  %v2512_v62 = vmul.f32 %v5834_v57, %v6616_v6  ;;  %v6618_v41 = vld [vmem:[#allocation63_spill] sm:$0xff]  ;;  %v2646_v26 = vmul.f32 %v5850_v18, %v6619_v30  ;;  %v2645_v57 = vmul.f32 %v5850_v18, %v6620_v49  ;;  %v2660_v2 = vadd.f32 %v2644_v33, %v2527_v46 }
 0x305   : > { %3108 = vst.msk [vmem:[#allocation2 + $0xd8] sm:$0xff] %vm334_vm0, %v3092_v31  ;;  %v3078_v40 = vadd.f32 %v5928_v20, %v3055_v14  ;;  %v3041_v35 = vmul.f32 %v5906_v10, %v3004_v38  ;;  %v4294_v59 = vpop.f32.mrf.mxu0  ;;  %v3077_v1 = vadd.f32 %v5928_v20, %v3054_v63  ;;  %v3040_v0 = vmul.f32 %v5906_v10, %v2999_v23 }
 0x306   : > { %v3377_v7 = vld [vmem:[#allocation4 + $0x19] sm:$0xff]  ;;  %v2643_v24 = vmul.f32 %v5850_v18, %v6618_v41  ;;  %v2776_v31 = vmul.f32 %v5864_v44, %v6084_v22  ;;  %v2528_v11 = vadd.f32 %v2512_v62, %v2395_v19  ;;  %v2778_v22 = vmul.f32 %v5864_v44, %v6100_v9 }
 0x307   : > { %v3094_v5 = vmax.f32 %v3078_v40, 0.0  ;;  %v3057_v27 = vadd.f32 %v3041_v35, %v2924_v37  ;;  %v3093_v21 = vmax.f32 %v3077_v1, 0.0  ;;  %v3056_v50 = vadd.f32 %v3040_v0, %v2923_v61  ;;  %3400 = vrot.lane.b32.xlu1 %v3377_v7, %s4387_s8 }
 0x308   : > { %v2881_v51 = vpop.permute.xlu1 %2880  ;;  %v2876_v58 = vpop.permute.xlu0 %2875  ;;  %v2659_v4 = vadd.f32 %v2643_v24, %v2526_v56  ;;  %v2793_v63 = vadd.f32 %v2777_v16, %v2660_v2  ;;  %v2779_v38 = vmul.f32 %v5864_v44, %v6129_v45  ;;  %v2662_v43 = vadd.f32 %v2646_v26, %v2529_v34 }
 0x309   : > { %3110 = vst.msk [vmem:[#allocation2 + $0xe8] sm:$0xff] %vm334_vm0, %v3094_v5  ;;  %v3080_v36 = vadd.f32 %v5928_v20, %v3057_v27  ;;  %3109 = vst.msk [vmem:[#allocation2 + $0xe0] sm:$0xff] %vm334_vm0, %v3093_v21  ;;  %v3079_v39 = vadd.f32 %v5928_v20, %v3056_v50  ;;  %v2910_v52 = vmul.f32 %v5883_v53, %v2881_v51 }
 0x30a   : > { %v2909_v18 = vmul.f32 %v5883_v53, %v2876_v58  ;;  %v2661_v28 = vadd.f32 %v2645_v57, %v2528_v11  ;;  %v2792_v37 = vadd.f32 %v2776_v31, %v2659_v4  ;;  %v2795_v8 = vadd.f32 %v2779_v38, %v2662_v43 }
 0x30b   : > { %v3096_v3 = vmax.f32 %v3080_v36, 0.0  ;;  %v3378_v32 = vld [vmem:[#allocation4 + $0x21] sm:$0xff]  ;;  %v3095_v14 = vmax.f32 %v3079_v39, 0.0  ;;  %v2926_v35 = vadd.f32 %v2910_v52, %v2793_v63  ;;  %v6621_v31 = vmov 0.0  }
 0x30c   : > { %v2891_v47 = vpop.permute.xlu1 %2890  ;;  %3402 = vrot.lane.b32.xlu0 %v3378_v32, %s4387_s8  ;;  %v2886_v15 = vpop.permute.xlu0 %2885  ;;  %v2925_v1 = vadd.f32 %v2909_v18, %v2792_v37  ;;  %v2794_v9 = vadd.f32 %v2778_v22, %v2661_v28 }
 0x30d   : > { %3112 = vst.msk [vmem:[#allocation2 + $0xf8] sm:$0xff] %vm334_vm0, %v3096_v3  ;;  %3111 = vst.msk [vmem:[#allocation2 + $0xf0] sm:$0xff] %vm334_vm0, %v3095_v14  ;;  %v2912_v23 = vmul.f32 %v5883_v53, %v2891_v47  ;;  %v2911_v59 = vmul.f32 %v5883_v53, %v2886_v15  ;;  %v3224_v14 = vld [vmem:[#allocation3 + $0x60] sm:$0x3f] }
 0x30e   : > { %v3231_v47 = vpack.c.bf16 %v3224_v14, %v3224_v14 }
 0x30f   : > { %v2928_v7 = vadd.f32 %v2912_v23, %v2795_v8  ;;  %v2927_v60 = vadd.f32 %v2911_v59, %v2794_v9  ;;  %v3436_v59 = vld [vmem:[#allocation4 + $0x12] sm:$0xff]  ;;  %v3435_v8 = vld [vmem:[#allocation4 + $0xa] sm:$0xff] }
 0x310   : > { %v3014_v40 = vpop.permute.xlu1 %3013  ;;  %v3009_v61 = vpop.permute.xlu0 %3008  ;;  %v3189_v54 = vld [vmem:[#allocation2 + $0xd8] ss:$2 sm:$0xff]  ;;  %v3191_v48 = vld [vmem:[#allocation2 + $0xd9] ss:$2 sm:$0xff] }
 0x311   : > { %v3043_v17 = vmul.f32 %v5906_v10, %v3014_v40  ;;  %v3042_v0 = vmul.f32 %v5906_v10, %v3009_v61  ;;  %v3192_v50 = vmax.f32 %v3189_v54, %v3191_v48  ;;  %v3434_v40 = vld [vmem:[#allocation4 + $0x2] sm:$0xff] }
 0x313   : > { %v3059_v44 = vadd.f32 %v3043_v17, %v2926_v35  ;;  %v3058_v45 = vadd.f32 %v3042_v0, %v2925_v1  ;;  %v3438_v0 = vld [vmem:[#allocation4 + $0x22] sm:$0xff] }
 0x314   : > { %v3024_v25 = vpop.permute.xlu1 %3023  ;;  %v3194_v5 = vld [vmem:[#allocation2 + $0xea] ss:$2 sm:$0xff]  ;;  %v3196_v27 = vld [vmem:[#allocation2 + $0xeb] ss:$2 sm:$0xff]  ;;  %v3019_v21 = vpop.permute.xlu0 %3018 }
 0x315   : > { %v3082_v55 = vadd.f32 %v5928_v20, %v3059_v44  ;;  %v3045_v53 = vmul.f32 %v5906_v10, %v3024_v25  ;;  %v3197_v51 = vmax.f32 %v3194_v5, %v3196_v27  ;;  %v3081_v29 = vadd.f32 %v5928_v20, %v3058_v45  ;;  %v3437_v45 = vld [vmem:[#allocation4 + $0x1a] sm:$0xff] }
 0x316   : > { %v3044_v19 = vmul.f32 %v5906_v10, %v3019_v21 }
 0x317   : > { %v3098_v13 = vmax.f32 %v3082_v55, 0.0  ;;  %v3061_v33 = vadd.f32 %v3045_v53, %v2928_v7  ;;  %v3198_v36 = vmax.f32 %v3192_v50, %v3197_v51  ;;  %v3097_v58 = vmax.f32 %v3081_v29, 0.0  ;;  %v3538_v55 = vld [vmem:[#allocation4 + $0x1b] sm:$0xff]  ;;  %v3537_v50 = vld [vmem:[#allocation4 + $0x13] sm:$0xff]  ;;  %v3539_v29 = vld [vmem:[#allocation4 + $0x23] sm:$0xff] }
 0x318   : > { %v3060_v6 = vadd.f32 %v3044_v19, %v2927_v60  ;;  %v3536_v60 = vld [vmem:[#allocation4 + $0xb] sm:$0xff] }
 0x319   : > { %3114 = vst.msk [vmem:[#allocation2 + $0x108] sm:$0xff] %vm334_vm0, %v3098_v13  ;;  %v3084_v62 = vadd.f32 %v5928_v20, %v3061_v33  ;;  %3199 = vst.msk [vmem:[#allocation3 + $0x47] sm:$0xff] %vm334_vm0, %v3198_v36  ;;  %v3596_v33 = vld [vmem:[#allocation4 + $0xc] sm:$0xff] }
 0x31a   : > { %3113 = vst.msk [vmem:[#allocation2 + $0x100] sm:$0xff] %vm334_vm0, %v3097_v58  ;;  %v3083_v12 = vadd.f32 %v5928_v20, %v3060_v6  ;;  %v3598_v58 = vld [vmem:[#allocation4 + $0x1c] sm:$0xff] }
 0x31b   : > { %v3100_v42 = vmax.f32 %v3084_v62, 0.0 }
 0x31c   : > { %v3099_v41 = vmax.f32 %v3083_v12, 0.0  ;;  %v3597_v12 = vld [vmem:[#allocation4 + $0x14] sm:$0xff] }
 0x31d   : > { %3116 = vst.msk [vmem:[#allocation2 + $0x118] sm:$0xff] %vm334_vm0, %v3100_v42 }
 0x31e   : > { %3115 = vst.msk [vmem:[#allocation2 + $0x110] sm:$0xff] %vm334_vm0, %v3099_v41  ;;  %v3599_v41 = vld [vmem:[#allocation4 + $0x24] sm:$0xff] }
 0x320   : > { %v3220_v10 = vld [vmem:[#allocation3 + $0x40] sm:$0xff]  ;;  %v3221_v24 = vld [vmem:[#allocation3 + $0x48] sm:$0xff] }
 0x321   : > { %v3201_v39 = vld [vmem:[#allocation2 + $0xfc] ss:$2 sm:$0xff]  ;;  %v3203_v56 = vld [vmem:[#allocation2 + $0xfd] ss:$2 sm:$0xff]  ;;  %v3229_v46 = vpack.c.bf16 %v3221_v24, %v3220_v10 }
 0x322   : > { %v3204_v32 = vmax.f32 %v3201_v39, %v3203_v56 }
 0x323   : > { %4300 = vmatmul.mubr.msk.bf16.gmra.mxu0 %vm334_vm0, %v3229_v46  ;;  %v3395_v46 = vpop.permute.xlu0 %3394 }
 0x325   : > { %v3206_v16 = vld [vmem:[#allocation2 + $0x10e] ss:$2 sm:$0xff]  ;;  %v3208_v3 = vld [vmem:[#allocation2 + $0x10f] ss:$2 sm:$0xff] }
 0x326   : > { %v3209_v30 = vmax.f32 %v3206_v16, %v3208_v3  ;;  %v3698_v3 = vld [vmem:[#allocation4 + $0x15] sm:$0xff] }
 0x328   : > { %v3210_v26 = vmax.f32 %v3204_v32, %v3209_v30  ;;  %v3700_v30 = vld [vmem:[#allocation4 + $0x25] sm:$0xff] }
 0x32a   : > { %3211 = vst.msk [vmem:[#allocation3 + $0x51] sm:$0xff] %vm334_vm0, %v3210_v26 }
 0x331   : > { %v3222_v20 = vld [vmem:[#allocation3 + $0x50] sm:$0xff]  ;;  %v3223_v49 = vld [vmem:[#allocation3 + $0x58] sm:$0xff]  ;;  %v6255_v26 = vpop.permute.xlu1 %3396 }
 0x332   : > { %v3230_v57 = vpack.c.bf16 %v3223_v49, %v3222_v20 }
 0x334   : > { %4304 = vmatmul.mubr.msk.bf16.vlgmr.msra.gmra.mxu1 %vm334_vm0, %v3230_v57 }
 0x335   : > { %4307 = vmatprep.mubr.msk.bf16.mxu1 %vm4386_vm1, %v6621_v31 }
 0x336   : > { %v3399_v16 = vpop.permute.xlu0 %3398 }
 0x33c   : > { %4308 = vmatmul.mubr.msk.bf16.gmra.mxu1 %vm334_vm0, %v3231_v47 }
 0x33d   : > { %4313 = vmatprep.mubr.msk.bf16.mxu1 %vm4386_vm1, %v6621_v31 }
 0x379   : > { %v6260_v14 = vpop.permute.xlu1 %3400 }
 0x37e   : > { %v6252_v32 = vpop.permute.xlu0 %3402 }
 0x39c   : > { %v3319_v2 = vpop.f32.mrf.mxu0 }
 0x39d   : > { %3356 = vst.msk [vmem:[#allocation4 + $0x30] sm:$0xff] %vm3349_vm2, %v3319_v2  ;;  %v3699_v2 = vld [vmem:[#allocation4 + $0x1d] sm:$0xff] }
 0x39e   : > { %v4297_v52 = vpop.f32.mrf.mxu0 }
 0x3a0   : > { %v3322_v15 = vpop.f32.mrf.mxu0 }
 0x3a1   : > { %3357 = vst.msk [vmem:[#allocation4 + $0x38] sm:$0xff] %vm3349_vm2, %v3322_v15  ;;  %v3364_v15 = vld [vmem:[#allocation4] sm:$0xff] }
 0x3a2   : > { %v4298_v11 = vpop.f32.mrf.mxu0 }
 0x3a3   : > { %v3424_v11 = vadd.f32 %v3395_v46, %v3364_v15 }
 0x3a4   : > { %v3379_v34 = vld [vmem:[#allocation4 + $0x29] sm:$0xff] }
 0x3a5   : > { %3404 = vrot.lane.b32.xlu1 %v3379_v34, %s4387_s8  ;;  %v3439_v5 = vld [vmem:[#allocation4 + $0x2a] sm:$0xff] }
 0x3a6   : > { %v3540_v21 = vld [vmem:[#allocation4 + $0x2b] sm:$0xff] }
 0x3a7   : > { %v3600_v62 = vld [vmem:[#allocation4 + $0x2c] sm:$0xff] }
 0x3a8   : > { %v3380_v4 = vld [vmem:[#allocation4 + $0x31] sm:$0xff] }
 0x3a9   : > { %3406 = vrot.lane.b32.xlu0 %v3380_v4, %s4387_s8  ;;  %v3440_v48 = vld [vmem:[#allocation4 + $0x32] sm:$0xff] }
 0x3aa   : > { %v3541_v13 = vld [vmem:[#allocation4 + $0x33] sm:$0xff] }
 0x3ab   : > { %v3601_v24 = vld [vmem:[#allocation4 + $0x34] sm:$0xff] }
 0x3ac   : > { %v3702_v57 = vld [vmem:[#allocation4 + $0x35] sm:$0xff] }
 0x3ad   : > { %v3370_v46 = vld [vmem:[#allocation4 + $0x30] sm:$0xff] }
 0x3e3   : > { %v3327_v18 = vpop.f32.mrf.mxu0 }
 0x3e4   : > { %3358 = vst.msk [vmem:[#allocation4 + $0x40] sm:$0xff] %vm3349_vm2, %v3327_v18  ;;  %v3701_v18 = vld [vmem:[#allocation4 + $0x2d] sm:$0xff] }
 0x3e5   : > { %v4301_v22 = vpop.f32.mrf.mxu0 }
 0x3e7   : > { %v3330_v63 = vpop.f32.mrf.mxu0 }
 0x3e8   : > { %3359 = vst.msk [vmem:[#allocation4 + $0x48] sm:$0xff] %vm3349_vm2, %v3330_v63 }
 0x3e9   : > { %v4302_v38 = vpop.f32.mrf.mxu0 }
 0x3eb   : > { %v3381_v43 = vld [vmem:[#allocation4 + $0x39] sm:$0xff] }
 0x3ec   : > { %3408 = vrot.lane.b32.xlu1 %v3381_v43, %s4387_s8  ;;  %v3441_v27 = vld [vmem:[#allocation4 + $0x3a] sm:$0xff] }
 0x3ed   : > { %v3542_v51 = vld [vmem:[#allocation4 + $0x3b] sm:$0xff] }
 0x3ee   : > { %v3602_v42 = vld [vmem:[#allocation4 + $0x3c] sm:$0xff] }
 0x3ef   : > { %v3382_v28 = vld [vmem:[#allocation4 + $0x41] sm:$0xff] }
 0x3f0   : > { %3410 = vrot.lane.b32.xlu0 %v3382_v28, %s4387_s8  ;;  %v3442_v25 = vld [vmem:[#allocation4 + $0x42] sm:$0xff] }
 0x3f1   : > { %v3543_v36 = vld [vmem:[#allocation4 + $0x43] sm:$0xff] }
 0x3f2   : > { %v3603_v39 = vld [vmem:[#allocation4 + $0x44] sm:$0xff] }
 0x3f3   : > { %v3704_v52 = vld [vmem:[#allocation4 + $0x45] sm:$0xff]  ;;  %v3703_v28 = vld [vmem:[#allocation4 + $0x3d] sm:$0xff] }
 0x3f4   : > { %v3335_v37 = vpop.f32.mrf.mxu1  ;;  %3454 = vrot.lane.b32.xlu0 %v3434_v40, %s4388_s27 }
 0x3f5   : > { %3360 = vst.msk [vmem:[#allocation4 + $0x50] sm:$0xff] %vm3349_vm2, %v3335_v37  ;;  %v3758_v37 = vld [vmem:[#allocation4 + $0x16] sm:$0xff] }
 0x3f6   : > { %v4305_v35 = vpop.f32.mrf.mxu1 }
 0x3f8   : > { %v3338_v23 = vpop.f32.mrf.mxu1  ;;  %3458 = vrot.lane.b32.xlu0 %v3436_v59, %s4388_s27 }
 0x3f9   : > { %3361 = vst.msk [vmem:[#allocation4 + $0x58] sm:$0xff] %vm3349_vm2, %v3338_v23 }
 0x3fa   : > { %v4306_v17 = vpop.f32.mrf.mxu1 }
 0x3fc   : > { %v3343_v61 = vpop.f32.mrf.mxu1  ;;  %v3383_v1 = vld [vmem:[#allocation4 + $0x49] sm:$0xff]  ;;  %3462 = vrot.lane.b32.xlu0 %v3438_v0, %s4388_s27 }
 0x3fd   : > { %3363 = vst.msk [vmem:[#allocation4 + $0x60] sm:$0x3f] %vm3362_vm4, %v3343_v61  ;;  %3412 = vrot.lane.b32.xlu1 %v3383_v1, %s4387_s8  ;;  %v3443_v7 = vld [vmem:[#allocation4 + $0x4a] sm:$0xff]  ;;  %s4393_s8 = smov 100  }
 0x3fe   : > { %v4309_v9 = vpop.f32.mrf.mxu1  ;;  %v3544_v19 = vld [vmem:[#allocation4 + $0x4b] sm:$0xff] }
 0x3ff   : > { %v3604_v10 = vld [vmem:[#allocation4 + $0x4c] sm:$0xff]  ;;  %v3372_v9 = vld [vmem:[#allocation4 + $0x40] sm:$0xff] }
 0x400   : > { %v3346_v54 = vpop.f32.mrf.mxu1  ;;  %3466 = vrot.lane.b32.xlu0 %v3440_v48, %s4388_s27  ;;  %v3494_v53 = vld [vmem:[#allocation4 + $0x52] sm:$0xff] }
 0x401   : > { %3456 = vrot.lane.b32.xlu1 %v3435_v8, %s4388_s27  ;;  %v3545_v6 = vld [vmem:[#allocation4 + $0x53] sm:$0xff] }
 0x402   : > { %v4310_v44 = vpop.f32.mrf.mxu1  ;;  %v3605_v56 = vld [vmem:[#allocation4 + $0x54] sm:$0xff] }
 0x403   : > { %v3706_v63 = vld [vmem:[#allocation4 + $0x55] sm:$0xff]  ;;  %v3705_v23 = vld [vmem:[#allocation4 + $0x4d] sm:$0xff]  ;;  %v3759_v44 = vld [vmem:[#allocation4 + $0x1e] sm:$0xff] }
 0x404   : > { %3470 = vrot.lane.b32.xlu0 %v3442_v25, %s4388_s27  ;;  %v3656_v49 = vld [vmem:[#allocation4 + $0x5c] sm:$0xff] }
 0x405   : > { %3460 = vrot.lane.b32.xlu1 %v3437_v45, %s4388_s27  ;;  %v3707_v1 = vld [vmem:[#allocation4 + $0x5d] sm:$0xff] }
 0x408   : > { %3496 = vrot.lane.b32.xlu0 %v3435_v8, %s4389_s28 }
 0x409   : > { %3464 = vrot.lane.b32.xlu1 %v3439_v5, %s4388_s27 }
 0x40c   : > { %3500 = vrot.lane.b32.xlu0 %v3437_v45, %s4389_s28 }
 0x40d   : > { %3468 = vrot.lane.b32.xlu1 %v3441_v27, %s4388_s27 }
 0x410   : > { %3504 = vrot.lane.b32.xlu0 %v3439_v5, %s4389_s28 }
 0x411   : > { %3472 = vrot.lane.b32.xlu1 %v3443_v7, %s4388_s27 }
 0x414   : > { %3508 = vrot.lane.b32.xlu0 %v3441_v27, %s4389_s28  ;;  %v3366_v27 = vld [vmem:[#allocation4 + $0x10] sm:$0xff] }
 0x415   : > { %3498 = vrot.lane.b32.xlu1 %v3436_v59, %s4389_s28  ;;  %v3760_v59 = vld [vmem:[#allocation4 + $0x26] sm:$0xff] }
 0x417   : > { %v6264_v34 = vpop.permute.xlu1 %3404 }
 0x418   : > { %3512 = vrot.lane.b32.xlu0 %v3443_v7, %s4389_s28 }
 0x419   : > { %3502 = vrot.lane.b32.xlu1 %v3438_v0, %s4389_s28  ;;  %v3762_v0 = vld [vmem:[#allocation4 + $0x36] sm:$0xff] }
 0x41b   : > { %v6257_v20 = vpop.permute.xlu0 %3406 }
 0x41c   : > { %3556 = vrot.lane.b32.xlu0 %v3536_v60, %s4390_s29  ;;  %v3761_v60 = vld [vmem:[#allocation4 + $0x2e] sm:$0xff] }
 0x41d   : > { %3506 = vrot.lane.b32.xlu1 %v3440_v48, %s4389_s28 }
 0x420   : > { %3560 = vrot.lane.b32.xlu0 %v3538_v55, %s4390_s29  ;;  %v3426_v55 = vadd.f32 %v3399_v16, %v3366_v27 }
 0x421   : > { %3510 = vrot.lane.b32.xlu1 %v3442_v25, %s4389_s28  ;;  %v3764_v25 = vld [vmem:[#allocation4 + $0x46] sm:$0xff] }
 0x424   : > { %3564 = vrot.lane.b32.xlu0 %v3540_v21, %s4390_s29 }
 0x425   : > { %3514 = vrot.lane.b32.xlu1 %v3494_v53, %s4389_s28  ;;  %v3371_v53 = vld [vmem:[#allocation4 + $0x38] sm:$0xff]  ;;  %s4395_s28 = smov 16  }
 0x428   : > { %3568 = vrot.lane.b32.xlu0 %v3542_v51, %s4390_s29 }
 0x429   : > { %3558 = vrot.lane.b32.xlu1 %v3537_v50, %s4390_s29  ;;  %v3766_v50 = vld [vmem:[#allocation4 + $0x56] sm:$0xff] }
 0x42c   : > { %3572 = vrot.lane.b32.xlu0 %v3544_v19, %s4390_s29 }
 0x42d   : > { %3562 = vrot.lane.b32.xlu1 %v3539_v29, %s4390_s29 }
 0x430   : > { %3616 = vrot.lane.b32.xlu0 %v3596_v33, %s4391_s30  ;;  %v3368_v33 = vld [vmem:[#allocation4 + $0x20] sm:$0xff] }
 0x431   : > { %3566 = vrot.lane.b32.xlu1 %v3541_v13, %s4390_s29  ;;  %v4256_v13 = vld [vmem:[#allocation7] ss:$0 sm:$0xff] }
 0x434   : > { %3620 = vrot.lane.b32.xlu0 %v3598_v58, %s4391_s30 }
 0x435   : > { %3570 = vrot.lane.b32.xlu1 %v3543_v36, %s4390_s29 }
 0x438   : > { %3624 = vrot.lane.b32.xlu0 %v3600_v62, %s4391_s30 }
 0x439   : > { %3574 = vrot.lane.b32.xlu1 %v3545_v6, %s4390_s29  ;;  %v3763_v6 = vld [vmem:[#allocation4 + $0x3e] sm:$0xff] }
 0x43c   : > { %3628 = vrot.lane.b32.xlu0 %v3602_v42, %s4391_s30 }
 0x43d   : > { %3618 = vrot.lane.b32.xlu1 %v3597_v12, %s4391_s30 }
 0x440   : > { %3632 = vrot.lane.b32.xlu0 %v3604_v10, %s4391_s30 }
 0x441   : > { %3622 = vrot.lane.b32.xlu1 %v3599_v41, %s4391_s30 }
 0x444   : > { %3658 = vrot.lane.b32.xlu0 %v3597_v12, %s4392_s10  ;;  %v3373_v12 = vld [vmem:[#allocation4 + $0x48] sm:$0xff] }
 0x445   : > { %3626 = vrot.lane.b32.xlu1 %v3601_v24, %s4391_s30 }
 0x448   : > { %3662 = vrot.lane.b32.xlu0 %v3599_v41, %s4392_s10 }
 0x449   : > { %3630 = vrot.lane.b32.xlu1 %v3603_v39, %s4391_s30 }
 0x44c   : > { %3666 = vrot.lane.b32.xlu0 %v3601_v24, %s4392_s10 }
 0x44d   : > { %3634 = vrot.lane.b32.xlu1 %v3605_v56, %s4391_s30  ;;  %s4396_s30 = smov 32  }
 0x450   : > { %3670 = vrot.lane.b32.xlu0 %v3603_v39, %s4392_s10 }
 0x451   : > { %3660 = vrot.lane.b32.xlu1 %v3598_v58, %s4392_s10 }
 0x454   : > { %3674 = vrot.lane.b32.xlu0 %v3605_v56, %s4392_s10 }
 0x455   : > { %3664 = vrot.lane.b32.xlu1 %v3600_v62, %s4392_s10  ;;  %v3428_v62 = vadd.f32 %v6252_v32, %v3368_v33 }
 0x458   : > { %3718 = vrot.lane.b32.xlu0 %v3698_v3, %s4393_s8 }
 0x459   : > { %3668 = vrot.lane.b32.xlu1 %v3602_v42, %s4392_s10 }
 0x45c   : > { %3722 = vrot.lane.b32.xlu0 %v3700_v30, %s4393_s8  ;;  %v3765_v30 = vld [vmem:[#allocation4 + $0x4e] sm:$0xff] }
 0x45d   : > { %3672 = vrot.lane.b32.xlu1 %v3604_v10, %s4392_s10  ;;  %v3365_v10 = vld [vmem:[#allocation4 + $0x8] sm:$0xff] }
 0x45e   : > { %v3409_v38 = vpop.permute.xlu1 %3408  ;;  %v3425_v56 = vadd.f32 %v6255_v26, %v3365_v10 }
 0x45f   : > { %v3431_v51 = vadd.f32 %v3409_v38, %v3371_v53 }
 0x460   : > { %3726 = vrot.lane.b32.xlu0 %v3702_v57, %s4393_s8 }
 0x461   : > { %3676 = vrot.lane.b32.xlu1 %v3656_v49, %s4392_s10  ;;  %v3430_v49 = vadd.f32 %v6257_v20, %v3370_v46  ;;  %s4397_s10 = smov 48  }
 0x462   : > { %v3411_v47 = vpop.permute.xlu0 %3410 }
 0x463   : > { %v3432_v8 = vadd.f32 %v3411_v47, %v3372_v9  ;;  %v3367_v47 = vld [vmem:[#allocation4 + $0x18] sm:$0xff] }
 0x464   : > { %3730 = vrot.lane.b32.xlu0 %v3704_v52, %s4393_s8  ;;  %v3427_v15 = vadd.f32 %v6260_v14, %v3367_v47 }
 0x465   : > { %3720 = vrot.lane.b32.xlu1 %v3699_v2, %s4393_s8 }
 0x466   : > { %v3455_v4 = vpop.permute.xlu0 %3454 }
 0x467   : > { %v3484_v22 = vadd.f32 %v3455_v4, %v3424_v11 }
 0x468   : > { %3734 = vrot.lane.b32.xlu0 %v3706_v63, %s4393_s8  ;;  %v3369_v63 = vld [vmem:[#allocation4 + $0x28] sm:$0xff] }
 0x469   : > { %3724 = vrot.lane.b32.xlu1 %v3701_v18, %s4393_s8  ;;  %v3767_v18 = vld [vmem:[#allocation4 + $0x5e] sm:$0xff]  ;;  %v3429_v20 = vadd.f32 %v6264_v34, %v3369_v63 }
 0x46a   : > { %v3459_v43 = vpop.permute.xlu0 %3458 }
 0x46b   : > { %v3486_v29 = vadd.f32 %v3459_v43, %v3426_v55 }
 0x46c   : > { %3778 = vrot.lane.b32.xlu0 %v3758_v37, %s4394_s13 }
 0x46d   : > { %3728 = vrot.lane.b32.xlu1 %v3703_v28, %s4393_s8 }
 0x46e   : > { %v3463_v35 = vpop.permute.xlu0 %3462 }
 0x46f   : > { %v3413_v40 = vpop.permute.xlu1 %3412  ;;  %v3488_v24 = vadd.f32 %v3463_v35, %v3428_v62  ;;  %v3907_v35 = vld [vmem:[%s6388_s5] sm:$0x3] }
 0x470   : > { %3782 = vrot.lane.b32.xlu0 %v3760_v59, %s4394_s13  ;;  %v3433_v41 = vadd.f32 %v3413_v40, %v3373_v12 }
 0x471   : > { %3732 = vrot.lane.b32.xlu1 %v3705_v23, %s4393_s8  ;;  %v3920_v23 = vsel %vm3918_vm5, %v3907_v35, 0 }
 0x472   : > { %v3467_v61 = vpop.permute.xlu0 %3466  ;;  %4312 = vmatpush3.bf16.msra.mxu1 %v3920_v23 }
 0x473   : > { %v3457_v17 = vpop.permute.xlu1 %3456  ;;  %v3490_v2 = vadd.f32 %v3467_v61, %v3430_v49  ;;  %4317 = vmatprep.subr.bf16.mxu1 %v6621_v31 }
 0x474   : > { %3786 = vrot.lane.b32.xlu0 %v3762_v0, %s4394_s13  ;;  %v3485_v32 = vadd.f32 %v3457_v17, %v3425_v56 }
 0x475   : > { %3736 = vrot.lane.b32.xlu1 %v3707_v1, %s4393_s8  ;;  %s4398_s8 = smov 64  }
 0x476   : > { %v3471_v48 = vpop.permute.xlu0 %3470 }
 0x477   : > { %v3461_v54 = vpop.permute.xlu1 %3460  ;;  %v3492_v45 = vadd.f32 %v3471_v48, %v3432_v8 }
 0x478   : > { %3790 = vrot.lane.b32.xlu0 %v3764_v25, %s4394_s13  ;;  %v3487_v26 = vadd.f32 %v3461_v54, %v3427_v15 }
 0x479   : > { %3780 = vrot.lane.b32.xlu1 %v3759_v44, %s4394_s13 }
 0x47a   : > { %v3497_v7 = vpop.permute.xlu0 %3496 }
 0x47b   : > { %v3465_v5 = vpop.permute.xlu1 %3464  ;;  %v3526_v21 = vadd.f32 %v3497_v7, %v3484_v22 }
 0x47c   : > { %3794 = vrot.lane.b32.xlu0 %v3766_v50, %s4394_s13  ;;  %v3489_v40 = vadd.f32 %v3465_v5, %v3429_v20 }
 0x47d   : > { %3784 = vrot.lane.b32.xlu1 %v3761_v60, %s4394_s13 }
 0x47e   : > { %v3501_v58 = vpop.permute.xlu0 %3500 }
 0x47f   : > { %v3469_v19 = vpop.permute.xlu1 %3468  ;;  %v3528_v42 = vadd.f32 %v3501_v58, %v3486_v29 }
 0x480   : > { %v3491_v36 = vadd.f32 %v3469_v19, %v3431_v51  ;;  %3981 = vperm.xlu0 %4357, %v4256_v13  }
 0x481   : > { %3788 = vrot.lane.b32.xlu1 %v3763_v6, %s4394_s13 }
 0x482   : > { %v3505_v3 = vpop.permute.xlu0 %3504 }
 0x483   : > { %v3473_v39 = vpop.permute.xlu1 %3472  ;;  %v3530_v57 = vadd.f32 %v3505_v3, %v3488_v24 }
 0x484   : > { %v3493_v16 = vadd.f32 %v3473_v39, %v3433_v41 }
 0x485   : > { %3792 = vrot.lane.b32.xlu1 %v3765_v30, %s4394_s13 }
 0x486   : > { %v3509_v4 = vpop.permute.xlu0 %3508 }
 0x487   : > { %v3499_v52 = vpop.permute.xlu1 %3498  ;;  %v3532_v22 = vadd.f32 %v3509_v4, %v3490_v2 }
 0x488   : > { %v3527_v11 = vadd.f32 %v3499_v52, %v3485_v32 }
 0x489   : > { %3796 = vrot.lane.b32.xlu1 %v3767_v18, %s4394_s13 }
 0x48a   : > { %v3513_v28 = vpop.permute.xlu0 %3512 }
 0x48b   : > { %v3503_v38 = vpop.permute.xlu1 %3502  ;;  %v3534_v37 = vadd.f32 %v3513_v28, %v3492_v45  ;;  %v6311_v28 = vld [vmem:[%s6387_s4] ss:$0 sm:$0xff] }
 0x48c   : > { %v3529_v43 = vadd.f32 %v3503_v38, %v3487_v26 }
 0x48e   : > { %v3557_v17 = vpop.permute.xlu0 %3556 }
 0x48f   : > { %v3507_v14 = vpop.permute.xlu1 %3506  ;;  %v3586_v61 = vadd.f32 %v3557_v17, %v3526_v21 }
 0x490   : > { %v3531_v59 = vadd.f32 %v3507_v14, %v3489_v40 }
 0x492   : > { %v3561_v34 = vpop.permute.xlu0 %3560 }
 0x493   : > { %v3511_v1 = vpop.permute.xlu1 %3510  ;;  %v3588_v9 = vadd.f32 %v3561_v34, %v3528_v42 }
 0x494   : > { %v3533_v0 = vadd.f32 %v3511_v1, %v3491_v36 }
 0x496   : > { %v3565_v48 = vpop.permute.xlu0 %3564 }
 0x497   : > { %v3515_v8 = vpop.permute.xlu1 %3514  ;;  %v3590_v44 = vadd.f32 %v3565_v48, %v3530_v57 }
 0x498   : > { %v3535_v54 = vadd.f32 %v3515_v8, %v3493_v16 }
 0x49a   : > { %v3569_v5 = vpop.permute.xlu0 %3568 }
 0x49b   : > { %v3559_v45 = vpop.permute.xlu1 %3558  ;;  %v3592_v27 = vadd.f32 %v3569_v5, %v3532_v22 }
 0x49c   : > { %v3587_v25 = vadd.f32 %v3559_v45, %v3527_v11 }
 0x49e   : > { %v3573_v55 = vpop.permute.xlu0 %3572 }
 0x49f   : > { %v3563_v7 = vpop.permute.xlu1 %3562  ;;  %v6292_v53 = vadd.f32 %v3573_v55, %v3534_v37 }
 0x4a0   : > { %v6290_v60 = vadd.f32 %v3563_v7, %v3529_v43 }
 0x4a2   : > { %v3617_v51 = vpop.permute.xlu0 %3616 }
 0x4a3   : > { %v3567_v21 = vpop.permute.xlu1 %3566  ;;  %v3646_v18 = vadd.f32 %v3617_v51, %v3586_v61 }
 0x4a4   : > { %v6294_v50 = vadd.f32 %v3567_v21, %v3531_v59 }
 0x4a6   : > { %v3621_v13 = vpop.permute.xlu0 %3620 }
 0x4a7   : > { %v3571_v29 = vpop.permute.xlu1 %3570  ;;  %v3648_v38 = vadd.f32 %v3621_v13, %v3588_v9 }
 0x4a8   : > { %v6296_v19 = vadd.f32 %v3571_v29, %v3533_v0 }
 0x4aa   : > { %v3625_v58 = vpop.permute.xlu0 %3624 }
 0x4ab   : > { %v3575_v33 = vpop.permute.xlu1 %3574  ;;  %v3650_v14 = vadd.f32 %v3625_v58, %v3590_v44 }
 0x4ac   : > { %v6298_v36 = vadd.f32 %v3575_v33, %v3535_v54 }
 0x4ae   : > { %v3629_v62 = vpop.permute.xlu0 %3628 }
 0x4af   : > { %v3619_v6 = vpop.permute.xlu1 %3618  ;;  %v3652_v8 = vadd.f32 %v3629_v62, %v3592_v27 }
 0x4b0   : > { %v3647_v9 = vadd.f32 %v3619_v6, %v3587_v25 }
 0x4b2   : > { %v3633_v42 = vpop.permute.xlu0 %3632 }
 0x4b3   : > { %v3623_v12 = vpop.permute.xlu1 %3622  ;;  %v3654_v13 = vadd.f32 %v3633_v42, %v6292_v53 }
 0x4b4   : > { %v3649_v51 = vadd.f32 %v3623_v12, %v6290_v60 }
 0x4b6   : > { %v3659_v10 = vpop.permute.xlu0 %3658 }
 0x4b7   : > { %v3627_v41 = vpop.permute.xlu1 %3626  ;;  %v3688_v63 = vadd.f32 %v3659_v10, %v3646_v18 }
 0x4ba   : > { %v3663_v39 = vpop.permute.xlu0 %3662 }
 0x4bb   : > { %v6300_v24 = vpop.permute.xlu1 %3630  ;;  %v3690_v40 = vadd.f32 %v3663_v39, %v3648_v38 }
 0x4be   : > { %v3667_v46 = vpop.permute.xlu0 %3666 }
 0x4bf   : > { %v6302_v56 = vpop.permute.xlu1 %3634  ;;  %v3692_v1 = vadd.f32 %v3667_v46, %v3650_v14 }
 0x4c2   : > { %v3671_v3 = vpop.permute.xlu0 %3670 }
 0x4c3   : > { %v3661_v16 = vpop.permute.xlu1 %3660  ;;  %v3694_v44 = vadd.f32 %v3671_v3, %v3652_v8 }
 0x4c4   : > { %v3689_v5 = vadd.f32 %v3661_v16, %v3647_v9  ;;  %v3651_v16 = vadd.f32 %v3627_v41, %v6294_v50 }
 0x4c6   : > { %v3675_v49 = vpop.permute.xlu0 %3674 }
 0x4c7   : > { %v3665_v30 = vpop.permute.xlu1 %3664  ;;  %v3696_v10 = vadd.f32 %v3675_v49, %v3654_v13  ;;  %v3653_v49 = vadd.f32 %v6300_v24, %v6296_v19 }
 0x4c8   : > { %v3691_v58 = vadd.f32 %v3665_v30, %v3649_v51 }
 0x4ca   : > { %v3719_v32 = vpop.permute.xlu0 %3718 }
 0x4cb   : > { %v3669_v57 = vpop.permute.xlu1 %3668  ;;  %v3748_v20 = vadd.f32 %v3719_v32, %v3688_v63 }
 0x4cc   : > { %v3693_v32 = vadd.f32 %v3669_v57, %v3651_v16 }
 0x4ce   : > { %v3723_v2 = vpop.permute.xlu0 %3722 }
 0x4cf   : > { %v6304_v47 = vpop.permute.xlu1 %3672  ;;  %v3750_v23 = vadd.f32 %v3723_v2, %v3690_v40 }
 0x4d0   : > { %v3695_v57 = vadd.f32 %v6304_v47, %v3653_v49 }
 0x4d2   : > { %v3727_v15 = vpop.permute.xlu0 %3726 }
 0x4d3   : > { %v6306_v52 = vpop.permute.xlu1 %3676  ;;  %v3752_v54 = vadd.f32 %v3727_v15, %v3692_v1 }
 0x4d6   : > { %v3731_v4 = vpop.permute.xlu0 %3730 }
 0x4d7   : > { %v3721_v11 = vpop.permute.xlu1 %3720  ;;  %v3754_v33 = vadd.f32 %v3731_v4, %v3694_v44 }
 0x4d8   : > { %v3749_v29 = vadd.f32 %v3721_v11, %v3689_v5 }
 0x4da   : > { %v3735_v26 = vpop.permute.xlu0 %3734 }
 0x4db   : > { %v3725_v22 = vpop.permute.xlu1 %3724  ;;  %v3756_v12 = vadd.f32 %v3735_v26, %v3696_v10 }
 0x4dc   : > { %v3751_v3 = vadd.f32 %v3725_v22, %v3691_v58 }
 0x4de   : > { %v3779_v37 = vpop.permute.xlu0 %3778 }
 0x4df   : > { %v3729_v43 = vpop.permute.xlu1 %3728  ;;  %v3808_v35 = vadd.f32 %v3779_v37, %v3748_v20  ;;  %v3655_v20 = vadd.f32 %v6302_v56, %v6298_v36 }
 0x4e0   : > { %v3753_v18 = vadd.f32 %v3729_v43, %v3693_v32  ;;  %v4363_v32 = vld [vmem:[%s6390_s7] sm:$0xff]  }
 0x4e1   : > { %v3825_v59 = vadd.f32 %v6311_v28, %v3808_v35  ;;  %v3697_v35 = vadd.f32 %v6306_v52, %v3655_v20 }
 0x4e2   : > { %v3783_v61 = vpop.permute.xlu0 %3782 }
 0x4e3   : > { %v3733_v17 = vpop.permute.xlu1 %3732  ;;  %v3835_v0 = vmax.f32 %v3825_v59, 0.0  ;;  %v3810_v34 = vadd.f32 %v3783_v61, %v3750_v23 }
 0x4e4   : > { %v3755_v37 = vadd.f32 %v3733_v17, %v3695_v57 }
 0x4e5   : > { %3846 = vst.msk [vmem:[#allocation5] sm:$0xff] %vm3845_vm6, %v3835_v0  ;;  %v3827_v48 = vadd.f32 %v6311_v28, %v3810_v34 }
 0x4e6   : > { %v3787_v7 = vpop.permute.xlu0 %3786 }
 0x4e7   : > { %v3737_v45 = vpop.permute.xlu1 %3736  ;;  %v3837_v55 = vmax.f32 %v3827_v48, 0.0  ;;  %v3812_v21 = vadd.f32 %v3787_v7, %v3752_v54 }
 0x4e8   : > { %v3757_v1 = vadd.f32 %v3737_v45, %v3697_v35 }
 0x4e9   : > { %3848 = vst.msk [vmem:[#allocation5 + $0x10] sm:$0xff] %vm3845_vm6, %v3837_v55  ;;  %v3829_v25 = vadd.f32 %v6311_v28, %v3812_v21 }
 0x4ea   : > { %v3791_v62 = vpop.permute.xlu0 %3790 }
 0x4eb   : > { %v3781_v27 = vpop.permute.xlu1 %3780  ;;  %v3839_v39 = vmax.f32 %v3829_v25, 0.0  ;;  %v3814_v46 = vadd.f32 %v3791_v62, %v3754_v33 }
 0x4ec   : > { %v3809_v6 = vadd.f32 %v3781_v27, %v3749_v29  ;;  %v3856_v24 = vld [vmem:[#allocation5] ss:$2 sm:$0xf]  ;;  %v3858_v43 = vld [vmem:[#allocation5 + $0x1] ss:$2 sm:$0xf] }
 0x4ed   : > { %3850 = vst.msk [vmem:[#allocation5 + $0x20] sm:$0xff] %vm3845_vm6, %v3839_v39  ;;  %v3831_v53 = vadd.f32 %v6311_v28, %v3814_v46  ;;  %v3859_v61 = vmax.f32 %v3856_v24, %v3858_v43 }
 0x4ee   : > { %v3826_v60 = vadd.f32 %v6311_v28, %v3809_v6  ;;  %v3795_v30 = vpop.permute.xlu0 %3794 }
 0x4ef   : > { %v3785_v42 = vpop.permute.xlu1 %3784  ;;  %v3841_v11 = vmax.f32 %v3831_v53, 0.0  ;;  %v3816_v4 = vadd.f32 %v3795_v30, %v3756_v12  ;;  %v4361_v53 = vld [vmem:[%s6390_s7 + $0x10] sm:$0xff]  }
 0x4f0   : > { %v3836_v2 = vmax.f32 %v3826_v60, 0.0  ;;  %v3811_v15 = vadd.f32 %v3785_v42, %v3751_v3  ;;  %v4360_v60 = vld [vmem:[%s6390_s7 + $0x18] sm:$0xff]   ;;  %v4362_v42 = vld [vmem:[%s6390_s7 + $0x8] sm:$0xff]  }
 0x4f1   : > { %3852 = vst.msk [vmem:[#allocation5 + $0x30] sm:$0xff] %vm3845_vm6, %v3841_v11  ;;  %v3833_v41 = vadd.f32 %v6311_v28, %v3816_v4 }
 0x4f2   : > { %3847 = vst.msk [vmem:[#allocation5 + $0x8] sm:$0xff] %vm3845_vm6, %v3836_v2  ;;  %v3828_v50 = vadd.f32 %v6311_v28, %v3811_v15  ;;  %v4254_v2 = vld [vmem:[%s6389_s6] ss:$0 sm:$0xff] }
 0x4f3   : > { %v3789_v22 = vpop.permute.xlu1 %3788  ;;  %v3843_v38 = vmax.f32 %v3833_v41, 0.0 }
 0x4f4   : > { %v3838_v26 = vmax.f32 %v3828_v50, 0.0  ;;  %v3813_v63 = vadd.f32 %v3789_v22, %v3753_v18 }
 0x4f5   : > { %3854 = vst.msk [vmem:[#allocation5 + $0x40] sm:$0xff] %vm3845_vm6, %v3843_v38 }
 0x4f6   : > { %3849 = vst.msk [vmem:[#allocation5 + $0x18] sm:$0xff] %vm3845_vm6, %v3838_v26  ;;  %v3830_v19 = vadd.f32 %v6311_v28, %v3813_v63 }
 0x4f7   : > { %v3793_v40 = vpop.permute.xlu1 %3792 }
 0x4f8   : > { %v3840_v14 = vmax.f32 %v3830_v19, 0.0  ;;  %v3815_v47 = vadd.f32 %v3793_v40, %v3755_v37 }
 0x4f9   : > { %v3861_v23 = vld [vmem:[#allocation5 + $0xa] ss:$2 sm:$0xf]  ;;  %v3863_v59 = vld [vmem:[#allocation5 + $0xb] ss:$2 sm:$0xf] }
 0x4fa   : > { %v3864_v0 = vmax.f32 %v3861_v23, %v3863_v59  ;;  %3851 = vst.msk [vmem:[#allocation5 + $0x28] sm:$0xff] %vm3845_vm6, %v3840_v14  ;;  %v3832_v36 = vadd.f32 %v6311_v28, %v3815_v47 }
 0x4fb   : > { %v3797_v56 = vpop.permute.xlu1 %3796 }
 0x4fc   : > { %v3865_v17 = vmax.f32 %v3859_v61, %v3864_v0  ;;  %v3842_v34 = vmax.f32 %v3832_v36, 0.0  ;;  %v3817_v9 = vadd.f32 %v3797_v56, %v3757_v1 }
 0x4fd   : > { %v3869_v8 = vld [vmem:[#allocation5 + $0x14] ss:$2 sm:$0xf]  ;;  %v3871_v54 = vld [vmem:[#allocation5 + $0x15] ss:$2 sm:$0xf] }
 0x4fe   : > { %3867 = vst.msk [vmem:[#allocation6] sm:$0xf] %vm3866_vm7, %v3865_v17  ;;  %v3872_v52 = vmax.f32 %v3869_v8, %v3871_v54  ;;  %v3874_v48 = vld [vmem:[#allocation5 + $0x1e] ss:$2 sm:$0xf]  ;;  %v3834_v45 = vadd.f32 %v6311_v28, %v3817_v9 }
 0x4ff   : > { %v3876_v5 = vld [vmem:[#allocation5 + $0x1f] ss:$2 sm:$0xf]  ;;  %3853 = vst.msk [vmem:[#allocation5 + $0x38] sm:$0xff] %vm3845_vm6, %v3842_v34 }
 0x500   : > { %v3877_v7 = vmax.f32 %v3874_v48, %v3876_v5  ;;  %v3844_v44 = vmax.f32 %v3834_v45, 0.0 }
 0x501   : > { %v3881_v21 = vld [vmem:[#allocation5 + $0x28] ss:$2 sm:$0xf]  ;;  %v3883_v51 = vld [vmem:[#allocation5 + $0x29] ss:$2 sm:$0xf] }
 0x502   : > { %v3878_v55 = vmax.f32 %v3872_v52, %v3877_v7  ;;  %3855 = vst.msk [vmem:[#allocation5 + $0x48] sm:$0xff] %vm3845_vm6, %v3844_v44  ;;  %v3884_v33 = vmax.f32 %v3881_v21, %v3883_v51 }
 0x504   : > { %3879 = vst.msk [vmem:[#allocation6 + $0x4] sm:$0xf] %vm3866_vm7, %v3878_v55 }
 0x506   : > { %v3886_v29 = vld [vmem:[#allocation5 + $0x32] ss:$2 sm:$0xf]  ;;  %v3888_v13 = vld [vmem:[#allocation5 + $0x33] ss:$2 sm:$0xf] }
 0x507   : > { %v3889_v25 = vmax.f32 %v3886_v29, %v3888_v13  ;;  %v3893_v27 = vld [vmem:[#allocation5 + $0x3c] ss:$2 sm:$0xf]  ;;  %v3895_v58 = vld [vmem:[#allocation5 + $0x3d] ss:$2 sm:$0xf] }
 0x508   : > { %v3896_v28 = vmax.f32 %v3893_v27, %v3895_v58  ;;  %v4400_v58 = vmov 1966171168  }
 0x509   : > { %v3890_v6 = vmax.f32 %v3884_v33, %v3889_v25  ;;  %v3898_v62 = vld [vmem:[#allocation5 + $0x46] ss:$2 sm:$0xf]  ;;  %v3900_v10 = vld [vmem:[#allocation5 + $0x47] ss:$2 sm:$0xf] }
 0x50a   : > { %v3901_v39 = vmax.f32 %v3898_v62, %v3900_v10  ;;  %v4148_v62 = vlaneseq }
 0x50b   : > { %3891 = vst.msk [vmem:[#allocation6 + $0x8] sm:$0xf] %vm3866_vm7, %v3890_v6  ;;  %v3904_v16 = vld [vmem:[#allocation6] sm:$0xff]  ;;  %v4146_v6 = vunpack.c.l.s4 %v4400_v58 }
 0x50c   : > { %v3902_v46 = vmax.f32 %v3896_v28, %v3901_v39  ;;  %vm4162_vm14 = vcmp.lt.s32.totalorder %v4148_v62, 256 }
 0x50e   : > { %3903 = vst.msk [vmem:[#allocation6 + $0xc] sm:$0xf] %vm3866_vm7, %v3902_v46 }
 0x515   : > { %v3905_v3 = vld [vmem:[#allocation6 + $0x8] sm:$0xff] }
 0x516   : > { %v3906_v12 = vpack.c.bf16 %v3905_v3, %v3904_v16  ;;  %v4147_v3 = vunpack.c.0.s8 %v4146_v6 }
 0x518   : > { %4314 = vmatmul.mubr.msk.bf16.vlgmr.msra.gmra.mxu1 %vm3845_vm6, %v3906_v12 }
 0x519   : > { %4318 = vmatpush3.bf16.msra.mxu1 %v4360_v60  ;;  %4325 = vmatprep.mubr.msk.bf16.mxu1 %vm4386_vm1, %v6621_v31  ;;  %v4149_v60 = vshrl.u32 %v4148_v62, 7 }
 0x51a   : > { %4319 = vmatprep.subr.bf16.mxu1 %v6621_v31 }
 0x51d   : > { %4320 = vmatpush3.bf16.msra.mxu1 %v4361_v53 }
 0x51e   : > { %4321 = vmatprep.subr.bf16.mxu1 %v6621_v31 }
 0x521   : > { %4322 = vmatpush3.bf16.msra.mxu1 %v4362_v42 }
 0x522   : > { %4323 = vmatprep.subr.bf16.mxu1 %v6621_v31  ;;  %v3982_v31 = vpop.permute.xlu0 %3981 }
 0x525   : > { %4324 = vmatpush3.bf16.msra.mxu1 %v4363_v32 }
 0x5d8   : > { %v3956_v15 = vpop.f32.mrf.mxu1 }
 0x5d9   : > { %v3957_v11 = vadd.f32 %v4254_v2, %v3956_v15 }
 0x5da   : > { %v4315_v30 = vpop.f32.mrf.mxu1 }
 0x5db   : > { %v3963_v50 = vmax.f32 %v3957_v11, 0.0 }
 0x5dc   : > { %v3959_v4 = vpop.f32.mrf.mxu1 }
 0x5dd   : > { %v3960_v49 = vadd.f32 %v4254_v2, %v3959_v4 }
 0x5de   : > { %v4316_v18 = vpop.f32.mrf.mxu1 }
 0x5df   : > { %v3964_v41 = vmax.f32 %v3960_v49, 0.0  ;;  %v4150_v49 = vsub.s32 %v4147_v3, %v4149_v60 }
 0x5e1   : > { %v3965_v22 = vpack.c.bf16 %v3964_v41, %v3963_v50 }
 0x5e3   : > { %4326 = vmatmul.mubr.msk.bf16.vlgmr.msra.gmra.mxu1 %vm4008_vm8, %v3965_v22 }
 0x6a3   : > { %v4046_v57 = vpop.f32.mrf.mxu1 }
 0x6a4   : > { %v4047_v26 = vadd.f32 %v4046_v57, %v3982_v31 }
 0x6a5   : > { %v4327_v63 = vpop.f32.mrf.mxu1 }
 0x6a6   : > { %v4262_v38 = vmul.f32 -1.442695, %v4047_v26 }
 0x6a7   : > { %v4049_v20 = vpop.f32.mrf.mxu1 }
 0x6a8   : > { %4364 = vpow2.f32 %v4262_v38  ;;  %v4050_v37 = vadd.f32 %v4049_v20, %v3982_v31 }
 0x6a9   : > { %v4328_v19 = vpop.f32.mrf.mxu1 }
 0x6aa   : > { %v4263_v24 = vmul.f32 -1.442695, %v4050_v37 }
 0x6ac   : > { %4366 = vpow2.f32 %v4263_v24 }
 0x6b5   : > { %v4365_v43 = vpop.eup %4364 }
 0x6b6   : > { %v4059_v40 = vadd.f32 1.0, %v4365_v43 }
 0x6b8   : > { %4368 = vrcp.f32 %v4059_v40 }
 0x6b9   : > { %v4367_v35 = vpop.eup %4366 }
 0x6ba   : > { %v4060_v14 = vadd.f32 1.0, %v4367_v35 }
 0x6bc   : > { %4370 = vrcp.f32 %v4060_v14 }
 0x6c5   : > { %v4369_v47 = vpop.eup %4368 }
 0x6c6   : > { %v4066_v23 = vrot.slane %v4369_v47, 1  ;;  %v4070_v1 = vrot.slane %v4369_v47, 2  ;;  %v4074_v36 = vrot.slane %v4369_v47, 3  ;;  %v4078_v17 = vrot.slane %v4369_v47, 4 }
 0x6c7   : > { %v4082_v9 = vrot.slane %v4369_v47, 5  ;;  %v4086_v54 = vrot.slane %v4369_v47, 6  ;;  %v4090_v48 = vrot.slane %v4369_v47, 7 }
 0x6c8   : > { %4067 = vrot.lane.b32.xlu1 %v4066_v23, %s4395_s28 }
 0x6c9   : > { %v4371_v59 = vpop.eup %4370 }
 0x6ca   : > { %v4095_v61 = vrot.slane %v4371_v59, 1  ;;  %v4099_v0 = vrot.slane %v4371_v59, 2  ;;  %v4103_v56 = vrot.slane %v4371_v59, 3  ;;  %v4107_v34 = vrot.slane %v4371_v59, 4 }
 0x6cb   : > { %v4111_v8 = vrot.slane %v4371_v59, 5  ;;  %v4115_v52 = vrot.slane %v4371_v59, 6  ;;  %v4119_v5 = vrot.slane %v4371_v59, 7 }
 0x6cc   : > { %4096 = vrot.lane.b32.xlu0 %v4095_v61, %s4395_s28  ;;  %4071 = vrot.lane.b32.xlu1 %v4070_v1, %s4396_s30 }
 0x6d0   : > { %4100 = vrot.lane.b32.xlu0 %v4099_v0, %s4396_s30  ;;  %4075 = vrot.lane.b32.xlu1 %v4074_v36, %s4397_s10 }
 0x6d4   : > { %4104 = vrot.lane.b32.xlu0 %v4103_v56, %s4397_s10  ;;  %4079 = vrot.lane.b32.xlu1 %v4078_v17, %s4398_s8 }
 0x6d8   : > { %4108 = vrot.lane.b32.xlu0 %v4107_v34, %s4398_s8  ;;  %4083 = vrot.lane.b32.xlu1 %v4082_v9, %s4399_s14 }
 0x6dc   : > { %4112 = vrot.lane.b32.xlu0 %v4111_v8, %s4399_s14  ;;  %4087 = vrot.lane.b32.xlu1 %v4086_v54, %s4394_s13 }
 0x6e0   : > { %4116 = vrot.lane.b32.xlu0 %v4115_v52, %s4394_s13  ;;  %4091 = vrot.lane.b32.xlu1 %v4090_v48, %s4390_s29 }
 0x6e4   : > { %4120 = vrot.lane.b32.xlu0 %v4119_v5, %s4390_s29  ;;  %s4224_s29 = sshll.u32 %s6623_s12, 1 }
 0x6e5   : > { %s332_s17 = scalar_lea.vmem %s6392_s9, %s4224_s29 }
 0x73a   : > { %v4068_v45 = vpop.permute.xlu1 %4067 }
 0x73b   : > { %v4123_v10 = vsel %vm334_vm0, %v4369_v47, %v4068_v45 }
 0x73e   : > { %v4097_v7 = vpop.permute.xlu0 %4096  ;;  %v4072_v44 = vpop.permute.xlu1 %4071 }
 0x73f   : > { %v4135_v28 = vsel %vm334_vm0, %v4371_v59, %v4097_v7  ;;  %v4125_v39 = vsel %vm4124_vm9, %v4123_v10, %v4072_v44 }
 0x742   : > { %v4101_v55 = vpop.permute.xlu0 %4100  ;;  %v4076_v21 = vpop.permute.xlu1 %4075 }
 0x743   : > { %v4136_v46 = vsel %vm4124_vm9, %v4135_v28, %v4101_v55  ;;  %v4127_v12 = vsel %vm4126_vm10, %v4125_v39, %v4076_v21 }
 0x746   : > { %v4105_v51 = vpop.permute.xlu0 %4104  ;;  %v4080_v29 = vpop.permute.xlu1 %4079 }
 0x747   : > { %v4137_v53 = vsel %vm4126_vm10, %v4136_v46, %v4105_v51  ;;  %v4128_v42 = vsel %vm4008_vm8, %v4127_v12, %v4080_v29 }
 0x74a   : > { %v4109_v13 = vpop.permute.xlu0 %4108  ;;  %v4084_v33 = vpop.permute.xlu1 %4083 }
 0x74b   : > { %v4138_v32 = vsel %vm4008_vm8, %v4137_v53, %v4109_v13  ;;  %v4130_v15 = vsel %vm4129_vm11, %v4128_v42, %v4084_v33 }
 0x74e   : > { %v4113_v25 = vpop.permute.xlu0 %4112  ;;  %v4088_v27 = vpop.permute.xlu1 %4087 }
 0x74f   : > { %v4139_v30 = vsel %vm4129_vm11, %v4138_v32, %v4113_v25  ;;  %v4132_v11 = vsel %vm4131_vm12, %v4130_v15, %v4088_v27 }
 0x752   : > { %v4117_v16 = vpop.permute.xlu0 %4116  ;;  %v4092_v2 = vpop.permute.xlu1 %4091 }
 0x753   : > { %v4140_v4 = vsel %vm4131_vm12, %v4139_v30, %v4117_v16  ;;  %v4134_v50 = vsel %vm4133_vm13, %v4132_v11, %v4092_v2 }
 0x756   : > { %v4121_v18 = vpop.permute.xlu0 %4120 }
 0x757   : > { %v4141_v41 = vsel %vm4133_vm13, %v4140_v4, %v4121_v18 }
 0x758   : > { %v4144_v22 = vcombine.low %v4134_v50, %v4141_v41 }
 0x75a   : > { %v4151_v31 = vrot.slane %v4144_v22, %v4150_v49 }
 0x75c   : > { %v4158_v57 = vrot.slane %v4151_v31, %v4150_v49 }
 0x75e   : > { %4164 = vst.msk [vmem:[%s332_s17] sm:$0x3] %vm4162_vm14, %v4158_v57 }
 0x75f PF: > { %s21_s11 = sadd.s32 1, %s4382_s11  }
 0x760   : > { %p18_p4 = scmp.ge.s32.totalorder %s21_s11, 4  }
 0x762   :  { %20 = sbr.rel (!%p18_p4) target bundleno = 3 (0x3), region = 132 }

</bundles_post_ra>
